<compile_context>
chip_gen: v6e
topology: v6e:2x2x1
jax: 0.10.0
libtpu: 0.0.40
codegen_flags: <defaults>
</compile_context>

<pallas_src>
import functools

import numpy as np
import jax
import jax.numpy as jnp
from jax import lax
from jax.experimental import pallas as pl
from jax.experimental.pallas import tpu as pltpu


def _conv_out(d, k, s, p):
    return (d + 2 * p - k) // s + 1


# ----------------------------------------------------------------------------
# The single fused Pallas kernel (one grid step == one batch element).
# ----------------------------------------------------------------------------
def _stignet_fused_kernel(cols1_ref, w1_ref, b1_ref,
                          s2_ref, w2_ref, b2_ref,
                          s3_ref, w3_ref, b3_ref,
                          wh_ref, bh_ref, out_ref, *, input_scale):
    f32 = jnp.float32

    # ---- conv1: im2col columns (built outside on the raw frame) @ (K1, 16) ---
    x = cols1_ref[0] * f32(input_scale)                      # folds the /255.0
    h = jnp.dot(x, w1_ref[...], preferred_element_type=f32) + b1_ref[...]
    h = jnp.maximum(h, 0.0)                                  # (M1, 16)

    # ---- conv2 / conv3: per-tap one-hot spatial gather + tap weight ----------
    def conv_taps(h_in, s_ref, w_ref, b_ref):
        acc = None
        for t in range(s_ref.shape[0]):                      # static unroll: k*k taps
            g = jnp.dot(s_ref[t], h_in, preferred_element_type=f32)   # (Mout, Cin)
            p = jnp.dot(g, w_ref[t], preferred_element_type=f32)      # (Mout, Cout)
            acc = p if acc is None else acc + p
        return jnp.maximum(acc + b_ref[...], 0.0)

    h = conv_taps(h, s2_ref, w2_ref, b2_ref)                 # (M2, 32)
    h = conv_taps(h, s3_ref, w3_ref, b3_ref)                 # (M3, 64)

    # ---- fused throttle+steering heads ---------------------------------------
    # flatten is folded into the (spatial, channel, 6) head-weight layout, so the
    # head is just a sum over spatial rows of (1,64) @ (64,6) matmuls.
    logits = bh_ref[...]                                     # (1, 6)
    for s in range(wh_ref.shape[0]):                         # static unroll: M3 rows
        logits = logits + jnp.dot(h[s:s + 1, :], wh_ref[s],
                                  preferred_element_type=f32)
    out_ref[0] = logits


def _full_spec(arr):
    zeros = (0,) * arr.ndim
    return pl.BlockSpec(arr.shape, lambda i, _z=zeros: _z)


# ----------------------------------------------------------------------------
# Tiny plain-JAX glue: im2col of the raw grayscale frame for conv1 (Cin == 1).
# ----------------------------------------------------------------------------
def _im2col_input(x, *, k, stride, pad):
    # x: (N, 1, H, W) f32 -> (N, Ho*Wo, k*k); column order t = ki*k + kj matches
    # torch weight.reshape(Cout, Cin*k*k) because Cin == 1.
    n, c, h, w = x.shape
    assert c == 1
    xp = jnp.pad(x, ((0, 0), (0, 0), (pad, pad), (pad, pad)))
    ho = _conv_out(h, k, stride, pad)
    wo = _conv_out(w, k, stride, pad)
    taps = []
    for ki in range(k):
        for kj in range(k):
            taps.append(xp[:, 0, ki:ki + stride * ho:stride,
                              kj:kj + stride * wo:stride])
    cols = jnp.stack(taps, axis=-1)                          # (N, Ho, Wo, k*k)
    return cols.reshape(n, ho * wo, k * k)


# ----------------------------------------------------------------------------
# One-time weight / gather-matrix preparation (hoisted out of the hot path).
# ----------------------------------------------------------------------------
def _make_tap_gather(hin, win, hout, wout, k, stride, pad):
    # S[t] is a (hout*wout, hin*win) 0/1 selection matrix for tap t; rows that
    # fall into the zero-padding region are all-zero (== zero padding).
    s = np.zeros((k * k, hout * wout, hin * win), np.float32)
    for ki in range(k):
        for kj in range(k):
            t = ki * k + kj
            for oh in range(hout):
                ih = oh * stride - pad + ki
                if not (0 <= ih < hin):
                    continue
                for ow in range(wout):
                    iw = ow * stride - pad + kj
                    if 0 <= iw < win:
                        s[t, oh * wout + ow, ih * win + iw] = 1.0
    return jnp.asarray(s)


def prepare_params(params, size):
    """Reshape/permute torch-layout params once into kernel-friendly layouts."""
    h, w = size
    h1, w1 = _conv_out(h, 5, 2, 1), _conv_out(w, 5, 2, 1)
    h2, w2 = _conv_out(h1, 3, 2, 1), _conv_out(w1, 3, 2, 1)
    h3, w3 = _conv_out(h2, 3, 2, 1), _conv_out(w2, 3, 2, 1)
    sp3 = h3 * w3
    flat = 64 * sp3

    # heads: concat (flat, 3)+(flat, 3) -> (flat, 6); permute rows so the kernel's
    # (spatial, channel) flatten matches torch's NCHW flatten (idx = c*sp3 + s).
    wh = jnp.concatenate([params["fc_t_w"].T, params["fc_s_w"].T], axis=1)
    assert wh.shape[0] == flat
    wh = wh.reshape(64, sp3, 6).transpose(1, 0, 2)            # (sp3, 64, 6)

    f32 = jnp.float32
    return {
        "w1": params["c1_w"].reshape(16, 25).T.astype(f32),                     # (25, 16)
        "b1": params["c1_b"].reshape(1, 16).astype(f32),
        "s2": _make_tap_gather(h1, w1, h2, w2, 3, 2, 1),                         # (9, M2, M1)
        "w2": jnp.transpose(params["c2_w"], (2, 3, 1, 0)).reshape(9, 16, 32).astype(f32),
        "b2": params["c2_b"].reshape(1, 32).astype(f32),
        "s3": _make_tap_gather(h2, w2, h3, w3, 3, 2, 1),                         # (9, M3, M2)
        "w3": jnp.transpose(params["c3_w"], (2, 3, 1, 0)).reshape(9, 32, 64).astype(f32),
        "b3": params["c3_b"].reshape(1, 64).astype(f32),
        "wh": wh.astype(f32),                                                    # (M3, 64, 6)
        "bh": jnp.concatenate([params["fc_t_b"], params["fc_s_b"]]).reshape(1, 6).astype(f32),
    }


# ----------------------------------------------------------------------------
# Forward pass: one pallas_call for the whole network.
# ----------------------------------------------------------------------------
def stignet_forward(prep, x):
    """x: (N, 1, H, W) grayscale frame. Returns (throttle_logits, steering_logits)."""
    n = x.shape[0]
    x = x.astype(jnp.float32)
    cols1 = _im2col_input(x, k=5, stride=2, pad=1)            # (N, M1, 25)
    _, m1, k1 = cols1.shape

    out = pl.pallas_call(
        functools.partial(_stignet_fused_kernel, input_scale=1.0 / 255.0),
        out_shape=jax.ShapeDtypeStruct((n, 1, 6), jnp.float32),
        grid=(n,),
        in_specs=[
            pl.BlockSpec((1, m1, k1), lambda i: (i, 0, 0)),
            _full_spec(prep["w1"]), _full_spec(prep["b1"]),
            _full_spec(prep["s2"]), _full_spec(prep["w2"]), _full_spec(prep["b2"]),
            _full_spec(prep["s3"]), _full_spec(prep["w3"]), _full_spec(prep["b3"]),
            _full_spec(prep["wh"]), _full_spec(prep["bh"]),
        ],
        out_specs=pl.BlockSpec((1, 1, 6), lambda i: (i, 0, 0)),
        compiler_params=pltpu.CompilerParams(
            dimension_semantics=("parallel",)),
    )(cols1, prep["w1"], prep["b1"],
      prep["s2"], prep["w2"], prep["b2"],
      prep["s3"], prep["w3"], prep["b3"],
      prep["wh"], prep["bh"])

    logits = out.reshape(n, 6)
    return logits[:, :3], logits[:, 3:]


# ----------------------------------------------------------------------------
# Parameter init (torch-like layouts / init scale) and pure-JAX reference.
# ----------------------------------------------------------------------------
def init_params(key, size):
    h, w = size
    ks = jax.random.split(key, 10)

    def u(k_, shape, fan_in):
        bound = 1.0 / (fan_in ** 0.5)
        return jax.random.uniform(k_, shape, jnp.float32, -bound, bound)

    h1, w1 = _conv_out(h, 5, 2, 1), _conv_out(w, 5, 2, 1)
    h2, w2 = _conv_out(h1, 3, 2, 1), _conv_out(w1, 3, 2, 1)
    h3, w3 = _conv_out(h2, 3, 2, 1), _conv_out(w2, 3, 2, 1)
    flat = 64 * h3 * w3

    return {
        "c1_w": u(ks[0], (16, 1, 5, 5), 1 * 5 * 5),
        "c1_b": u(ks[1], (16,), 1 * 5 * 5),
        "c2_w": u(ks[2], (32, 16, 3, 3), 16 * 3 * 3),
        "c2_b": u(ks[3], (32,), 16 * 3 * 3),
        "c3_w": u(ks[4], (64, 32, 3, 3), 32 * 3 * 3),
        "c3_b": u(ks[5], (64,), 32 * 3 * 3),
        "fc_t_w": u(ks[6], (3, flat), flat),
        "fc_t_b": u(ks[7], (3,), flat),
        "fc_s_w": u(ks[8], (3, flat), flat),
        "fc_s_b": u(ks[9], (3,), flat),
    }


def stignet_reference(params, x):
    x = x.astype(jnp.float32) / 255.0
    dn = ("NCHW", "OIHW", "NCHW")

    def conv(inp, w, b, s, p):
        y = lax.conv_general_dilated(inp, w, (s, s), [(p, p), (p, p)],
                                     dimension_numbers=dn)
        return jnp.maximum(y + b[None, :, None, None], 0.0)

    h1 = conv(x, params["c1_w"], params["c1_b"], 2, 1)
    h2 = conv(h1, params["c2_w"], params["c2_b"], 2, 1)
    h3 = conv(h2, params["c3_w"], params["c3_b"], 2, 1)
    z = h3.reshape(x.shape[0], -1)
    t = z @ params["fc_t_w"].T + params["fc_t_b"]
    s = z @ params["fc_s_w"].T + params["fc_s_b"]
    return t, s


if __name__ == "__main__":
    key = jax.random.PRNGKey(0)
    k_img, k_par = jax.random.split(key)

    size = (32, 32)                       # frame Height, Width
    batch = 2
    # grayscale frame with integer pixel values in [0, 255]
    x = jax.random.randint(k_img, (batch, 1, size[0], size[1]), 0, 256,
                           dtype=jnp.int32).astype(jnp.uint8)

    params = init_params(k_par, size)
    prep = prepare_params(params, size)   # one-time weight/gather preparation

    fwd = jax.jit(stignet_forward)
    throttle, steering = fwd(prep, x)
    jax.block_until_ready((throttle, steering))

    assert throttle.shape == (batch, 3) and steering.shape == (batch, 3)

    # sanity check against a pure-JAX reference
    t_ref, s_ref = stignet_reference(params, x)
    assert jnp.allclose(throttle, t_ref, rtol=1e-3, atol=1e-3)
    assert jnp.allclose(steering, s_ref, rtol=1e-3, atol=1e-3)

    print("KERNEL_OK")
</pallas_src>

<mosaic_0001>
module attributes {stable_mosaic.version = 11 : i64} {
  func.func @_stignet_fused_kernel(%arg0: i32, %arg1: memref<1x225x25xf32, #tpu.memory_space<vmem>>, %arg2: memref<25x16xf32, #tpu.memory_space<vmem>>, %arg3: memref<1x16xf32, #tpu.memory_space<vmem>>, %arg4: memref<9x64x225xf32, #tpu.memory_space<vmem>>, %arg5: memref<9x16x32xf32, #tpu.memory_space<vmem>>, %arg6: memref<1x32xf32, #tpu.memory_space<vmem>>, %arg7: memref<9x16x64xf32, #tpu.memory_space<vmem>>, %arg8: memref<9x32x64xf32, #tpu.memory_space<vmem>>, %arg9: memref<1x64xf32, #tpu.memory_space<vmem>>, %arg10: memref<16x64x6xf32, #tpu.memory_space<vmem>>, %arg11: memref<1x6xf32, #tpu.memory_space<vmem>>, %arg12: memref<1x1x6xf32, #tpu.memory_space<vmem>>) attributes {dimension_semantics = [#tpu.dimension_semantics<parallel>], iteration_bounds = array<i64: 2>, scalar_prefetch = 0 : i64, scratch_operands = 0 : i64, tpu.core_type = #tpu.core_type<tc>, window_params = [{transform_indices = @transform_0, window_bounds = array<i64: 1, 225, 25>}, {pipeline_mode = #tpu.pipeline_mode<synchronous>, transform_indices = @transform_1, window_bounds = array<i64: 25, 16>}, {pipeline_mode = #tpu.pipeline_mode<synchronous>, transform_indices = @transform_2, window_bounds = array<i64: 1, 16>}, {pipeline_mode = #tpu.pipeline_mode<synchronous>, transform_indices = @transform_3, window_bounds = array<i64: 9, 64, 225>}, {pipeline_mode = #tpu.pipeline_mode<synchronous>, transform_indices = @transform_4, window_bounds = array<i64: 9, 16, 32>}, {pipeline_mode = #tpu.pipeline_mode<synchronous>, transform_indices = @transform_5, window_bounds = array<i64: 1, 32>}, {pipeline_mode = #tpu.pipeline_mode<synchronous>, transform_indices = @transform_6, window_bounds = array<i64: 9, 16, 64>}, {pipeline_mode = #tpu.pipeline_mode<synchronous>, transform_indices = @transform_7, window_bounds = array<i64: 9, 32, 64>}, {pipeline_mode = #tpu.pipeline_mode<synchronous>, transform_indices = @transform_8, window_bounds = array<i64: 1, 64>}, {pipeline_mode = #tpu.pipeline_mode<synchronous>, transform_indices = @transform_9, window_bounds = array<i64: 16, 64, 6>}, {pipeline_mode = #tpu.pipeline_mode<synchronous>, transform_indices = @transform_10, window_bounds = array<i64: 1, 6>}, {transform_indices = @transform_11, window_bounds = array<i64: 1, 1, 6>}]} {
    %c0 = arith.constant 0 : index
    %c0_0 = arith.constant 0 : index
    %c0_1 = arith.constant 0 : index
    %0 = vector.load %arg1[%c0, %c0_0, %c0_1] : memref<1x225x25xf32, #tpu.memory_space<vmem>>, vector<1x225x25xf32>
    %1 = vector.shape_cast %0 : vector<1x225x25xf32> to vector<225x25xf32>
    %cst = arith.constant 0.00392156886 : f32
    %2 = vector.broadcast %cst : f32 to vector<225x25xf32>
    %3 = arith.mulf %1, %2 : vector<225x25xf32>
    %c0_2 = arith.constant 0 : index
    %c0_3 = arith.constant 0 : index
    %4 = vector.load %arg2[%c0_2, %c0_3] : memref<25x16xf32, #tpu.memory_space<vmem>>, vector<25x16xf32>
    %cst_4 = arith.constant dense<0.000000e+00> : vector<225x16xf32>
    %5 = tpu.matmul %3, %4, %cst_4 {dimension_numbers = #tpu.dot_dimension_numbers<[1], [0], [0], [1], [0, 0, 1, 1], [], []>} : vector<225x25xf32>, vector<25x16xf32>, vector<225x16xf32> -> vector<225x16xf32>
    %c0_5 = arith.constant 0 : index
    %c0_6 = arith.constant 0 : index
    %6 = vector.load %arg3[%c0_5, %c0_6] : memref<1x16xf32, #tpu.memory_space<vmem>>, vector<1x16xf32>
    %7 = vector.broadcast %6 : vector<1x16xf32> to vector<225x16xf32>
    %8 = arith.addf %5, %7 : vector<225x16xf32>
    %cst_7 = arith.constant 0.000000e+00 : f32
    %9 = vector.broadcast %cst_7 : f32 to vector<225x16xf32>
    %10 = arith.maximumf %8, %9 : vector<225x16xf32>
    %c0_8 = arith.constant 0 : index
    %c0_9 = arith.constant 0 : index
    %c0_10 = arith.constant 0 : index
    %11 = vector.load %arg4[%c0_8, %c0_9, %c0_10] : memref<9x64x225xf32, #tpu.memory_space<vmem>>, vector<1x64x225xf32>
    %12 = vector.shape_cast %11 : vector<1x64x225xf32> to vector<64x225xf32>
    %cst_11 = arith.constant dense<0.000000e+00> : vector<64x16xf32>
    %13 = tpu.matmul %12, %10, %cst_11 {dimension_numbers = #tpu.dot_dimension_numbers<[1], [0], [0], [1], [0, 0, 1, 1], [], []>} : vector<64x225xf32>, vector<225x16xf32>, vector<64x16xf32> -> vector<64x16xf32>
    %c0_12 = arith.constant 0 : index
    %c0_13 = arith.constant 0 : index
    %c0_14 = arith.constant 0 : index
    %14 = vector.load %arg5[%c0_12, %c0_13, %c0_14] : memref<9x16x32xf32, #tpu.memory_space<vmem>>, vector<1x16x32xf32>
    %15 = vector.shape_cast %14 : vector<1x16x32xf32> to vector<16x32xf32>
    %cst_15 = arith.constant dense<0.000000e+00> : vector<64x32xf32>
    %16 = tpu.matmul %13, %15, %cst_15 {dimension_numbers = #tpu.dot_dimension_numbers<[1], [0], [0], [1], [0, 0, 1, 1], [], []>} : vector<64x16xf32>, vector<16x32xf32>, vector<64x32xf32> -> vector<64x32xf32>
    %c1 = arith.constant 1 : index
    %c0_16 = arith.constant 0 : index
    %c0_17 = arith.constant 0 : index
    %17 = vector.load %arg4[%c1, %c0_16, %c0_17] : memref<9x64x225xf32, #tpu.memory_space<vmem>>, vector<1x64x225xf32>
    %18 = vector.shape_cast %17 : vector<1x64x225xf32> to vector<64x225xf32>
    %cst_18 = arith.constant dense<0.000000e+00> : vector<64x16xf32>
    %19 = tpu.matmul %18, %10, %cst_18 {dimension_numbers = #tpu.dot_dimension_numbers<[1], [0], [0], [1], [0, 0, 1, 1], [], []>} : vector<64x225xf32>, vector<225x16xf32>, vector<64x16xf32> -> vector<64x16xf32>
    %c1_19 = arith.constant 1 : index
    %c0_20 = arith.constant 0 : index
    %c0_21 = arith.constant 0 : index
    %20 = vector.load %arg5[%c1_19, %c0_20, %c0_21] : memref<9x16x32xf32, #tpu.memory_space<vmem>>, vector<1x16x32xf32>
    %21 = vector.shape_cast %20 : vector<1x16x32xf32> to vector<16x32xf32>
    %cst_22 = arith.constant dense<0.000000e+00> : vector<64x32xf32>
    %22 = tpu.matmul %19, %21, %cst_22 {dimension_numbers = #tpu.dot_dimension_numbers<[1], [0], [0], [1], [0, 0, 1, 1], [], []>} : vector<64x16xf32>, vector<16x32xf32>, vector<64x32xf32> -> vector<64x32xf32>
    %23 = arith.addf %16, %22 : vector<64x32xf32>
    %c2 = arith.constant 2 : index
    %c0_23 = arith.constant 0 : index
    %c0_24 = arith.constant 0 : index
    %24 = vector.load %arg4[%c2, %c0_23, %c0_24] : memref<9x64x225xf32, #tpu.memory_space<vmem>>, vector<1x64x225xf32>
    %25 = vector.shape_cast %24 : vector<1x64x225xf32> to vector<64x225xf32>
    %cst_25 = arith.constant dense<0.000000e+00> : vector<64x16xf32>
    %26 = tpu.matmul %25, %10, %cst_25 {dimension_numbers = #tpu.dot_dimension_numbers<[1], [0], [0], [1], [0, 0, 1, 1], [], []>} : vector<64x225xf32>, vector<225x16xf32>, vector<64x16xf32> -> vector<64x16xf32>
    %c2_26 = arith.constant 2 : index
    %c0_27 = arith.constant 0 : index
    %c0_28 = arith.constant 0 : index
    %27 = vector.load %arg5[%c2_26, %c0_27, %c0_28] : memref<9x16x32xf32, #tpu.memory_space<vmem>>, vector<1x16x32xf32>
    %28 = vector.shape_cast %27 : vector<1x16x32xf32> to vector<16x32xf32>
    %cst_29 = arith.constant dense<0.000000e+00> : vector<64x32xf32>
    %29 = tpu.matmul %26, %28, %cst_29 {dimension_numbers = #tpu.dot_dimension_numbers<[1], [0], [0], [1], [0, 0, 1, 1], [], []>} : vector<64x16xf32>, vector<16x32xf32>, vector<64x32xf32> -> vector<64x32xf32>
    %30 = arith.addf %23, %29 : vector<64x32xf32>
    %c3 = arith.constant 3 : index
    %c0_30 = arith.constant 0 : index
    %c0_31 = arith.constant 0 : index
    %31 = vector.load %arg4[%c3, %c0_30, %c0_31] : memref<9x64x225xf32, #tpu.memory_space<vmem>>, vector<1x64x225xf32>
    %32 = vector.shape_cast %31 : vector<1x64x225xf32> to vector<64x225xf32>
    %cst_32 = arith.constant dense<0.000000e+00> : vector<64x16xf32>
    %33 = tpu.matmul %32, %10, %cst_32 {dimension_numbers = #tpu.dot_dimension_numbers<[1], [0], [0], [1], [0, 0, 1, 1], [], []>} : vector<64x225xf32>, vector<225x16xf32>, vector<64x16xf32> -> vector<64x16xf32>
    %c3_33 = arith.constant 3 : index
    %c0_34 = arith.constant 0 : index
    %c0_35 = arith.constant 0 : index
    %34 = vector.load %arg5[%c3_33, %c0_34, %c0_35] : memref<9x16x32xf32, #tpu.memory_space<vmem>>, vector<1x16x32xf32>
    %35 = vector.shape_cast %34 : vector<1x16x32xf32> to vector<16x32xf32>
    %cst_36 = arith.constant dense<0.000000e+00> : vector<64x32xf32>
    %36 = tpu.matmul %33, %35, %cst_36 {dimension_numbers = #tpu.dot_dimension_numbers<[1], [0], [0], [1], [0, 0, 1, 1], [], []>} : vector<64x16xf32>, vector<16x32xf32>, vector<64x32xf32> -> vector<64x32xf32>
    %37 = arith.addf %30, %36 : vector<64x32xf32>
    %c4 = arith.constant 4 : index
    %c0_37 = arith.constant 0 : index
    %c0_38 = arith.constant 0 : index
    %38 = vector.load %arg4[%c4, %c0_37, %c0_38] : memref<9x64x225xf32, #tpu.memory_space<vmem>>, vector<1x64x225xf32>
    %39 = vector.shape_cast %38 : vector<1x64x225xf32> to vector<64x225xf32>
    %cst_39 = arith.constant dense<0.000000e+00> : vector<64x16xf32>
    %40 = tpu.matmul %39, %10, %cst_39 {dimension_numbers = #tpu.dot_dimension_numbers<[1], [0], [0], [1], [0, 0, 1, 1], [], []>} : vector<64x225xf32>, vector<225x16xf32>, vector<64x16xf32> -> vector<64x16xf32>
    %c4_40 = arith.constant 4 : index
    %c0_41 = arith.constant 0 : index
    %c0_42 = arith.constant 0 : index
    %41 = vector.load %arg5[%c4_40, %c0_41, %c0_42] : memref<9x16x32xf32, #tpu.memory_space<vmem>>, vector<1x16x32xf32>
    %42 = vector.shape_cast %41 : vector<1x16x32xf32> to vector<16x32xf32>
    %cst_43 = arith.constant dense<0.000000e+00> : vector<64x32xf32>
    %43 = tpu.matmul %40, %42, %cst_43 {dimension_numbers = #tpu.dot_dimension_numbers<[1], [0], [0], [1], [0, 0, 1, 1], [], []>} : vector<64x16xf32>, vector<16x32xf32>, vector<64x32xf32> -> vector<64x32xf32>
    %44 = arith.addf %37, %43 : vector<64x32xf32>
    %c5 = arith.constant 5 : index
    %c0_44 = arith.constant 0 : index
    %c0_45 = arith.constant 0 : index
    %45 = vector.load %arg4[%c5, %c0_44, %c0_45] : memref<9x64x225xf32, #tpu.memory_space<vmem>>, vector<1x64x225xf32>
    %46 = vector.shape_cast %45 : vector<1x64x225xf32> to vector<64x225xf32>
    %cst_46 = arith.constant dense<0.000000e+00> : vector<64x16xf32>
    %47 = tpu.matmul %46, %10, %cst_46 {dimension_numbers = #tpu.dot_dimension_numbers<[1], [0], [0], [1], [0, 0, 1, 1], [], []>} : vector<64x225xf32>, vector<225x16xf32>, vector<64x16xf32> -> vector<64x16xf32>
    %c5_47 = arith.constant 5 : index
    %c0_48 = arith.constant 0 : index
    %c0_49 = arith.constant 0 : index
    %48 = vector.load %arg5[%c5_47, %c0_48, %c0_49] : memref<9x16x32xf32, #tpu.memory_space<vmem>>, vector<1x16x32xf32>
    %49 = vector.shape_cast %48 : vector<1x16x32xf32> to vector<16x32xf32>
    %cst_50 = arith.constant dense<0.000000e+00> : vector<64x32xf32>
    %50 = tpu.matmul %47, %49, %cst_50 {dimension_numbers = #tpu.dot_dimension_numbers<[1], [0], [0], [1], [0, 0, 1, 1], [], []>} : vector<64x16xf32>, vector<16x32xf32>, vector<64x32xf32> -> vector<64x32xf32>
    %51 = arith.addf %44, %50 : vector<64x32xf32>
    %c6 = arith.constant 6 : index
    %c0_51 = arith.constant 0 : index
    %c0_52 = arith.constant 0 : index
    %52 = vector.load %arg4[%c6, %c0_51, %c0_52] : memref<9x64x225xf32, #tpu.memory_space<vmem>>, vector<1x64x225xf32>
    %53 = vector.shape_cast %52 : vector<1x64x225xf32> to vector<64x225xf32>
    %cst_53 = arith.constant dense<0.000000e+00> : vector<64x16xf32>
    %54 = tpu.matmul %53, %10, %cst_53 {dimension_numbers = #tpu.dot_dimension_numbers<[1], [0], [0], [1], [0, 0, 1, 1], [], []>} : vector<64x225xf32>, vector<225x16xf32>, vector<64x16xf32> -> vector<64x16xf32>
    %c6_54 = arith.constant 6 : index
    %c0_55 = arith.constant 0 : index
    %c0_56 = arith.constant 0 : index
    %55 = vector.load %arg5[%c6_54, %c0_55, %c0_56] : memref<9x16x32xf32, #tpu.memory_space<vmem>>, vector<1x16x32xf32>
    %56 = vector.shape_cast %55 : vector<1x16x32xf32> to vector<16x32xf32>
    %cst_57 = arith.constant dense<0.000000e+00> : vector<64x32xf32>
    %57 = tpu.matmul %54, %56, %cst_57 {dimension_numbers = #tpu.dot_dimension_numbers<[1], [0], [0], [1], [0, 0, 1, 1], [], []>} : vector<64x16xf32>, vector<16x32xf32>, vector<64x32xf32> -> vector<64x32xf32>
    %58 = arith.addf %51, %57 : vector<64x32xf32>
    %c7 = arith.constant 7 : index
    %c0_58 = arith.constant 0 : index
    %c0_59 = arith.constant 0 : index
    %59 = vector.load %arg4[%c7, %c0_58, %c0_59] : memref<9x64x225xf32, #tpu.memory_space<vmem>>, vector<1x64x225xf32>
    %60 = vector.shape_cast %59 : vector<1x64x225xf32> to vector<64x225xf32>
    %cst_60 = arith.constant dense<0.000000e+00> : vector<64x16xf32>
    %61 = tpu.matmul %60, %10, %cst_60 {dimension_numbers = #tpu.dot_dimension_numbers<[1], [0], [0], [1], [0, 0, 1, 1], [], []>} : vector<64x225xf32>, vector<225x16xf32>, vector<64x16xf32> -> vector<64x16xf32>
    %c7_61 = arith.constant 7 : index
    %c0_62 = arith.constant 0 : index
    %c0_63 = arith.constant 0 : index
    %62 = vector.load %arg5[%c7_61, %c0_62, %c0_63] : memref<9x16x32xf32, #tpu.memory_space<vmem>>, vector<1x16x32xf32>
    %63 = vector.shape_cast %62 : vector<1x16x32xf32> to vector<16x32xf32>
    %cst_64 = arith.constant dense<0.000000e+00> : vector<64x32xf32>
    %64 = tpu.matmul %61, %63, %cst_64 {dimension_numbers = #tpu.dot_dimension_numbers<[1], [0], [0], [1], [0, 0, 1, 1], [], []>} : vector<64x16xf32>, vector<16x32xf32>, vector<64x32xf32> -> vector<64x32xf32>
    %65 = arith.addf %58, %64 : vector<64x32xf32>
    %c8 = arith.constant 8 : index
    %c0_65 = arith.constant 0 : index
    %c0_66 = arith.constant 0 : index
    %66 = vector.load %arg4[%c8, %c0_65, %c0_66] : memref<9x64x225xf32, #tpu.memory_space<vmem>>, vector<1x64x225xf32>
    %67 = vector.shape_cast %66 : vector<1x64x225xf32> to vector<64x225xf32>
    %cst_67 = arith.constant dense<0.000000e+00> : vector<64x16xf32>
    %68 = tpu.matmul %67, %10, %cst_67 {dimension_numbers = #tpu.dot_dimension_numbers<[1], [0], [0], [1], [0, 0, 1, 1], [], []>} : vector<64x225xf32>, vector<225x16xf32>, vector<64x16xf32> -> vector<64x16xf32>
    %c8_68 = arith.constant 8 : index
    %c0_69 = arith.constant 0 : index
    %c0_70 = arith.constant 0 : index
    %69 = vector.load %arg5[%c8_68, %c0_69, %c0_70] : memref<9x16x32xf32, #tpu.memory_space<vmem>>, vector<1x16x32xf32>
    %70 = vector.shape_cast %69 : vector<1x16x32xf32> to vector<16x32xf32>
    %cst_71 = arith.constant dense<0.000000e+00> : vector<64x32xf32>
    %71 = tpu.matmul %68, %70, %cst_71 {dimension_numbers = #tpu.dot_dimension_numbers<[1], [0], [0], [1], [0, 0, 1, 1], [], []>} : vector<64x16xf32>, vector<16x32xf32>, vector<64x32xf32> -> vector<64x32xf32>
    %72 = arith.addf %65, %71 : vector<64x32xf32>
    %c0_72 = arith.constant 0 : index
    %c0_73 = arith.constant 0 : index
    %73 = vector.load %arg6[%c0_72, %c0_73] : memref<1x32xf32, #tpu.memory_space<vmem>>, vector<1x32xf32>
    %74 = vector.broadcast %73 : vector<1x32xf32> to vector<64x32xf32>
    %75 = arith.addf %72, %74 : vector<64x32xf32>
    %cst_74 = arith.constant 0.000000e+00 : f32
    %76 = vector.broadcast %cst_74 : f32 to vector<64x32xf32>
    %77 = arith.maximumf %75, %76 : vector<64x32xf32>
    %c0_75 = arith.constant 0 : index
    %c0_76 = arith.constant 0 : index
    %c0_77 = arith.constant 0 : index
    %78 = vector.load %arg7[%c0_75, %c0_76, %c0_77] : memref<9x16x64xf32, #tpu.memory_space<vmem>>, vector<1x16x64xf32>
    %79 = vector.shape_cast %78 : vector<1x16x64xf32> to vector<16x64xf32>
    %cst_78 = arith.constant dense<0.000000e+00> : vector<16x32xf32>
    %80 = tpu.matmul %79, %77, %cst_78 {dimension_numbers = #tpu.dot_dimension_numbers<[1], [0], [0], [1], [0, 0, 1, 1], [], []>} : vector<16x64xf32>, vector<64x32xf32>, vector<16x32xf32> -> vector<16x32xf32>
    %c0_79 = arith.constant 0 : index
    %c0_80 = arith.constant 0 : index
    %c0_81 = arith.constant 0 : index
    %81 = vector.load %arg8[%c0_79, %c0_80, %c0_81] : memref<9x32x64xf32, #tpu.memory_space<vmem>>, vector<1x32x64xf32>
    %82 = vector.shape_cast %81 : vector<1x32x64xf32> to vector<32x64xf32>
    %cst_82 = arith.constant dense<0.000000e+00> : vector<16x64xf32>
    %83 = tpu.matmul %80, %82, %cst_82 {dimension_numbers = #tpu.dot_dimension_numbers<[1], [0], [0], [1], [0, 0, 1, 1], [], []>} : vector<16x32xf32>, vector<32x64xf32>, vector<16x64xf32> -> vector<16x64xf32>
    %c1_83 = arith.constant 1 : index
    %c0_84 = arith.constant 0 : index
    %c0_85 = arith.constant 0 : index
    %84 = vector.load %arg7[%c1_83, %c0_84, %c0_85] : memref<9x16x64xf32, #tpu.memory_space<vmem>>, vector<1x16x64xf32>
    %85 = vector.shape_cast %84 : vector<1x16x64xf32> to vector<16x64xf32>
    %cst_86 = arith.constant dense<0.000000e+00> : vector<16x32xf32>
    %86 = tpu.matmul %85, %77, %cst_86 {dimension_numbers = #tpu.dot_dimension_numbers<[1], [0], [0], [1], [0, 0, 1, 1], [], []>} : vector<16x64xf32>, vector<64x32xf32>, vector<16x32xf32> -> vector<16x32xf32>
    %c1_87 = arith.constant 1 : index
    %c0_88 = arith.constant 0 : index
    %c0_89 = arith.constant 0 : index
    %87 = vector.load %arg8[%c1_87, %c0_88, %c0_89] : memref<9x32x64xf32, #tpu.memory_space<vmem>>, vector<1x32x64xf32>
    %88 = vector.shape_cast %87 : vector<1x32x64xf32> to vector<32x64xf32>
    %cst_90 = arith.constant dense<0.000000e+00> : vector<16x64xf32>
    %89 = tpu.matmul %86, %88, %cst_90 {dimension_numbers = #tpu.dot_dimension_numbers<[1], [0], [0], [1], [0, 0, 1, 1], [], []>} : vector<16x32xf32>, vector<32x64xf32>, vector<16x64xf32> -> vector<16x64xf32>
    %90 = arith.addf %83, %89 : vector<16x64xf32>
    %c2_91 = arith.constant 2 : index
    %c0_92 = arith.constant 0 : index
    %c0_93 = arith.constant 0 : index
    %91 = vector.load %arg7[%c2_91, %c0_92, %c0_93] : memref<9x16x64xf32, #tpu.memory_space<vmem>>, vector<1x16x64xf32>
    %92 = vector.shape_cast %91 : vector<1x16x64xf32> to vector<16x64xf32>
    %cst_94 = arith.constant dense<0.000000e+00> : vector<16x32xf32>
    %93 = tpu.matmul %92, %77, %cst_94 {dimension_numbers = #tpu.dot_dimension_numbers<[1], [0], [0], [1], [0, 0, 1, 1], [], []>} : vector<16x64xf32>, vector<64x32xf32>, vector<16x32xf32> -> vector<16x32xf32>
    %c2_95 = arith.constant 2 : index
    %c0_96 = arith.constant 0 : index
    %c0_97 = arith.constant 0 : index
    %94 = vector.load %arg8[%c2_95, %c0_96, %c0_97] : memref<9x32x64xf32, #tpu.memory_space<vmem>>, vector<1x32x64xf32>
    %95 = vector.shape_cast %94 : vector<1x32x64xf32> to vector<32x64xf32>
    %cst_98 = arith.constant dense<0.000000e+00> : vector<16x64xf32>
    %96 = tpu.matmul %93, %95, %cst_98 {dimension_numbers = #tpu.dot_dimension_numbers<[1], [0], [0], [1], [0, 0, 1, 1], [], []>} : vector<16x32xf32>, vector<32x64xf32>, vector<16x64xf32> -> vector<16x64xf32>
    %97 = arith.addf %90, %96 : vector<16x64xf32>
    %c3_99 = arith.constant 3 : index
    %c0_100 = arith.constant 0 : index
    %c0_101 = arith.constant 0 : index
    %98 = vector.load %arg7[%c3_99, %c0_100, %c0_101] : memref<9x16x64xf32, #tpu.memory_space<vmem>>, vector<1x16x64xf32>
    %99 = vector.shape_cast %98 : vector<1x16x64xf32> to vector<16x64xf32>
    %cst_102 = arith.constant dense<0.000000e+00> : vector<16x32xf32>
    %100 = tpu.matmul %99, %77, %cst_102 {dimension_numbers = #tpu.dot_dimension_numbers<[1], [0], [0], [1], [0, 0, 1, 1], [], []>} : vector<16x64xf32>, vector<64x32xf32>, vector<16x32xf32> -> vector<16x32xf32>
    %c3_103 = arith.constant 3 : index
    %c0_104 = arith.constant 0 : index
    %c0_105 = arith.constant 0 : index
    %101 = vector.load %arg8[%c3_103, %c0_104, %c0_105] : memref<9x32x64xf32, #tpu.memory_space<vmem>>, vector<1x32x64xf32>
    %102 = vector.shape_cast %101 : vector<1x32x64xf32> to vector<32x64xf32>
    %cst_106 = arith.constant dense<0.000000e+00> : vector<16x64xf32>
    %103 = tpu.matmul %100, %102, %cst_106 {dimension_numbers = #tpu.dot_dimension_numbers<[1], [0], [0], [1], [0, 0, 1, 1], [], []>} : vector<16x32xf32>, vector<32x64xf32>, vector<16x64xf32> -> vector<16x64xf32>
    %104 = arith.addf %97, %103 : vector<16x64xf32>
    %c4_107 = arith.constant 4 : index
    %c0_108 = arith.constant 0 : index
    %c0_109 = arith.constant 0 : index
    %105 = vector.load %arg7[%c4_107, %c0_108, %c0_109] : memref<9x16x64xf32, #tpu.memory_space<vmem>>, vector<1x16x64xf32>
    %106 = vector.shape_cast %105 : vector<1x16x64xf32> to vector<16x64xf32>
    %cst_110 = arith.constant dense<0.000000e+00> : vector<16x32xf32>
    %107 = tpu.matmul %106, %77, %cst_110 {dimension_numbers = #tpu.dot_dimension_numbers<[1], [0], [0], [1], [0, 0, 1, 1], [], []>} : vector<16x64xf32>, vector<64x32xf32>, vector<16x32xf32> -> vector<16x32xf32>
    %c4_111 = arith.constant 4 : index
    %c0_112 = arith.constant 0 : index
    %c0_113 = arith.constant 0 : index
    %108 = vector.load %arg8[%c4_111, %c0_112, %c0_113] : memref<9x32x64xf32, #tpu.memory_space<vmem>>, vector<1x32x64xf32>
    %109 = vector.shape_cast %108 : vector<1x32x64xf32> to vector<32x64xf32>
    %cst_114 = arith.constant dense<0.000000e+00> : vector<16x64xf32>
    %110 = tpu.matmul %107, %109, %cst_114 {dimension_numbers = #tpu.dot_dimension_numbers<[1], [0], [0], [1], [0, 0, 1, 1], [], []>} : vector<16x32xf32>, vector<32x64xf32>, vector<16x64xf32> -> vector<16x64xf32>
    %111 = arith.addf %104, %110 : vector<16x64xf32>
    %c5_115 = arith.constant 5 : index
    %c0_116 = arith.constant 0 : index
    %c0_117 = arith.constant 0 : index
    %112 = vector.load %arg7[%c5_115, %c0_116, %c0_117] : memref<9x16x64xf32, #tpu.memory_space<vmem>>, vector<1x16x64xf32>
    %113 = vector.shape_cast %112 : vector<1x16x64xf32> to vector<16x64xf32>
    %cst_118 = arith.constant dense<0.000000e+00> : vector<16x32xf32>
    %114 = tpu.matmul %113, %77, %cst_118 {dimension_numbers = #tpu.dot_dimension_numbers<[1], [0], [0], [1], [0, 0, 1, 1], [], []>} : vector<16x64xf32>, vector<64x32xf32>, vector<16x32xf32> -> vector<16x32xf32>
    %c5_119 = arith.constant 5 : index
    %c0_120 = arith.constant 0 : index
    %c0_121 = arith.constant 0 : index
    %115 = vector.load %arg8[%c5_119, %c0_120, %c0_121] : memref<9x32x64xf32, #tpu.memory_space<vmem>>, vector<1x32x64xf32>
    %116 = vector.shape_cast %115 : vector<1x32x64xf32> to vector<32x64xf32>
    %cst_122 = arith.constant dense<0.000000e+00> : vector<16x64xf32>
    %117 = tpu.matmul %114, %116, %cst_122 {dimension_numbers = #tpu.dot_dimension_numbers<[1], [0], [0], [1], [0, 0, 1, 1], [], []>} : vector<16x32xf32>, vector<32x64xf32>, vector<16x64xf32> -> vector<16x64xf32>
    %118 = arith.addf %111, %117 : vector<16x64xf32>
    %c6_123 = arith.constant 6 : index
    %c0_124 = arith.constant 0 : index
    %c0_125 = arith.constant 0 : index
    %119 = vector.load %arg7[%c6_123, %c0_124, %c0_125] : memref<9x16x64xf32, #tpu.memory_space<vmem>>, vector<1x16x64xf32>
    %120 = vector.shape_cast %119 : vector<1x16x64xf32> to vector<16x64xf32>
    %cst_126 = arith.constant dense<0.000000e+00> : vector<16x32xf32>
    %121 = tpu.matmul %120, %77, %cst_126 {dimension_numbers = #tpu.dot_dimension_numbers<[1], [0], [0], [1], [0, 0, 1, 1], [], []>} : vector<16x64xf32>, vector<64x32xf32>, vector<16x32xf32> -> vector<16x32xf32>
    %c6_127 = arith.constant 6 : index
    %c0_128 = arith.constant 0 : index
    %c0_129 = arith.constant 0 : index
    %122 = vector.load %arg8[%c6_127, %c0_128, %c0_129] : memref<9x32x64xf32, #tpu.memory_space<vmem>>, vector<1x32x64xf32>
    %123 = vector.shape_cast %122 : vector<1x32x64xf32> to vector<32x64xf32>
    %cst_130 = arith.constant dense<0.000000e+00> : vector<16x64xf32>
    %124 = tpu.matmul %121, %123, %cst_130 {dimension_numbers = #tpu.dot_dimension_numbers<[1], [0], [0], [1], [0, 0, 1, 1], [], []>} : vector<16x32xf32>, vector<32x64xf32>, vector<16x64xf32> -> vector<16x64xf32>
    %125 = arith.addf %118, %124 : vector<16x64xf32>
    %c7_131 = arith.constant 7 : index
    %c0_132 = arith.constant 0 : index
    %c0_133 = arith.constant 0 : index
    %126 = vector.load %arg7[%c7_131, %c0_132, %c0_133] : memref<9x16x64xf32, #tpu.memory_space<vmem>>, vector<1x16x64xf32>
    %127 = vector.shape_cast %126 : vector<1x16x64xf32> to vector<16x64xf32>
    %cst_134 = arith.constant dense<0.000000e+00> : vector<16x32xf32>
    %128 = tpu.matmul %127, %77, %cst_134 {dimension_numbers = #tpu.dot_dimension_numbers<[1], [0], [0], [1], [0, 0, 1, 1], [], []>} : vector<16x64xf32>, vector<64x32xf32>, vector<16x32xf32> -> vector<16x32xf32>
    %c7_135 = arith.constant 7 : index
    %c0_136 = arith.constant 0 : index
    %c0_137 = arith.constant 0 : index
    %129 = vector.load %arg8[%c7_135, %c0_136, %c0_137] : memref<9x32x64xf32, #tpu.memory_space<vmem>>, vector<1x32x64xf32>
    %130 = vector.shape_cast %129 : vector<1x32x64xf32> to vector<32x64xf32>
    %cst_138 = arith.constant dense<0.000000e+00> : vector<16x64xf32>
    %131 = tpu.matmul %128, %130, %cst_138 {dimension_numbers = #tpu.dot_dimension_numbers<[1], [0], [0], [1], [0, 0, 1, 1], [], []>} : vector<16x32xf32>, vector<32x64xf32>, vector<16x64xf32> -> vector<16x64xf32>
    %132 = arith.addf %125, %131 : vector<16x64xf32>
    %c8_139 = arith.constant 8 : index
    %c0_140 = arith.constant 0 : index
    %c0_141 = arith.constant 0 : index
    %133 = vector.load %arg7[%c8_139, %c0_140, %c0_141] : memref<9x16x64xf32, #tpu.memory_space<vmem>>, vector<1x16x64xf32>
    %134 = vector.shape_cast %133 : vector<1x16x64xf32> to vector<16x64xf32>
    %cst_142 = arith.constant dense<0.000000e+00> : vector<16x32xf32>
    %135 = tpu.matmul %134, %77, %cst_142 {dimension_numbers = #tpu.dot_dimension_numbers<[1], [0], [0], [1], [0, 0, 1, 1], [], []>} : vector<16x64xf32>, vector<64x32xf32>, vector<16x32xf32> -> vector<16x32xf32>
    %c8_143 = arith.constant 8 : index
    %c0_144 = arith.constant 0 : index
    %c0_145 = arith.constant 0 : index
    %136 = vector.load %arg8[%c8_143, %c0_144, %c0_145] : memref<9x32x64xf32, #tpu.memory_space<vmem>>, vector<1x32x64xf32>
    %137 = vector.shape_cast %136 : vector<1x32x64xf32> to vector<32x64xf32>
    %cst_146 = arith.constant dense<0.000000e+00> : vector<16x64xf32>
    %138 = tpu.matmul %135, %137, %cst_146 {dimension_numbers = #tpu.dot_dimension_numbers<[1], [0], [0], [1], [0, 0, 1, 1], [], []>} : vector<16x32xf32>, vector<32x64xf32>, vector<16x64xf32> -> vector<16x64xf32>
    %139 = arith.addf %132, %138 : vector<16x64xf32>
    %c0_147 = arith.constant 0 : index
    %c0_148 = arith.constant 0 : index
    %140 = vector.load %arg9[%c0_147, %c0_148] : memref<1x64xf32, #tpu.memory_space<vmem>>, vector<1x64xf32>
    %141 = vector.broadcast %140 : vector<1x64xf32> to vector<16x64xf32>
    %142 = arith.addf %139, %141 : vector<16x64xf32>
    %cst_149 = arith.constant 0.000000e+00 : f32
    %143 = vector.broadcast %cst_149 : f32 to vector<16x64xf32>
    %144 = arith.maximumf %142, %143 : vector<16x64xf32>
    %c0_150 = arith.constant 0 : index
    %c0_151 = arith.constant 0 : index
    %145 = vector.load %arg11[%c0_150, %c0_151] : memref<1x6xf32, #tpu.memory_space<vmem>>, vector<1x6xf32>
    %146 = vector.extract_strided_slice %144 {offsets = [0, 0], sizes = [1, 64], strides = [1, 1]} : vector<16x64xf32> to vector<1x64xf32>
    %c0_152 = arith.constant 0 : index
    %c0_153 = arith.constant 0 : index
    %c0_154 = arith.constant 0 : index
    %147 = vector.load %arg10[%c0_152, %c0_153, %c0_154] : memref<16x64x6xf32, #tpu.memory_space<vmem>>, vector<1x64x6xf32>
    %148 = vector.shape_cast %147 : vector<1x64x6xf32> to vector<64x6xf32>
    %cst_155 = arith.constant dense<0.000000e+00> : vector<1x6xf32>
    %149 = tpu.matmul %146, %148, %cst_155 {dimension_numbers = #tpu.dot_dimension_numbers<[1], [0], [0], [1], [0, 0, 1, 1], [], []>} : vector<1x64xf32>, vector<64x6xf32>, vector<1x6xf32> -> vector<1x6xf32>
    %150 = arith.addf %145, %149 : vector<1x6xf32>
    %151 = vector.extract_strided_slice %144 {offsets = [1, 0], sizes = [1, 64], strides = [1, 1]} : vector<16x64xf32> to vector<1x64xf32>
    %c1_156 = arith.constant 1 : index
    %c0_157 = arith.constant 0 : index
    %c0_158 = arith.constant 0 : index
    %152 = vector.load %arg10[%c1_156, %c0_157, %c0_158] : memref<16x64x6xf32, #tpu.memory_space<vmem>>, vector<1x64x6xf32>
    %153 = vector.shape_cast %152 : vector<1x64x6xf32> to vector<64x6xf32>
    %cst_159 = arith.constant dense<0.000000e+00> : vector<1x6xf32>
    %154 = tpu.matmul %151, %153, %cst_159 {dimension_numbers = #tpu.dot_dimension_numbers<[1], [0], [0], [1], [0, 0, 1, 1], [], []>} : vector<1x64xf32>, vector<64x6xf32>, vector<1x6xf32> -> vector<1x6xf32>
    %155 = arith.addf %150, %154 : vector<1x6xf32>
    %156 = vector.extract_strided_slice %144 {offsets = [2, 0], sizes = [1, 64], strides = [1, 1]} : vector<16x64xf32> to vector<1x64xf32>
    %c2_160 = arith.constant 2 : index
    %c0_161 = arith.constant 0 : index
    %c0_162 = arith.constant 0 : index
    %157 = vector.load %arg10[%c2_160, %c0_161, %c0_162] : memref<16x64x6xf32, #tpu.memory_space<vmem>>, vector<1x64x6xf32>
    %158 = vector.shape_cast %157 : vector<1x64x6xf32> to vector<64x6xf32>
    %cst_163 = arith.constant dense<0.000000e+00> : vector<1x6xf32>
    %159 = tpu.matmul %156, %158, %cst_163 {dimension_numbers = #tpu.dot_dimension_numbers<[1], [0], [0], [1], [0, 0, 1, 1], [], []>} : vector<1x64xf32>, vector<64x6xf32>, vector<1x6xf32> -> vector<1x6xf32>
    %160 = arith.addf %155, %159 : vector<1x6xf32>
    %161 = vector.extract_strided_slice %144 {offsets = [3, 0], sizes = [1, 64], strides = [1, 1]} : vector<16x64xf32> to vector<1x64xf32>
    %c3_164 = arith.constant 3 : index
    %c0_165 = arith.constant 0 : index
    %c0_166 = arith.constant 0 : index
    %162 = vector.load %arg10[%c3_164, %c0_165, %c0_166] : memref<16x64x6xf32, #tpu.memory_space<vmem>>, vector<1x64x6xf32>
    %163 = vector.shape_cast %162 : vector<1x64x6xf32> to vector<64x6xf32>
    %cst_167 = arith.constant dense<0.000000e+00> : vector<1x6xf32>
    %164 = tpu.matmul %161, %163, %cst_167 {dimension_numbers = #tpu.dot_dimension_numbers<[1], [0], [0], [1], [0, 0, 1, 1], [], []>} : vector<1x64xf32>, vector<64x6xf32>, vector<1x6xf32> -> vector<1x6xf32>
    %165 = arith.addf %160, %164 : vector<1x6xf32>
    %166 = vector.extract_strided_slice %144 {offsets = [4, 0], sizes = [1, 64], strides = [1, 1]} : vector<16x64xf32> to vector<1x64xf32>
    %c4_168 = arith.constant 4 : index
    %c0_169 = arith.constant 0 : index
    %c0_170 = arith.constant 0 : index
    %167 = vector.load %arg10[%c4_168, %c0_169, %c0_170] : memref<16x64x6xf32, #tpu.memory_space<vmem>>, vector<1x64x6xf32>
    %168 = vector.shape_cast %167 : vector<1x64x6xf32> to vector<64x6xf32>
    %cst_171 = arith.constant dense<0.000000e+00> : vector<1x6xf32>
    %169 = tpu.matmul %166, %168, %cst_171 {dimension_numbers = #tpu.dot_dimension_numbers<[1], [0], [0], [1], [0, 0, 1, 1], [], []>} : vector<1x64xf32>, vector<64x6xf32>, vector<1x6xf32> -> vector<1x6xf32>
    %170 = arith.addf %165, %169 : vector<1x6xf32>
    %171 = vector.extract_strided_slice %144 {offsets = [5, 0], sizes = [1, 64], strides = [1, 1]} : vector<16x64xf32> to vector<1x64xf32>
    %c5_172 = arith.constant 5 : index
    %c0_173 = arith.constant 0 : index
    %c0_174 = arith.constant 0 : index
    %172 = vector.load %arg10[%c5_172, %c0_173, %c0_174] : memref<16x64x6xf32, #tpu.memory_space<vmem>>, vector<1x64x6xf32>
    %173 = vector.shape_cast %172 : vector<1x64x6xf32> to vector<64x6xf32>
    %cst_175 = arith.constant dense<0.000000e+00> : vector<1x6xf32>
    %174 = tpu.matmul %171, %173, %cst_175 {dimension_numbers = #tpu.dot_dimension_numbers<[1], [0], [0], [1], [0, 0, 1, 1], [], []>} : vector<1x64xf32>, vector<64x6xf32>, vector<1x6xf32> -> vector<1x6xf32>
    %175 = arith.addf %170, %174 : vector<1x6xf32>
    %176 = vector.extract_strided_slice %144 {offsets = [6, 0], sizes = [1, 64], strides = [1, 1]} : vector<16x64xf32> to vector<1x64xf32>
    %c6_176 = arith.constant 6 : index
    %c0_177 = arith.constant 0 : index
    %c0_178 = arith.constant 0 : index
    %177 = vector.load %arg10[%c6_176, %c0_177, %c0_178] : memref<16x64x6xf32, #tpu.memory_space<vmem>>, vector<1x64x6xf32>
    %178 = vector.shape_cast %177 : vector<1x64x6xf32> to vector<64x6xf32>
    %cst_179 = arith.constant dense<0.000000e+00> : vector<1x6xf32>
    %179 = tpu.matmul %176, %178, %cst_179 {dimension_numbers = #tpu.dot_dimension_numbers<[1], [0], [0], [1], [0, 0, 1, 1], [], []>} : vector<1x64xf32>, vector<64x6xf32>, vector<1x6xf32> -> vector<1x6xf32>
    %180 = arith.addf %175, %179 : vector<1x6xf32>
    %181 = vector.extract_strided_slice %144 {offsets = [7, 0], sizes = [1, 64], strides = [1, 1]} : vector<16x64xf32> to vector<1x64xf32>
    %c7_180 = arith.constant 7 : index
    %c0_181 = arith.constant 0 : index
    %c0_182 = arith.constant 0 : index
    %182 = vector.load %arg10[%c7_180, %c0_181, %c0_182] : memref<16x64x6xf32, #tpu.memory_space<vmem>>, vector<1x64x6xf32>
    %183 = vector.shape_cast %182 : vector<1x64x6xf32> to vector<64x6xf32>
    %cst_183 = arith.constant dense<0.000000e+00> : vector<1x6xf32>
    %184 = tpu.matmul %181, %183, %cst_183 {dimension_numbers = #tpu.dot_dimension_numbers<[1], [0], [0], [1], [0, 0, 1, 1], [], []>} : vector<1x64xf32>, vector<64x6xf32>, vector<1x6xf32> -> vector<1x6xf32>
    %185 = arith.addf %180, %184 : vector<1x6xf32>
    %186 = vector.extract_strided_slice %144 {offsets = [8, 0], sizes = [1, 64], strides = [1, 1]} : vector<16x64xf32> to vector<1x64xf32>
    %c8_184 = arith.constant 8 : index
    %c0_185 = arith.constant 0 : index
    %c0_186 = arith.constant 0 : index
    %187 = vector.load %arg10[%c8_184, %c0_185, %c0_186] : memref<16x64x6xf32, #tpu.memory_space<vmem>>, vector<1x64x6xf32>
    %188 = vector.shape_cast %187 : vector<1x64x6xf32> to vector<64x6xf32>
    %cst_187 = arith.constant dense<0.000000e+00> : vector<1x6xf32>
    %189 = tpu.matmul %186, %188, %cst_187 {dimension_numbers = #tpu.dot_dimension_numbers<[1], [0], [0], [1], [0, 0, 1, 1], [], []>} : vector<1x64xf32>, vector<64x6xf32>, vector<1x6xf32> -> vector<1x6xf32>
    %190 = arith.addf %185, %189 : vector<1x6xf32>
    %191 = vector.extract_strided_slice %144 {offsets = [9, 0], sizes = [1, 64], strides = [1, 1]} : vector<16x64xf32> to vector<1x64xf32>
    %c9 = arith.constant 9 : index
    %c0_188 = arith.constant 0 : index
    %c0_189 = arith.constant 0 : index
    %192 = vector.load %arg10[%c9, %c0_188, %c0_189] : memref<16x64x6xf32, #tpu.memory_space<vmem>>, vector<1x64x6xf32>
    %193 = vector.shape_cast %192 : vector<1x64x6xf32> to vector<64x6xf32>
    %cst_190 = arith.constant dense<0.000000e+00> : vector<1x6xf32>
    %194 = tpu.matmul %191, %193, %cst_190 {dimension_numbers = #tpu.dot_dimension_numbers<[1], [0], [0], [1], [0, 0, 1, 1], [], []>} : vector<1x64xf32>, vector<64x6xf32>, vector<1x6xf32> -> vector<1x6xf32>
    %195 = arith.addf %190, %194 : vector<1x6xf32>
    %196 = vector.extract_strided_slice %144 {offsets = [10, 0], sizes = [1, 64], strides = [1, 1]} : vector<16x64xf32> to vector<1x64xf32>
    %c10 = arith.constant 10 : index
    %c0_191 = arith.constant 0 : index
    %c0_192 = arith.constant 0 : index
    %197 = vector.load %arg10[%c10, %c0_191, %c0_192] : memref<16x64x6xf32, #tpu.memory_space<vmem>>, vector<1x64x6xf32>
    %198 = vector.shape_cast %197 : vector<1x64x6xf32> to vector<64x6xf32>
    %cst_193 = arith.constant dense<0.000000e+00> : vector<1x6xf32>
    %199 = tpu.matmul %196, %198, %cst_193 {dimension_numbers = #tpu.dot_dimension_numbers<[1], [0], [0], [1], [0, 0, 1, 1], [], []>} : vector<1x64xf32>, vector<64x6xf32>, vector<1x6xf32> -> vector<1x6xf32>
    %200 = arith.addf %195, %199 : vector<1x6xf32>
    %201 = vector.extract_strided_slice %144 {offsets = [11, 0], sizes = [1, 64], strides = [1, 1]} : vector<16x64xf32> to vector<1x64xf32>
    %c11 = arith.constant 11 : index
    %c0_194 = arith.constant 0 : index
    %c0_195 = arith.constant 0 : index
    %202 = vector.load %arg10[%c11, %c0_194, %c0_195] : memref<16x64x6xf32, #tpu.memory_space<vmem>>, vector<1x64x6xf32>
    %203 = vector.shape_cast %202 : vector<1x64x6xf32> to vector<64x6xf32>
    %cst_196 = arith.constant dense<0.000000e+00> : vector<1x6xf32>
    %204 = tpu.matmul %201, %203, %cst_196 {dimension_numbers = #tpu.dot_dimension_numbers<[1], [0], [0], [1], [0, 0, 1, 1], [], []>} : vector<1x64xf32>, vector<64x6xf32>, vector<1x6xf32> -> vector<1x6xf32>
    %205 = arith.addf %200, %204 : vector<1x6xf32>
    %206 = vector.extract_strided_slice %144 {offsets = [12, 0], sizes = [1, 64], strides = [1, 1]} : vector<16x64xf32> to vector<1x64xf32>
    %c12 = arith.constant 12 : index
    %c0_197 = arith.constant 0 : index
    %c0_198 = arith.constant 0 : index
    %207 = vector.load %arg10[%c12, %c0_197, %c0_198] : memref<16x64x6xf32, #tpu.memory_space<vmem>>, vector<1x64x6xf32>
    %208 = vector.shape_cast %207 : vector<1x64x6xf32> to vector<64x6xf32>
    %cst_199 = arith.constant dense<0.000000e+00> : vector<1x6xf32>
    %209 = tpu.matmul %206, %208, %cst_199 {dimension_numbers = #tpu.dot_dimension_numbers<[1], [0], [0], [1], [0, 0, 1, 1], [], []>} : vector<1x64xf32>, vector<64x6xf32>, vector<1x6xf32> -> vector<1x6xf32>
    %210 = arith.addf %205, %209 : vector<1x6xf32>
    %211 = vector.extract_strided_slice %144 {offsets = [13, 0], sizes = [1, 64], strides = [1, 1]} : vector<16x64xf32> to vector<1x64xf32>
    %c13 = arith.constant 13 : index
    %c0_200 = arith.constant 0 : index
    %c0_201 = arith.constant 0 : index
    %212 = vector.load %arg10[%c13, %c0_200, %c0_201] : memref<16x64x6xf32, #tpu.memory_space<vmem>>, vector<1x64x6xf32>
    %213 = vector.shape_cast %212 : vector<1x64x6xf32> to vector<64x6xf32>
    %cst_202 = arith.constant dense<0.000000e+00> : vector<1x6xf32>
    %214 = tpu.matmul %211, %213, %cst_202 {dimension_numbers = #tpu.dot_dimension_numbers<[1], [0], [0], [1], [0, 0, 1, 1], [], []>} : vector<1x64xf32>, vector<64x6xf32>, vector<1x6xf32> -> vector<1x6xf32>
    %215 = arith.addf %210, %214 : vector<1x6xf32>
    %216 = vector.extract_strided_slice %144 {offsets = [14, 0], sizes = [1, 64], strides = [1, 1]} : vector<16x64xf32> to vector<1x64xf32>
    %c14 = arith.constant 14 : index
    %c0_203 = arith.constant 0 : index
    %c0_204 = arith.constant 0 : index
    %217 = vector.load %arg10[%c14, %c0_203, %c0_204] : memref<16x64x6xf32, #tpu.memory_space<vmem>>, vector<1x64x6xf32>
    %218 = vector.shape_cast %217 : vector<1x64x6xf32> to vector<64x6xf32>
    %cst_205 = arith.constant dense<0.000000e+00> : vector<1x6xf32>
    %219 = tpu.matmul %216, %218, %cst_205 {dimension_numbers = #tpu.dot_dimension_numbers<[1], [0], [0], [1], [0, 0, 1, 1], [], []>} : vector<1x64xf32>, vector<64x6xf32>, vector<1x6xf32> -> vector<1x6xf32>
    %220 = arith.addf %215, %219 : vector<1x6xf32>
    %221 = vector.extract_strided_slice %144 {offsets = [15, 0], sizes = [1, 64], strides = [1, 1]} : vector<16x64xf32> to vector<1x64xf32>
    %c15 = arith.constant 15 : index
    %c0_206 = arith.constant 0 : index
    %c0_207 = arith.constant 0 : index
    %222 = vector.load %arg10[%c15, %c0_206, %c0_207] : memref<16x64x6xf32, #tpu.memory_space<vmem>>, vector<1x64x6xf32>
    %223 = vector.shape_cast %222 : vector<1x64x6xf32> to vector<64x6xf32>
    %cst_208 = arith.constant dense<0.000000e+00> : vector<1x6xf32>
    %224 = tpu.matmul %221, %223, %cst_208 {dimension_numbers = #tpu.dot_dimension_numbers<[1], [0], [0], [1], [0, 0, 1, 1], [], []>} : vector<1x64xf32>, vector<64x6xf32>, vector<1x6xf32> -> vector<1x6xf32>
    %225 = arith.addf %220, %224 : vector<1x6xf32>
    %c0_209 = arith.constant 0 : index
    %c0_210 = arith.constant 0 : index
    %c0_211 = arith.constant 0 : index
    %226 = vector.load %arg12[%c0_209, %c0_210, %c0_211] : memref<1x1x6xf32, #tpu.memory_space<vmem>>, vector<1x1x6xf32>
    %227 = vector.shape_cast %226 : vector<1x1x6xf32> to vector<1x6xf32>
    %228 = vector.shape_cast %225 : vector<1x6xf32> to vector<1x1x6xf32>
    tpu.vector_store %arg12[%c0_209, %c0_210, %c0_211], %228 {strides = array<i32>} : memref<1x1x6xf32, #tpu.memory_space<vmem>>, vector<1x1x6xf32>,
    return
  }
  func.func @transform_0(%arg0: i32) -> (i32, i32, i32) {
    %c0_i32 = arith.constant 0 : i32
    %c0_i32_0 = arith.constant 0 : i32
    %c0_i32_1 = arith.constant 0 : i32
    return %arg0, %c0_i32, %c0_i32_0 : i32, i32, i32
  }
  func.func @transform_1(%arg0: i32) -> (i32, i32) {
    %c0_i32 = arith.constant 0 : i32
    %c0_i32_0 = arith.constant 0 : i32
    %c0_i32_1 = arith.constant 0 : i32
    return %c0_i32, %c0_i32_0 : i32, i32
  }
  func.func @transform_2(%arg0: i32) -> (i32, i32) {
    %c0_i32 = arith.constant 0 : i32
    %c0_i32_0 = arith.constant 0 : i32
    %c0_i32_1 = arith.constant 0 : i32
    return %c0_i32, %c0_i32_0 : i32, i32
  }
  func.func @transform_3(%arg0: i32) -> (i32, i32, i32) {
    %c0_i32 = arith.constant 0 : i32
    %c0_i32_0 = arith.constant 0 : i32
    %c0_i32_1 = arith.constant 0 : i32
    %c0_i32_2 = arith.constant 0 : i32
    return %c0_i32, %c0_i32_0, %c0_i32_1 : i32, i32, i32
  }
  func.func @transform_4(%arg0: i32) -> (i32, i32, i32) {
    %c0_i32 = arith.constant 0 : i32
    %c0_i32_0 = arith.constant 0 : i32
    %c0_i32_1 = arith.constant 0 : i32
    %c0_i32_2 = arith.constant 0 : i32
    return %c0_i32, %c0_i32_0, %c0_i32_1 : i32, i32, i32
  }
  func.func @transform_5(%arg0: i32) -> (i32, i32) {
    %c0_i32 = arith.constant 0 : i32
    %c0_i32_0 = arith.constant 0 : i32
    %c0_i32_1 = arith.constant 0 : i32
    return %c0_i32, %c0_i32_0 : i32, i32
  }
  func.func @transform_6(%arg0: i32) -> (i32, i32, i32) {
    %c0_i32 = arith.constant 0 : i32
    %c0_i32_0 = arith.constant 0 : i32
    %c0_i32_1 = arith.constant 0 : i32
    %c0_i32_2 = arith.constant 0 : i32
    return %c0_i32, %c0_i32_0, %c0_i32_1 : i32, i32, i32
  }
  func.func @transform_7(%arg0: i32) -> (i32, i32, i32) {
    %c0_i32 = arith.constant 0 : i32
    %c0_i32_0 = arith.constant 0 : i32
    %c0_i32_1 = arith.constant 0 : i32
    %c0_i32_2 = arith.constant 0 : i32
    return %c0_i32, %c0_i32_0, %c0_i32_1 : i32, i32, i32
  }
  func.func @transform_8(%arg0: i32) -> (i32, i32) {
    %c0_i32 = arith.constant 0 : i32
    %c0_i32_0 = arith.constant 0 : i32
    %c0_i32_1 = arith.constant 0 : i32
    return %c0_i32, %c0_i32_0 : i32, i32
  }
  func.func @transform_9(%arg0: i32) -> (i32, i32, i32) {
    %c0_i32 = arith.constant 0 : i32
    %c0_i32_0 = arith.constant 0 : i32
    %c0_i32_1 = arith.constant 0 : i32
    %c0_i32_2 = arith.constant 0 : i32
    return %c0_i32, %c0_i32_0, %c0_i32_1 : i32, i32, i32
  }
  func.func @transform_10(%arg0: i32) -> (i32, i32) {
    %c0_i32 = arith.constant 0 : i32
    %c0_i32_0 = arith.constant 0 : i32
    %c0_i32_1 = arith.constant 0 : i32
    return %c0_i32, %c0_i32_0 : i32, i32
  }
  func.func @transform_11(%arg0: i32) -> (i32, i32, i32) {
    %c0_i32 = arith.constant 0 : i32
    %c0_i32_0 = arith.constant 0 : i32
    %c0_i32_1 = arith.constant 0 : i32
    return %arg0, %c0_i32, %c0_i32_0 : i32, i32, i32
  }
}

</mosaic_0001>

<bundles_post_ra>
// kernel: stignet_forward.1
= control target key start
LH: loop header
LB: loop body
LE: loop exit
PB: predicated region body
PF: predicated region fallthrough
CT: control target
= control target key end

     0   :  { %s8162_s17 = smov 0   ;;  %s10704_s0 = inlined_call_operand.vmem [shape: f32[2,225,25], index: 0, kind: input, shape index: {}]   ;;  %s10705_s1 = inlined_call_operand.vmem [shape: f32[25,16], index: 1, kind: input, shape index: {}]   ;;  %s10706_s2 = inlined_call_operand.vmem [shape: f32[1,16], index: 2, kind: input, shape index: {}]   ;;  %s10707_s3 = inlined_call_operand.vmem [shape: f32[9,64,225], index: 3, kind: input, shape index: {}]   ;;  %s10708_s4 = inlined_call_operand.vmem [shape: f32[9,16,32], index: 4, kind: input, shape index: {}]   ;;  %s10709_s5 = inlined_call_operand.vmem [shape: f32[1,32], index: 5, kind: input, shape index: {}]   ;;  %s10710_s6 = inlined_call_operand.vmem [shape: f32[9,16,64], index: 6, kind: input, shape index: {}]   ;;  %s10711_s7 = inlined_call_operand.vmem [shape: f32[9,32,64], index: 7, kind: input, shape index: {}]   ;;  %s10712_s8 = inlined_call_operand.vmem [shape: f32[1,64], index: 8, kind: input, shape index: {}]   ;;  %s10713_s9 = inlined_call_operand.vmem [shape: f32[16,64,6], index: 9, kind: input, shape index: {}]   ;;  %s10714_s10 = inlined_call_operand.vmem [shape: f32[1,6], index: 10, kind: input, shape index: {}]   ;;  %s10715_s11 = inlined_call_operand.vmem [shape: f32[2,1,6], index: 11, kind: output, shape index: {}]  }
   0x1 LB: > { %s6299_s18 = sadd.s32 4294967295, %s8098_s17   ;;  %p6303_p0 = scmp.ge.s32.totalorder %s8098_s17, 1  ;;  %s8098_s17 = sphi %s8162_s17, %s21_s17  }
   0x2   : > { %p337_p1 = scmp.lt.s32.totalorder %s8098_s17, 3 }
   0x4   : > { %p338_p2 = pnand %p6303_p0, %p337_p1 }
   0x5   : > { %p375_p3 = scmp.lt.s32.totalorder (!%p338_p2), %s6299_s18, 1 }
   0x6   : > { %341 = sbr.rel (%p338_p2) target bundleno = 4256 (0x10a0), region = 64 }
   0xb   : > { %v444_v0 = vld [vmem:[%s10705_s1 + $0x18] sm:$0x1]  ;;  %vm540_vm0 = vcmask 1040384   ;;  %v8100_v1 = vmov 0.0   ;;  %v443_v2 = vld [vmem:[%s10705_s1 + $0x10] sm:$0xff]  ;;  %vm8101_vm1 = vmmov 0  }
   0xc   : > { %7268 = vmatprep.subr.mxu0 %v8100_v1  ;;  %827 = vmatprep.subr.mxu1 %v8100_v1  ;;  %v442_v3 = vld [vmem:[%s10705_s1 + $0x8] sm:$0xff]  ;;  %s10717_s18 = smov (!%p375_p3, %s6299_s18), 1  ;;  %v441_v4 = vld [vmem:[%s10705_s1] sm:$0xff]  ;;  %vm452_vm2 = vcmask 203776   ;;  %vm799_vm3 = vcmask 793600   ;;  %vm1083_vm4 = vcmask 130048  }
   0xd   : > { %7269 = vmatpush3.msk.msra.mxu0 %vm540_vm0, %v444_v0  ;;  %7276 = vmatprep.mubr.msk.f32.mxu0 %vm8101_vm1, %v8100_v1  ;;  %s8081_s27 = smul.u32 232, %s10717_s18  ;;  %vm3369_vm5 = vcmask 523264   ;;  %vm3544_vm6 = vcmask 261120   ;;  %s382_s13 = scalar_lea.vmem %s10715_s11, %s10717_s18  ;;  %vm6250_vm7 = vcmask 40960  }
   0xe   : > { %7270 = vmatprep.subr.mxu0 %v8100_v1 }
   0xf   : > { %7271 = vmatpush3.msra.mxu0 %v443_v2  ;;  %s8196_s30 = scalar_lea.vmem %s10704_s0, %s8081_s27 }
  0x10   : > { %7272 = vmatprep.subr.mxu0 %v8100_v1  ;;  %v383_v5 = vld [vmem:[%s8196_s30] sm:$0xff]  ;;  %v384_v6 = vld [vmem:[%s8196_s30 + $0x8] sm:$0xff]  ;;  %v385_v9 = vld [vmem:[%s8196_s30 + $0x10] sm:$0xff] }
  0x11   : > { %7273 = vmatpush3.msra.mxu0 %v442_v3  ;;  %v412_v7 = vmul.f32 0.003921569, %v383_v5  ;;  %v413_v8 = vmul.f32 0.003921569, %v384_v6  ;;  %v414_v10 = vmul.f32 0.003921569, %v385_v9 }
  0x12   : > { %7274 = vmatprep.subr.mxu0 %v8100_v1  ;;  %v386_v11 = vld [vmem:[%s8196_s30 + $0x18] sm:$0xff]  ;;  %v387_v13 = vld [vmem:[%s8196_s30 + $0x20] sm:$0xff]  ;;  %v388_v15 = vld [vmem:[%s8196_s30 + $0x28] sm:$0xff] }
  0x13   : > { %7275 = vmatpush3.msra.mxu0 %v441_v4  ;;  %v415_v12 = vmul.f32 0.003921569, %v386_v11  ;;  %v416_v14 = vmul.f32 0.003921569, %v387_v13  ;;  %v417_v16 = vmul.f32 0.003921569, %v388_v15 }
  0x14   : > { %7277 = vmatmul.mubr.msk.f32.vlgmr.msra.gmra.mxu0 %vm452_vm2, %v412_v7  ;;  %v389_v17 = vld [vmem:[%s8196_s30 + $0x30] sm:$0xff]  ;;  %v390_v19 = vld [vmem:[%s8196_s30 + $0x38] sm:$0xff]  ;;  %v391_v21 = vld [vmem:[%s8196_s30 + $0x40] sm:$0xff] }
  0x15   : > { %7279 = vmatprep.mubr.msk.f32.mxu0 %vm8101_vm1, %v8100_v1  ;;  %v418_v18 = vmul.f32 0.003921569, %v389_v17  ;;  %v419_v20 = vmul.f32 0.003921569, %v390_v19  ;;  %v420_v22 = vmul.f32 0.003921569, %v391_v21 }
  0x16   : > { %v392_v23 = vld [vmem:[%s8196_s30 + $0x48] sm:$0xff]  ;;  %v393_v25 = vld [vmem:[%s8196_s30 + $0x50] sm:$0xff]  ;;  %v394_v27 = vld [vmem:[%s8196_s30 + $0x58] sm:$0xff] }
  0x17   : > { %v421_v24 = vmul.f32 0.003921569, %v392_v23  ;;  %v422_v26 = vmul.f32 0.003921569, %v393_v25  ;;  %v423_v28 = vmul.f32 0.003921569, %v394_v27 }
  0x18   : > { %7280 = vmatmul.mubr.msk.f32.gmra.mxu0 %vm452_vm2, %v413_v8  ;;  %v395_v29 = vld [vmem:[%s8196_s30 + $0x60] sm:$0xff]  ;;  %v396_v31 = vld [vmem:[%s8196_s30 + $0x68] sm:$0xff]  ;;  %v397_v33 = vld [vmem:[%s8196_s30 + $0x70] sm:$0xff] }
  0x19   : > { %7282 = vmatprep.mubr.msk.f32.mxu0 %vm8101_vm1, %v8100_v1  ;;  %v424_v30 = vmul.f32 0.003921569, %v395_v29  ;;  %v425_v32 = vmul.f32 0.003921569, %v396_v31  ;;  %v426_v34 = vmul.f32 0.003921569, %v397_v33 }
  0x1a   : > { %v398_v35 = vld [vmem:[%s8196_s30 + $0x78] sm:$0xff]  ;;  %v399_v37 = vld [vmem:[%s8196_s30 + $0x80] sm:$0xff]  ;;  %v400_v39 = vld [vmem:[%s8196_s30 + $0x88] sm:$0xff] }
  0x1b   : > { %v427_v36 = vmul.f32 0.003921569, %v398_v35  ;;  %v428_v38 = vmul.f32 0.003921569, %v399_v37  ;;  %v429_v40 = vmul.f32 0.003921569, %v400_v39 }
  0x1c   : > { %7283 = vmatmul.mubr.msk.f32.gmra.mxu0 %vm452_vm2, %v414_v10  ;;  %v401_v41 = vld [vmem:[%s8196_s30 + $0x90] sm:$0xff]  ;;  %v402_v43 = vld [vmem:[%s8196_s30 + $0x98] sm:$0xff]  ;;  %v403_v45 = vld [vmem:[%s8196_s30 + $0xa0] sm:$0xff] }
  0x1d   : > { %7285 = vmatprep.mubr.msk.f32.mxu0 %vm8101_vm1, %v8100_v1  ;;  %v430_v42 = vmul.f32 0.003921569, %v401_v41  ;;  %v431_v44 = vmul.f32 0.003921569, %v402_v43  ;;  %v432_v46 = vmul.f32 0.003921569, %v403_v45 }
  0x1e   : > { %v404_v47 = vld [vmem:[%s8196_s30 + $0xa8] sm:$0xff]  ;;  %v405_v49 = vld [vmem:[%s8196_s30 + $0xb0] sm:$0xff]  ;;  %v406_v51 = vld [vmem:[%s8196_s30 + $0xb8] sm:$0xff] }
  0x1f   : > { %v433_v48 = vmul.f32 0.003921569, %v404_v47  ;;  %v434_v50 = vmul.f32 0.003921569, %v405_v49  ;;  %v435_v52 = vmul.f32 0.003921569, %v406_v51 }
  0x20   : > { %7286 = vmatmul.mubr.msk.f32.gmra.mxu0 %vm452_vm2, %v415_v12  ;;  %v407_v53 = vld [vmem:[%s8196_s30 + $0xc0] sm:$0xff]  ;;  %v408_v55 = vld [vmem:[%s8196_s30 + $0xc8] sm:$0xff]  ;;  %v409_v57 = vld [vmem:[%s8196_s30 + $0xd0] sm:$0xff] }
  0x21   : > { %7288 = vmatprep.mubr.msk.f32.mxu0 %vm8101_vm1, %v8100_v1  ;;  %v436_v54 = vmul.f32 0.003921569, %v407_v53  ;;  %v437_v56 = vmul.f32 0.003921569, %v408_v55  ;;  %v438_v58 = vmul.f32 0.003921569, %v409_v57 }
  0x22   : > { %v410_v59 = vld [vmem:[%s8196_s30 + $0xd8] sm:$0xff]  ;;  %v411_v61 = vld [vmem:[%s8196_s30 + $0xe0] sm:$0x1]  ;;  %v784_v7 = vld [vmem:[%s10707_s3 + $0x8] sm:$0xff] }
  0x23   : > { %v439_v60 = vmul.f32 0.003921569, %v410_v59  ;;  %v440_v62 = vmul.f32 0.003921569, %v411_v61  ;;  %6337 = vmatprep.mubr.msk.f32.mxu1 %vm799_vm3, %v784_v7  ;;  %v8331_v31 = vld [vmem:[%s10706_s2] ss:$0 sm:$0xff] }
  0x24   : > { %7289 = vmatmul.mubr.msk.f32.gmra.mxu0 %vm452_vm2, %v416_v14 }
  0x25   : > { %7291 = vmatprep.mubr.msk.f32.mxu0 %vm8101_vm1, %v8100_v1 }
  0x28   : > { %7292 = vmatmul.mubr.msk.f32.gmra.mxu0 %vm452_vm2, %v417_v16 }
  0x29   : > { %7294 = vmatprep.mubr.msk.f32.mxu0 %vm8101_vm1, %v8100_v1 }
  0x2c   : > { %7295 = vmatmul.mubr.msk.f32.gmra.mxu0 %vm452_vm2, %v418_v18 }
  0x2d   : > { %7297 = vmatprep.mubr.msk.f32.mxu0 %vm8101_vm1, %v8100_v1 }
  0x30   : > { %7298 = vmatmul.mubr.msk.f32.gmra.mxu0 %vm452_vm2, %v419_v20 }
  0x31   : > { %7300 = vmatprep.mubr.msk.f32.mxu0 %vm8101_vm1, %v8100_v1 }
  0x34   : > { %7301 = vmatmul.mubr.msk.f32.gmra.mxu0 %vm452_vm2, %v420_v22 }
  0x35   : > { %7303 = vmatprep.mubr.msk.f32.mxu0 %vm8101_vm1, %v8100_v1 }
  0x38   : > { %7304 = vmatmul.mubr.msk.f32.gmra.mxu0 %vm452_vm2, %v421_v24 }
  0x39   : > { %7306 = vmatprep.mubr.msk.f32.mxu0 %vm8101_vm1, %v8100_v1 }
  0x3c   : > { %7307 = vmatmul.mubr.msk.f32.gmra.mxu0 %vm452_vm2, %v422_v26 }
  0x3d   : > { %7309 = vmatprep.mubr.msk.f32.mxu0 %vm8101_vm1, %v8100_v1 }
  0x40   : > { %7310 = vmatmul.mubr.msk.f32.gmra.mxu0 %vm452_vm2, %v423_v28 }
  0x41   : > { %7312 = vmatprep.mubr.msk.f32.mxu0 %vm8101_vm1, %v8100_v1 }
  0x44   : > { %7313 = vmatmul.mubr.msk.f32.gmra.mxu0 %vm452_vm2, %v424_v30 }
  0x45   : > { %7315 = vmatprep.mubr.msk.f32.mxu0 %vm8101_vm1, %v8100_v1 }
  0x48   : > { %7316 = vmatmul.mubr.msk.f32.gmra.mxu0 %vm452_vm2, %v425_v32 }
  0x49   : > { %7318 = vmatprep.mubr.msk.f32.mxu0 %vm8101_vm1, %v8100_v1 }
  0x4c   : > { %7319 = vmatmul.mubr.msk.f32.gmra.mxu0 %vm452_vm2, %v426_v34 }
  0x4d   : > { %7321 = vmatprep.mubr.msk.f32.mxu0 %vm8101_vm1, %v8100_v1 }
  0x50   : > { %7322 = vmatmul.mubr.msk.f32.gmra.mxu0 %vm452_vm2, %v427_v36 }
  0x51   : > { %7324 = vmatprep.mubr.msk.f32.mxu0 %vm8101_vm1, %v8100_v1 }
  0x54   : > { %7325 = vmatmul.mubr.msk.f32.gmra.mxu0 %vm452_vm2, %v428_v38 }
  0x55   : > { %7327 = vmatprep.mubr.msk.f32.mxu0 %vm8101_vm1, %v8100_v1 }
  0x58   : > { %7328 = vmatmul.mubr.msk.f32.gmra.mxu0 %vm452_vm2, %v429_v40 }
  0x59   : > { %7330 = vmatprep.mubr.msk.f32.mxu0 %vm8101_vm1, %v8100_v1 }
  0x5c   : > { %7331 = vmatmul.mubr.msk.f32.gmra.mxu0 %vm452_vm2, %v430_v42 }
  0x5d   : > { %7333 = vmatprep.mubr.msk.f32.mxu0 %vm8101_vm1, %v8100_v1 }
  0x60   : > { %7334 = vmatmul.mubr.msk.f32.gmra.mxu0 %vm452_vm2, %v431_v44 }
  0x61   : > { %7336 = vmatprep.mubr.msk.f32.mxu0 %vm8101_vm1, %v8100_v1 }
  0x64   : > { %7337 = vmatmul.mubr.msk.f32.gmra.mxu0 %vm452_vm2, %v432_v46 }
  0x65   : > { %7339 = vmatprep.mubr.msk.f32.mxu0 %vm8101_vm1, %v8100_v1 }
  0x68   : > { %7340 = vmatmul.mubr.msk.f32.gmra.mxu0 %vm452_vm2, %v433_v48 }
  0x69   : > { %7342 = vmatprep.mubr.msk.f32.mxu0 %vm8101_vm1, %v8100_v1 }
  0x6c   : > { %7343 = vmatmul.mubr.msk.f32.gmra.mxu0 %vm452_vm2, %v434_v50 }
  0x6d   : > { %7345 = vmatprep.mubr.msk.f32.mxu0 %vm8101_vm1, %v8100_v1 }
  0x70   : > { %7346 = vmatmul.mubr.msk.f32.gmra.mxu0 %vm452_vm2, %v435_v52 }
  0x71   : > { %7348 = vmatprep.mubr.msk.f32.mxu0 %vm8101_vm1, %v8100_v1 }
  0x74   : > { %7349 = vmatmul.mubr.msk.f32.gmra.mxu0 %vm452_vm2, %v436_v54 }
  0x75   : > { %7351 = vmatprep.mubr.msk.f32.mxu0 %vm8101_vm1, %v8100_v1 }
  0x78   : > { %7352 = vmatmul.mubr.msk.f32.gmra.mxu0 %vm452_vm2, %v437_v56 }
  0x79   : > { %7354 = vmatprep.mubr.msk.f32.mxu0 %vm8101_vm1, %v8100_v1 }
  0x7c   : > { %7355 = vmatmul.mubr.msk.f32.gmra.mxu0 %vm452_vm2, %v438_v58 }
  0x7d   : > { %7357 = vmatprep.mubr.msk.f32.mxu0 %vm8101_vm1, %v8100_v1 }
  0x80   : > { %7358 = vmatmul.mubr.msk.f32.gmra.mxu0 %vm452_vm2, %v439_v60 }
  0x81   : > { %7360 = vmatprep.mubr.msk.f32.mxu0 %vm8101_vm1, %v8100_v1 }
  0x84   : > { %7361 = vmatmul.mubr.msk.f32.gmra.mxu0 %vm452_vm2, %v440_v62 }
  0xd4   : > { %v8312_v63 = vpop.f32.mrf.mxu0 }
  0xd6   : > { %v7278_v0 = vpop.f32.mrf.mxu0 }
  0xd8   : > { %v8314_v2 = vpop.f32.mrf.mxu0 }
  0xda   : > { %v7281_v3 = vpop.f32.mrf.mxu0 }
  0xdc   : > { %v8316_v4 = vpop.f32.mrf.mxu0 }
  0xde   : > { %v7284_v5 = vpop.f32.mrf.mxu0 }
  0xe0   : > { %v8318_v6 = vpop.f32.mrf.mxu0 }
  0xe1   : > { %v626_v7 = vadd.f32 %v8331_v31, %v8318_v6  ;;  %v616_v6 = vadd.f32 %v8331_v31, %v8314_v2 }
  0xe2   : > { %v7287_v8 = vpop.f32.mrf.mxu0 }
  0xe4   : > { %v8324_v9 = vpop.f32.mrf.mxu0 }
  0xe5   : > { %v631_v0 = vadd.f32 %v8331_v31, %v8324_v9  ;;  %v621_v9 = vadd.f32 %v8331_v31, %v8316_v4  ;;  %v611_v4 = vadd.f32 %v8331_v31, %v8312_v63 }
  0xe6   : > { %v7290_v10 = vpop.f32.mrf.mxu0 }
  0xe8   : > { %v8326_v11 = vpop.f32.mrf.mxu0 }
  0xe9   : > { %v636_v60 = vadd.f32 %v8331_v31, %v8326_v11  ;;  %v8403_v11 = vmax.f32 %v631_v0, 0.0 }
  0xea   : > { %v7293_v12 = vpop.f32.mrf.mxu0 }
  0xeb   : > { %v8397_v8 = vmax.f32 %v636_v60, 0.0 }
  0xec   : > { %v640_v13 = vpop.f32.mrf.mxu0 }
  0xed   : > { %v641_v57 = vadd.f32 %v8331_v31, %v640_v13  ;;  %v8409_v13 = vmax.f32 %v626_v7, 0.0 }
  0xee   : > { %v7296_v14 = vpop.f32.mrf.mxu0 }
  0xef   : > { %v8391_v3 = vmax.f32 %v641_v57, 0.0 }
  0xf0   : > { %v645_v15 = vpop.f32.mrf.mxu0 }
  0xf1   : > { %v646_v54 = vadd.f32 %v8331_v31, %v645_v15  ;;  %v8415_v15 = vmax.f32 %v621_v9, 0.0  ;;  %v788_v9 = vld [vmem:[%s10707_s3 + $0x28] sm:$0xff] }
  0xf2   : > { %v7299_v16 = vpop.f32.mrf.mxu0 }
  0xf3   : > { %v8383_v61 = vmax.f32 %v646_v54, 0.0 }
  0xf4   : > { %v650_v17 = vpop.f32.mrf.mxu0 }
  0xf5   : > { %v651_v51 = vadd.f32 %v8331_v31, %v650_v17  ;;  %v8419_v17 = vmax.f32 %v616_v6, 0.0  ;;  %v790_v6 = vld [vmem:[%s10707_s3 + $0x38] sm:$0xff] }
  0xf6   : > { %v7302_v18 = vpop.f32.mrf.mxu0 }
  0xf7   : > { %v8377_v58 = vmax.f32 %v651_v51, 0.0  ;;  %v8423_v18 = vmax.f32 %v611_v4, 0.0  ;;  %v792_v4 = vld [vmem:[%s10707_s3 + $0x48] sm:$0xff] }
  0xf8   : > { %v655_v19 = vpop.f32.mrf.mxu0 }
  0xf9   : > { %v656_v48 = vadd.f32 %v8331_v31, %v655_v19 }
  0xfa   : > { %v7305_v20 = vpop.f32.mrf.mxu0 }
  0xfb   : > { %v8370_v55 = vmax.f32 %v656_v48, 0.0 }
  0xfc   : > { %v660_v21 = vpop.f32.mrf.mxu0 }
  0xfd   : > { %v661_v45 = vadd.f32 %v8331_v31, %v660_v21 }
  0xfe   : > { %v7308_v22 = vpop.f32.mrf.mxu0 }
  0xff   : > { %v8365_v52 = vmax.f32 %v661_v45, 0.0 }
 0x100   : > { %v665_v23 = vpop.f32.mrf.mxu0 }
 0x101   : > { %v666_v42 = vadd.f32 %v8331_v31, %v665_v23 }
 0x102   : > { %v7311_v24 = vpop.f32.mrf.mxu0 }
 0x103   : > { %v8358_v49 = vmax.f32 %v666_v42, 0.0 }
 0x104   : > { %v670_v25 = vpop.f32.mrf.mxu0 }
 0x105   : > { %v671_v39 = vadd.f32 %v8331_v31, %v670_v25 }
 0x106   : > { %v7314_v26 = vpop.f32.mrf.mxu0 }
 0x107   : > { %v8353_v46 = vmax.f32 %v671_v39, 0.0 }
 0x108   : > { %v675_v27 = vpop.f32.mrf.mxu0 }
 0x109   : > { %v676_v36 = vadd.f32 %v8331_v31, %v675_v27 }
 0x10a   : > { %v7317_v28 = vpop.f32.mrf.mxu0 }
 0x10b   : > { %v8346_v43 = vmax.f32 %v676_v36, 0.0 }
 0x10c   : > { %v680_v29 = vpop.f32.mrf.mxu0 }
 0x10d   : > { %v681_v33 = vadd.f32 %v8331_v31, %v680_v29 }
 0x10e   : > { %v7320_v30 = vpop.f32.mrf.mxu0 }
 0x10f   : > { %v8341_v40 = vmax.f32 %v681_v33, 0.0 }
 0x110   : > { %v685_v32 = vpop.f32.mrf.mxu0 }
 0x111   : > { %v686_v34 = vadd.f32 %v8331_v31, %v685_v32 }
 0x112   : > { %v7323_v35 = vpop.f32.mrf.mxu0 }
 0x113   : > { %v8336_v37 = vmax.f32 %v686_v34, 0.0 }
 0x114   : > { %v8338_v38 = vpop.f32.mrf.mxu0 }
 0x115   : > { %828 = vmatpush1.msra.mxu1 %v8336_v37 }
 0x116   : > { %v7326_v41 = vpop.f32.mrf.mxu0  ;;  %829 = vmatprep.subr.mxu1 %v8100_v1 }
 0x117   : > { %830 = vmatpush1.msra.mxu1 %v8341_v40 }
 0x118   : > { %v8349_v44 = vpop.f32.mrf.mxu0  ;;  %831 = vmatprep.subr.mxu1 %v8100_v1 }
 0x119   : > { %832 = vmatpush1.msra.mxu1 %v8346_v43 }
 0x11a   : > { %v7329_v47 = vpop.f32.mrf.mxu0  ;;  %833 = vmatprep.subr.mxu1 %v8100_v1 }
 0x11b   : > { %834 = vmatpush1.msra.mxu1 %v8353_v46 }
 0x11c   : > { %v8361_v50 = vpop.f32.mrf.mxu0  ;;  %835 = vmatprep.subr.mxu1 %v8100_v1 }
 0x11d   : > { %836 = vmatpush1.msra.mxu1 %v8358_v49  ;;  %v701_v60 = vadd.f32 %v8331_v31, %v8361_v50 }
 0x11e   : > { %v7332_v53 = vpop.f32.mrf.mxu0  ;;  %837 = vmatprep.subr.mxu1 %v8100_v1 }
 0x11f   : > { %838 = vmatpush1.msra.mxu1 %v8365_v52  ;;  %v8486_v7 = vmax.f32 %v701_v60, 0.0  ;;  %v6360_v60 = vld [vmem:[%s10707_s3 + $0xf8] sm:$0xff] }
 0x120   : > { %v8373_v56 = vpop.f32.mrf.mxu0  ;;  %839 = vmatprep.subr.mxu1 %v8100_v1 }
 0x121   : > { %840 = vmatpush1.msra.mxu1 %v8370_v55  ;;  %v706_v57 = vadd.f32 %v8331_v31, %v8373_v56  ;;  %v691_v56 = vadd.f32 %v8331_v31, %v8338_v38  ;;  %v786_v38 = vld [vmem:[%s10707_s3 + $0x18] sm:$0xff] }
 0x122   : > { %v7335_v59 = vpop.f32.mrf.mxu0  ;;  %841 = vmatprep.subr.mxu1 %v8100_v1 }
 0x123   : > { %842 = vmatpush1.msra.mxu1 %v8377_v58 }
 0x124   : > { %v8386_v62 = vpop.f32.mrf.mxu0  ;;  %843 = vmatprep.subr.mxu1 %v8100_v1 }
 0x125   : > { %844 = vmatpush1.msra.mxu1 %v8383_v61  ;;  %v711_v53 = vadd.f32 %v8331_v31, %v8386_v62  ;;  %v696_v62 = vadd.f32 %v8331_v31, %v8349_v44  ;;  %v8494_v44 = vmax.f32 %v691_v56, 0.0  ;;  %v6389_v56 = vld [vmem:[%s10707_s3 + $0x108] sm:$0xff] }
 0x126   : > { %v7338_v5 = vpop.f32.mrf.mxu0  ;;  %845 = vmatprep.subr.mxu1 %v8100_v1 }
 0x127   : > { %846 = vmatpush1.msra.mxu1 %v8391_v3  ;;  %v8474_v0 = vmax.f32 %v711_v53, 0.0  ;;  %v8480_v5 = vmax.f32 %v706_v57, 0.0  ;;  %v8490_v50 = vmax.f32 %v696_v62, 0.0  ;;  %v6358_v53 = vld [vmem:[%s10707_s3 + $0xe8] sm:$0xff]  ;;  %v6357_v57 = vld [vmem:[%s10707_s3 + $0xe0] sm:$0xff]  ;;  %v6359_v62 = vld [vmem:[%s10707_s3 + $0xf0] sm:$0xff] }
 0x128   : > { %v715_v10 = vpop.f32.mrf.mxu0  ;;  %847 = vmatprep.subr.mxu1 %v8100_v1 }
 0x129   : > { %848 = vmatpush1.msra.mxu1 %v8397_v8  ;;  %v716_v48 = vadd.f32 %v8331_v31, %v715_v10  ;;  %v785_v10 = vld [vmem:[%s10707_s3 + $0x10] sm:$0xff] }
 0x12a   : > { %v7341_v12 = vpop.f32.mrf.mxu0  ;;  %849 = vmatprep.subr.mxu1 %v8100_v1 }
 0x12b   : > { %850 = vmatpush1.msra.mxu1 %v8403_v11  ;;  %v8468_v59 = vmax.f32 %v716_v48, 0.0  ;;  %v787_v12 = vld [vmem:[%s10707_s3 + $0x20] sm:$0xff]  ;;  %v6355_v48 = vld [vmem:[%s10707_s3 + $0xd0] sm:$0xff] }
 0x12c   : > { %v720_v14 = vpop.f32.mrf.mxu0  ;;  %851 = vmatprep.subr.mxu1 %v8100_v1 }
 0x12d   : > { %852 = vmatpush1.msra.mxu1 %v8409_v13  ;;  %v721_v45 = vadd.f32 %v8331_v31, %v720_v14  ;;  %v789_v14 = vld [vmem:[%s10707_s3 + $0x30] sm:$0xff] }
 0x12e   : > { %v7344_v16 = vpop.f32.mrf.mxu0  ;;  %853 = vmatprep.subr.mxu1 %v8100_v1 }
 0x12f   : > { %854 = vmatpush1.msra.mxu1 %v8415_v15  ;;  %v8462_v54 = vmax.f32 %v721_v45, 0.0  ;;  %v791_v16 = vld [vmem:[%s10707_s3 + $0x40] sm:$0xff]  ;;  %v6356_v45 = vld [vmem:[%s10707_s3 + $0xd8] sm:$0xff] }
 0x130   : > { %v725_v2 = vpop.f32.mrf.mxu0  ;;  %855 = vmatprep.subr.mxu1 %v8100_v1 }
 0x131   : > { %856 = vmatpush1.msra.mxu1 %v8419_v17  ;;  %v726_v41 = vadd.f32 %v8331_v31, %v725_v2  ;;  %v794_v2 = vld [vmem:[%s10707_s3 + $0x58] sm:$0xff] }
 0x132   : > { %v7347_v19 = vpop.f32.mrf.mxu0  ;;  %857 = vmatprep.subr.mxu1 %v8100_v1 }
 0x133   : > { %858 = vmatpush1.msra.mxu1 %v8423_v18  ;;  %v8456_v51 = vmax.f32 %v726_v41, 0.0  ;;  %v6371_v19 = vld [vmem:[%s10708_s4 + $0x18] sm:$0xff]  ;;  %v6353_v41 = vld [vmem:[%s10707_s3 + $0xc0] sm:$0xff] }
 0x134   : > { %v730_v63 = vpop.f32.mrf.mxu0  ;;  %865 = vmatprep.subr.mxu1 %v8100_v1  ;;  %7363 = vmatprep.subr.mxu0 %v6371_v19 }
 0x135   : > { %v731_v36 = vadd.f32 %v8331_v31, %v730_v63  ;;  %v793_v63 = vld [vmem:[%s10707_s3 + $0x50] sm:$0xff]  ;;  %7364 = vmatpush3.msra.mxu0 %v6371_v19 }
 0x136   : > { %v7350_v20 = vpop.f32.mrf.mxu0  ;;  %v6398_v19 = vld [vmem:[%s10707_s3 + $0x150] sm:$0xff] }
 0x137   : > { %v8451_v47 = vmax.f32 %v731_v36, 0.0  ;;  %v796_v20 = vld [vmem:[%s10707_s3 + $0x68] sm:$0xff]  ;;  %v6370_v36 = vld [vmem:[%s10708_s4 + $0x10] sm:$0xff] }
 0x138   : > { %v735_v21 = vpop.f32.mrf.mxu0  ;;  %7365 = vmatprep.subr.mxu0 %v6370_v36 }
 0x139   : > { %v736_v34 = vadd.f32 %v8331_v31, %v735_v21  ;;  %v795_v21 = vld [vmem:[%s10707_s3 + $0x60] sm:$0xff]  ;;  %7366 = vmatpush3.msra.mxu0 %v6370_v36 }
 0x13a   : > { %v7353_v22 = vpop.f32.mrf.mxu0 }
 0x13b   : > { %v8446_v42 = vmax.f32 %v736_v34, 0.0  ;;  %v798_v22 = vld [vmem:[%s10707_s3 + $0x78] sm:$0xff]  ;;  %v6354_v34 = vld [vmem:[%s10707_s3 + $0xc8] sm:$0xff] }
 0x13c   : > { %v740_v23 = vpop.f32.mrf.mxu0 }
 0x13d   : > { %v741_v32 = vadd.f32 %v8331_v31, %v740_v23  ;;  %v797_v23 = vld [vmem:[%s10707_s3 + $0x70] sm:$0xff] }
 0x13e   : > { %v7356_v24 = vpop.f32.mrf.mxu0 }
 0x13f   : > { %v8441_v39 = vmax.f32 %v741_v32, 0.0  ;;  %v6346_v24 = vld [vmem:[%s10707_s3 + $0x88] sm:$0xff]  ;;  %v6351_v32 = vld [vmem:[%s10707_s3 + $0xb0] sm:$0xff] }
 0x140   : > { %v745_v25 = vpop.f32.mrf.mxu0 }
 0x141   : > { %v746_v28 = vadd.f32 %v8331_v31, %v745_v25  ;;  %v6345_v25 = vld [vmem:[%s10707_s3 + $0x80] sm:$0xff] }
 0x142   : > { %v7359_v26 = vpop.f32.mrf.mxu0 }
 0x143   : > { %v8435_v35 = vmax.f32 %v746_v28, 0.0  ;;  %v6348_v26 = vld [vmem:[%s10707_s3 + $0x98] sm:$0xff]  ;;  %v6350_v28 = vld [vmem:[%s10707_s3 + $0xa8] sm:$0xff] }
 0x144   : > { %v750_v27 = vpop.f32.mrf.mxu0 }
 0x145   : > { %v751_v29 = vadd.f32 %v8331_v31, %v750_v27  ;;  %v783_v31 = vld [vmem:[%s10707_s3] sm:$0xff]  ;;  %v6347_v27 = vld [vmem:[%s10707_s3 + $0x90] sm:$0xff] }
 0x146   : > { %v7362_v30 = vpop.f32.mrf.mxu0 }
 0x147   : > { %v8432_v33 = vmax.f32 %v751_v29, 0.0  ;;  %v6349_v29 = vld [vmem:[%s10707_s3 + $0xa0] sm:$0xff]  ;;  %v6352_v30 = vld [vmem:[%s10707_s3 + $0xb8] sm:$0xff] }
 0x149   : > { %6336 = vmatpush2.msk.msra.mxu1 %vm540_vm0, %v8432_v33 }
 0x14a   : > { %867 = vmatprep.subr.mxu1 %v8100_v1 }
 0x14b   : > { %868 = vmatpush2.msra.mxu1 %v8435_v35 }
 0x14c   : > { %869 = vmatprep.subr.mxu1 %v8100_v1 }
 0x14d   : > { %870 = vmatpush2.msra.mxu1 %v8441_v39 }
 0x14e   : > { %871 = vmatprep.subr.mxu1 %v8100_v1 }
 0x14f   : > { %872 = vmatpush2.msra.mxu1 %v8446_v42 }
 0x150   : > { %873 = vmatprep.subr.mxu1 %v8100_v1 }
 0x151   : > { %874 = vmatpush2.msra.mxu1 %v8451_v47 }
 0x152   : > { %875 = vmatprep.subr.mxu1 %v8100_v1 }
 0x153   : > { %876 = vmatpush2.msra.mxu1 %v8456_v51 }
 0x154   : > { %877 = vmatprep.subr.mxu1 %v8100_v1 }
 0x155   : > { %878 = vmatpush2.msra.mxu1 %v8462_v54 }
 0x156   : > { %879 = vmatprep.subr.mxu1 %v8100_v1 }
 0x157   : > { %880 = vmatpush2.msra.mxu1 %v8468_v59 }
 0x158   : > { %881 = vmatprep.subr.mxu1 %v8100_v1 }
 0x159   : > { %882 = vmatpush2.msra.mxu1 %v8474_v0 }
 0x15a   : > { %883 = vmatprep.subr.mxu1 %v8100_v1 }
 0x15b   : > { %884 = vmatpush2.msra.mxu1 %v8480_v5 }
 0x15c   : > { %885 = vmatprep.subr.mxu1 %v8100_v1 }
 0x15d   : > { %886 = vmatpush2.msra.mxu1 %v8486_v7 }
 0x15e   : > { %887 = vmatprep.subr.mxu1 %v8100_v1 }
 0x15f   : > { %888 = vmatpush2.msra.mxu1 %v8490_v50 }
 0x160   : > { %889 = vmatprep.subr.mxu1 %v8100_v1 }
 0x161   : > { %890 = vmatpush2.msra.mxu1 %v8494_v44 }
 0x162   : > { %892 = vmatmul.mubr.f32.vlgmr.msra.gmra.mxu1 %v783_v31  ;;  %975 = vmatprep.subr.mxu1 %v8100_v1  ;;  %v6388_v31 = vld [vmem:[%s10707_s3 + $0x100] sm:$0xff] }
 0x163   : > { %976 = vmatpush1.msra.mxu1 %v8336_v37  ;;  %6338 = vmatprep.mubr.msk.f32.mxu1 %vm799_vm3, %v786_v38  ;;  %v6391_v38 = vld [vmem:[%s10707_s3 + $0x118] sm:$0xff] }
 0x164   : > { %977 = vmatprep.subr.mxu1 %v8100_v1 }
 0x165   : > { %978 = vmatpush1.msra.mxu1 %v8341_v40 }
 0x166   : > { %979 = vmatprep.subr.mxu1 %v8100_v1  ;;  %897 = vmatmul.mubr.f32.gmra.mxu1 %v785_v10  ;;  %v6390_v10 = vld [vmem:[%s10707_s3 + $0x110] sm:$0xff] }
 0x167   : > { %980 = vmatpush1.msra.mxu1 %v8346_v43  ;;  %6339 = vmatprep.mubr.msk.f32.mxu1 %vm799_vm3, %v788_v9  ;;  %v6393_v9 = vld [vmem:[%s10707_s3 + $0x128] sm:$0xff] }
 0x168   : > { %981 = vmatprep.subr.mxu1 %v8100_v1 }
 0x169   : > { %982 = vmatpush1.msra.mxu1 %v8353_v46 }
 0x16a   : > { %983 = vmatprep.subr.mxu1 %v8100_v1  ;;  %902 = vmatmul.mubr.f32.gmra.mxu1 %v787_v12  ;;  %v6392_v12 = vld [vmem:[%s10707_s3 + $0x120] sm:$0xff] }
 0x16b   : > { %984 = vmatpush1.msra.mxu1 %v8358_v49  ;;  %6340 = vmatprep.mubr.msk.f32.mxu1 %vm799_vm3, %v790_v6  ;;  %v6395_v6 = vld [vmem:[%s10707_s3 + $0x138] sm:$0xff] }
 0x16c   : > { %985 = vmatprep.subr.mxu1 %v8100_v1 }
 0x16d   : > { %986 = vmatpush1.msra.mxu1 %v8365_v52 }
 0x16e   : > { %987 = vmatprep.subr.mxu1 %v8100_v1  ;;  %907 = vmatmul.mubr.f32.gmra.mxu1 %v789_v14  ;;  %v6394_v14 = vld [vmem:[%s10707_s3 + $0x130] sm:$0xff] }
 0x16f   : > { %988 = vmatpush1.msra.mxu1 %v8370_v55  ;;  %6341 = vmatprep.mubr.msk.f32.mxu1 %vm799_vm3, %v792_v4  ;;  %v6397_v4 = vld [vmem:[%s10707_s3 + $0x148] sm:$0xff] }
 0x170   : > { %989 = vmatprep.subr.mxu1 %v8100_v1 }
 0x171   : > { %990 = vmatpush1.msra.mxu1 %v8377_v58 }
 0x172   : > { %991 = vmatprep.subr.mxu1 %v8100_v1  ;;  %912 = vmatmul.mubr.f32.gmra.mxu1 %v791_v16  ;;  %v6396_v16 = vld [vmem:[%s10707_s3 + $0x140] sm:$0xff] }
 0x173   : > { %992 = vmatpush1.msra.mxu1 %v8383_v61  ;;  %6342 = vmatprep.mubr.msk.f32.mxu1 %vm799_vm3, %v794_v2  ;;  %v6399_v2 = vld [vmem:[%s10707_s3 + $0x158] sm:$0xff] }
 0x174   : > { %993 = vmatprep.subr.mxu1 %v8100_v1 }
 0x175   : > { %994 = vmatpush1.msra.mxu1 %v8391_v3 }
 0x176   : > { %995 = vmatprep.subr.mxu1 %v8100_v1  ;;  %917 = vmatmul.mubr.f32.gmra.mxu1 %v793_v63  ;;  %v6401_v63 = vld [vmem:[%s10707_s3 + $0x168] sm:$0xff] }
 0x177   : > { %996 = vmatpush1.msra.mxu1 %v8397_v8  ;;  %6343 = vmatprep.mubr.msk.f32.mxu1 %vm799_vm3, %v796_v20  ;;  %v6400_v20 = vld [vmem:[%s10707_s3 + $0x160] sm:$0xff] }
 0x178   : > { %997 = vmatprep.subr.mxu1 %v8100_v1 }
 0x179   : > { %998 = vmatpush1.msra.mxu1 %v8403_v11 }
 0x17a   : > { %999 = vmatprep.subr.mxu1 %v8100_v1  ;;  %922 = vmatmul.mubr.f32.gmra.mxu1 %v795_v21  ;;  %v6403_v21 = vld [vmem:[%s10707_s3 + $0x178] sm:$0xff] }
 0x17b   : > { %1000 = vmatpush1.msra.mxu1 %v8409_v13  ;;  %6344 = vmatprep.mubr.msk.f32.mxu1 %vm799_vm3, %v798_v22  ;;  %v6402_v22 = vld [vmem:[%s10707_s3 + $0x170] sm:$0xff] }
 0x17c   : > { %1001 = vmatprep.subr.mxu1 %v8100_v1 }
 0x17d   : > { %1002 = vmatpush1.msra.mxu1 %v8415_v15 }
 0x17e   : > { %1003 = vmatprep.subr.mxu1 %v8100_v1  ;;  %927 = vmatmul.mubr.f32.gmra.mxu1 %v797_v23  ;;  %v933_v23 = vld [vmem:[%s10708_s4 + $0x8] sm:$0xff] }
 0x17f   : > { %1004 = vmatpush1.msra.mxu1 %v8419_v17  ;;  %6362 = vmatprep.mubr.msk.f32.mxu1 %vm799_vm3, %v6346_v24 }
 0x180   : > { %1005 = vmatprep.subr.mxu1 %v8100_v1  ;;  %7379 = vmatprep.subr.mxu0 %v933_v23 }
 0x181   : > { %1006 = vmatpush1.msra.mxu1 %v8423_v18 }
 0x182   : > { %1013 = vmatprep.subr.mxu1 %v8100_v1 }
 0x183   : > { %6361 = vmatpush2.msk.msra.mxu1 %vm540_vm0, %v8432_v33 }
 0x184   : > { %1015 = vmatprep.subr.mxu1 %v8100_v1 }
 0x185   : > { %1016 = vmatpush2.msra.mxu1 %v8435_v35 }
 0x186   : > { %1017 = vmatprep.subr.mxu1 %v8100_v1 }
 0x187   : > { %1018 = vmatpush2.msra.mxu1 %v8441_v39 }
 0x188   : > { %1019 = vmatprep.subr.mxu1 %v8100_v1 }
 0x189   : > { %1020 = vmatpush2.msra.mxu1 %v8446_v42 }
 0x18a   : > { %1021 = vmatprep.subr.mxu1 %v8100_v1 }
 0x18b   : > { %1022 = vmatpush2.msra.mxu1 %v8451_v47 }
 0x18c   : > { %1023 = vmatprep.subr.mxu1 %v8100_v1 }
 0x18d   : > { %1024 = vmatpush2.msra.mxu1 %v8456_v51 }
 0x18e   : > { %1025 = vmatprep.subr.mxu1 %v8100_v1 }
 0x18f   : > { %1026 = vmatpush2.msra.mxu1 %v8462_v54 }
 0x190   : > { %1027 = vmatprep.subr.mxu1 %v8100_v1 }
 0x191   : > { %1028 = vmatpush2.msra.mxu1 %v8468_v59 }
 0x192   : > { %1029 = vmatprep.subr.mxu1 %v8100_v1 }
 0x193   : > { %1030 = vmatpush2.msra.mxu1 %v8474_v0 }
 0x194   : > { %1031 = vmatprep.subr.mxu1 %v8100_v1 }
 0x195   : > { %1032 = vmatpush2.msra.mxu1 %v8480_v5 }
 0x196   : > { %1033 = vmatprep.subr.mxu1 %v8100_v1 }
 0x197   : > { %1034 = vmatpush2.msra.mxu1 %v8486_v7 }
 0x198   : > { %1035 = vmatprep.subr.mxu1 %v8100_v1 }
 0x199   : > { %1036 = vmatpush2.msra.mxu1 %v8490_v50 }
 0x19a   : > { %1037 = vmatprep.subr.mxu1 %v8100_v1 }
 0x19b   : > { %1038 = vmatpush2.msra.mxu1 %v8494_v44 }
 0x19c   : > { %1040 = vmatmul.mubr.f32.vlgmr.msra.gmra.mxu1 %v6345_v25  ;;  %1383 = vmatprep.subr.mxu1 %v8100_v1 }
 0x19d   : > { %1384 = vmatpush1.msra.mxu1 %v8336_v37  ;;  %6363 = vmatprep.mubr.msk.f32.mxu1 %vm799_vm3, %v6348_v26 }
 0x19e   : > { %1385 = vmatprep.subr.mxu1 %v8100_v1 }
 0x19f   : > { %1386 = vmatpush1.msra.mxu1 %v8341_v40 }
 0x1a0   : > { %1045 = vmatmul.mubr.f32.gmra.mxu1 %v6347_v27  ;;  %1387 = vmatprep.subr.mxu1 %v8100_v1 }
 0x1a1   : > { %1388 = vmatpush1.msra.mxu1 %v8346_v43  ;;  %6364 = vmatprep.mubr.msk.f32.mxu1 %vm799_vm3, %v6350_v28 }
 0x1a2   : > { %1389 = vmatprep.subr.mxu1 %v8100_v1 }
 0x1a3   : > { %1390 = vmatpush1.msra.mxu1 %v8353_v46 }
 0x1a4   : > { %1050 = vmatmul.mubr.f32.gmra.mxu1 %v6349_v29  ;;  %1391 = vmatprep.subr.mxu1 %v8100_v1 }
 0x1a5   : > { %1392 = vmatpush1.msra.mxu1 %v8358_v49  ;;  %6365 = vmatprep.mubr.msk.f32.mxu1 %vm799_vm3, %v6352_v30 }
 0x1a6   : > { %1393 = vmatprep.subr.mxu1 %v8100_v1 }
 0x1a7   : > { %1394 = vmatpush1.msra.mxu1 %v8365_v52 }
 0x1a8   : > { %1055 = vmatmul.mubr.f32.gmra.mxu1 %v6351_v32  ;;  %1395 = vmatprep.subr.mxu1 %v8100_v1 }
 0x1a9   : > { %1396 = vmatpush1.msra.mxu1 %v8370_v55  ;;  %6366 = vmatprep.mubr.msk.f32.mxu1 %vm799_vm3, %v6354_v34 }
 0x1aa   : > { %1397 = vmatprep.subr.mxu1 %v8100_v1 }
 0x1ab   : > { %1398 = vmatpush1.msra.mxu1 %v8377_v58 }
 0x1ac   : > { %1060 = vmatmul.mubr.f32.gmra.mxu1 %v6353_v41  ;;  %1399 = vmatprep.subr.mxu1 %v8100_v1 }
 0x1ad   : > { %1400 = vmatpush1.msra.mxu1 %v8383_v61  ;;  %6367 = vmatprep.mubr.msk.f32.mxu1 %vm799_vm3, %v6356_v45 }
 0x1ae   : > { %1401 = vmatprep.subr.mxu1 %v8100_v1 }
 0x1af   : > { %1402 = vmatpush1.msra.mxu1 %v8391_v3 }
 0x1b0   : > { %1065 = vmatmul.mubr.f32.gmra.mxu1 %v6355_v48  ;;  %1403 = vmatprep.subr.mxu1 %v8100_v1 }
 0x1b1   : > { %1404 = vmatpush1.msra.mxu1 %v8397_v8  ;;  %6368 = vmatprep.mubr.msk.f32.mxu1 %vm799_vm3, %v6358_v53 }
 0x1b2   : > { %1405 = vmatprep.subr.mxu1 %v8100_v1 }
 0x1b3   : > { %1406 = vmatpush1.msra.mxu1 %v8403_v11 }
 0x1b4   : > { %1070 = vmatmul.mubr.f32.gmra.mxu1 %v6357_v57  ;;  %1407 = vmatprep.subr.mxu1 %v8100_v1 }
 0x1b5   : > { %1408 = vmatpush1.msra.mxu1 %v8409_v13  ;;  %6369 = vmatprep.mubr.msk.f32.mxu1 %vm799_vm3, %v6360_v60 }
 0x1b6   : > { %1409 = vmatprep.subr.mxu1 %v8100_v1 }
 0x1b7   : > { %1410 = vmatpush1.msra.mxu1 %v8415_v15 }
 0x1b8   : > { %1075 = vmatmul.mubr.f32.gmra.mxu1 %v6359_v62  ;;  %1411 = vmatprep.subr.mxu1 %v8100_v1 }
 0x1b9   : > { %1412 = vmatpush1.msra.mxu1 %v8419_v17  ;;  %6405 = vmatprep.mubr.msk.f32.mxu1 %vm799_vm3, %v6389_v56 }
 0x1ba   : > { %1413 = vmatprep.subr.mxu1 %v8100_v1 }
 0x1bb   : > { %1414 = vmatpush1.msra.mxu1 %v8423_v18 }
 0x1bc   : > { %1421 = vmatprep.subr.mxu1 %v8100_v1 }
 0x1bd   : > { %6404 = vmatpush2.msk.msra.mxu1 %vm540_vm0, %v8432_v33 }
 0x1be   : > { %1423 = vmatprep.subr.mxu1 %v8100_v1 }
 0x1bf   : > { %1424 = vmatpush2.msra.mxu1 %v8435_v35 }
 0x1c0   : > { %1425 = vmatprep.subr.mxu1 %v8100_v1 }
 0x1c1   : > { %1426 = vmatpush2.msra.mxu1 %v8441_v39 }
 0x1c2   : > { %1427 = vmatprep.subr.mxu1 %v8100_v1 }
 0x1c3   : > { %1428 = vmatpush2.msra.mxu1 %v8446_v42 }
 0x1c4   : > { %1429 = vmatprep.subr.mxu1 %v8100_v1 }
 0x1c5   : > { %1430 = vmatpush2.msra.mxu1 %v8451_v47 }
 0x1c6   : > { %1431 = vmatprep.subr.mxu1 %v8100_v1 }
 0x1c7   : > { %1432 = vmatpush2.msra.mxu1 %v8456_v51 }
 0x1c8   : > { %1433 = vmatprep.subr.mxu1 %v8100_v1 }
 0x1c9   : > { %1434 = vmatpush2.msra.mxu1 %v8462_v54 }
 0x1ca   : > { %1435 = vmatprep.subr.mxu1 %v8100_v1 }
 0x1cb   : > { %1436 = vmatpush2.msra.mxu1 %v8468_v59 }
 0x1cc   : > { %1437 = vmatprep.subr.mxu1 %v8100_v1 }
 0x1cd   : > { %1438 = vmatpush2.msra.mxu1 %v8474_v0 }
 0x1ce   : > { %1439 = vmatprep.subr.mxu1 %v8100_v1 }
 0x1cf   : > { %1440 = vmatpush2.msra.mxu1 %v8480_v5 }
 0x1d0   : > { %1441 = vmatprep.subr.mxu1 %v8100_v1 }
 0x1d1   : > { %1442 = vmatpush2.msra.mxu1 %v8486_v7 }
 0x1d2   : > { %1443 = vmatprep.subr.mxu1 %v8100_v1 }
 0x1d3   : > { %1444 = vmatpush2.msra.mxu1 %v8490_v50 }
 0x1d4   : > { %1445 = vmatprep.subr.mxu1 %v8100_v1 }
 0x1d5   : > { %1446 = vmatpush2.msra.mxu1 %v8494_v44 }
 0x1d6   : > { %1448 = vmatmul.mubr.f32.vlgmr.msra.gmra.mxu1 %v6388_v31 }
 0x1d7   : > { %6406 = vmatprep.mubr.msk.f32.mxu1 %vm799_vm3, %v6391_v38  ;;  %v932_v38 = vld [vmem:[%s10708_s4] sm:$0xff] }
 0x1da   : > { %1453 = vmatmul.mubr.f32.gmra.mxu1 %v6390_v10 }
 0x1db   : > { %6407 = vmatprep.mubr.msk.f32.mxu1 %vm799_vm3, %v6393_v9  ;;  %v6414_v9 = vld [vmem:[%s10708_s4 + $0x28] sm:$0xff] }
 0x1de   : > { %1458 = vmatmul.mubr.f32.gmra.mxu1 %v6392_v12 }
 0x1df   : > { %6408 = vmatprep.mubr.msk.f32.mxu1 %vm799_vm3, %v6395_v6 }
 0x1e2   : > { %1463 = vmatmul.mubr.f32.gmra.mxu1 %v6394_v14 }
 0x1e3   : > { %6409 = vmatprep.mubr.msk.f32.mxu1 %vm799_vm3, %v6397_v4 }
 0x1e6   : > { %1468 = vmatmul.mubr.f32.gmra.mxu1 %v6396_v16 }
 0x1e7   : > { %6410 = vmatprep.mubr.msk.f32.mxu1 %vm799_vm3, %v6399_v2 }
 0x1ea   : > { %1473 = vmatmul.mubr.f32.gmra.mxu1 %v6398_v19 }
 0x1eb   : > { %6411 = vmatprep.mubr.msk.f32.mxu1 %vm799_vm3, %v6401_v63 }
 0x1ee   : > { %1478 = vmatmul.mubr.f32.gmra.mxu1 %v6400_v20 }
 0x1ef   : > { %6412 = vmatprep.mubr.msk.f32.mxu1 %vm799_vm3, %v6403_v21 }
 0x1f2   : > { %1483 = vmatmul.mubr.f32.gmra.mxu1 %v6402_v22 }
 0x222   : > { %v893_v24 = vpop.f32.mrf.mxu1 }
 0x224   : > { %v895_v25 = vpop.f32.mrf.mxu1 }
 0x225   : > { %v6413_v25 = vld [vmem:[%s10708_s4 + $0x20] sm:$0xff] }
 0x226   : > { %v898_v26 = vpop.f32.mrf.mxu1 }
 0x228   : > { %v900_v27 = vpop.f32.mrf.mxu1 }
 0x22a   : > { %v903_v28 = vpop.f32.mrf.mxu1 }
 0x22c   : > { %v905_v29 = vpop.f32.mrf.mxu1 }
 0x22e   : > { %v908_v30 = vpop.f32.mrf.mxu1 }
 0x230   : > { %v910_v32 = vpop.f32.mrf.mxu1 }
 0x232   : > { %v913_v34 = vpop.f32.mrf.mxu1 }
 0x234   : > { %v915_v36 = vpop.f32.mrf.mxu1 }
 0x236   : > { %v918_v41 = vpop.f32.mrf.mxu1 }
 0x238   : > { %v920_v45 = vpop.f32.mrf.mxu1 }
 0x23a   : > { %v923_v48 = vpop.f32.mrf.mxu1 }
 0x23c   : > { %v925_v53 = vpop.f32.mrf.mxu1 }
 0x23e   : > { %v928_v57 = vpop.f32.mrf.mxu1 }
 0x240   : > { %v930_v60 = vpop.f32.mrf.mxu1 }
 0x241   : > { %v6424_v60 = vld [vmem:[%s10707_s3 + $0x188] sm:$0xff] }
 0x25c   : > { %v1041_v62 = vpop.f32.mrf.mxu1 }
 0x25d   : > { %7367 = vmatprep.mubr.msk.f32.mxu0 %vm1083_vm4, %v1041_v62 }
 0x25e   : > { %v1043_v56 = vpop.f32.mrf.mxu1 }
 0x260   : > { %v1046_v31 = vpop.f32.mrf.mxu1 }
 0x261   : > { %7368 = vmatmul.mubr.msk.f32.vlgmr.msra.gmra.mxu0 %vm1083_vm4, %v1046_v31  ;;  %v6423_v31 = vld [vmem:[%s10707_s3 + $0x180] sm:$0xff] }
 0x262   : > { %v1048_v10 = vpop.f32.mrf.mxu1  ;;  %7380 = vmatpush3.msra.mxu0 %v933_v23 }
 0x263   : > { %7381 = vmatprep.subr.mxu0 %v932_v38  ;;  %v6425_v10 = vld [vmem:[%s10707_s3 + $0x190] sm:$0xff] }
 0x264   : > { %v1051_v12 = vpop.f32.mrf.mxu1  ;;  %7382 = vmatpush3.msra.mxu0 %v932_v38  ;;  %v6426_v38 = vld [vmem:[%s10707_s3 + $0x198] sm:$0xff] }
 0x265   : > { %7370 = vmatprep.mubr.msk.f32.mxu0 %vm1083_vm4, %v1051_v12  ;;  %7395 = vmatprep.subr.mxu0 %v6414_v9  ;;  %v6427_v12 = vld [vmem:[%s10707_s3 + $0x1a0] sm:$0xff] }
 0x266   : > { %v1053_v6 = vpop.f32.mrf.mxu1 }
 0x267   : > { %v6430_v6 = vld [vmem:[%s10707_s3 + $0x1b8] sm:$0xff] }
 0x268   : > { %v1056_v14 = vpop.f32.mrf.mxu1 }
 0x269   : > { %7371 = vmatmul.mubr.msk.f32.gmra.mxu0 %vm1083_vm4, %v1056_v14  ;;  %v6429_v14 = vld [vmem:[%s10707_s3 + $0x1b0] sm:$0xff] }
 0x26a   : > { %v1058_v4 = vpop.f32.mrf.mxu1 }
 0x26b   : > { %v6432_v4 = vld [vmem:[%s10707_s3 + $0x1c8] sm:$0xff] }
 0x26c   : > { %v1061_v16 = vpop.f32.mrf.mxu1 }
 0x26d   : > { %7373 = vmatprep.mubr.msk.f32.mxu0 %vm1083_vm4, %v1061_v16  ;;  %v6431_v16 = vld [vmem:[%s10707_s3 + $0x1c0] sm:$0xff] }
 0x26e   : > { %v1063_v2 = vpop.f32.mrf.mxu1 }
 0x26f   : > { %v6434_v2 = vld [vmem:[%s10707_s3 + $0x1d8] sm:$0xff] }
 0x270   : > { %v1066_v19 = vpop.f32.mrf.mxu1 }
 0x271   : > { %7374 = vmatmul.mubr.msk.f32.gmra.mxu0 %vm1083_vm4, %v1066_v19  ;;  %v6433_v19 = vld [vmem:[%s10707_s3 + $0x1d0] sm:$0xff] }
 0x272   : > { %v1068_v63 = vpop.f32.mrf.mxu1 }
 0x273   : > { %v6436_v63 = vld [vmem:[%s10707_s3 + $0x1e8] sm:$0xff] }
 0x274   : > { %v1071_v20 = vpop.f32.mrf.mxu1 }
 0x275   : > { %7376 = vmatprep.mubr.msk.f32.mxu0 %vm1083_vm4, %v1071_v20  ;;  %v6435_v20 = vld [vmem:[%s10707_s3 + $0x1e0] sm:$0xff] }
 0x276   : > { %v1073_v21 = vpop.f32.mrf.mxu1 }
 0x277   : > { %v6438_v21 = vld [vmem:[%s10707_s3 + $0x1f8] sm:$0xff] }
 0x278   : > { %v1076_v22 = vpop.f32.mrf.mxu1 }
 0x279   : > { %7377 = vmatmul.mubr.msk.f32.gmra.mxu0 %vm1083_vm4, %v1076_v22  ;;  %v6437_v22 = vld [vmem:[%s10707_s3 + $0x1f0] sm:$0xff] }
 0x27a   : > { %7383 = vmatprep.mubr.msk.f32.mxu0 %vm1083_vm4, %v893_v24  ;;  %v1078_v23 = vpop.f32.mrf.mxu1 }
 0x27b   : > { %v6449_v23 = vld [vmem:[%s10708_s4 + $0x38] sm:$0xff] }
 0x27c   : > { %7411 = vmatprep.subr.mxu1 %v6449_v23 }
 0x27d   : > { %7384 = vmatmul.mubr.msk.f32.vlgmr.msra.gmra.mxu0 %vm1083_vm4, %v898_v26  ;;  %7412 = vmatpush3.msra.mxu1 %v6449_v23 }
 0x27e   : > { %7386 = vmatprep.mubr.msk.f32.mxu0 %vm1083_vm4, %v903_v28  ;;  %7396 = vmatpush3.msra.mxu0 %v6414_v9  ;;  %v6428_v9 = vld [vmem:[%s10707_s3 + $0x1a8] sm:$0xff] }
 0x27f   : > { %7397 = vmatprep.subr.mxu0 %v6413_v25 }
 0x280   : > { %7398 = vmatpush3.msra.mxu0 %v6413_v25  ;;  %v6448_v25 = vld [vmem:[%s10708_s4 + $0x30] sm:$0xff] }
 0x281   : > { %7387 = vmatmul.mubr.msk.f32.gmra.mxu0 %vm1083_vm4, %v908_v30  ;;  %1669 = vmatprep.subr.mxu0 %v8100_v1 }
 0x282   : > { %7389 = vmatprep.mubr.msk.f32.mxu0 %vm1083_vm4, %v913_v34  ;;  %7413 = vmatprep.subr.mxu1 %v6448_v25 }
 0x283   : > { %7414 = vmatpush3.msra.mxu1 %v6448_v25 }
 0x284   : > { %1955 = vmatprep.subr.mxu1 %v8100_v1 }
 0x285   : > { %7390 = vmatmul.mubr.msk.f32.gmra.mxu0 %vm1083_vm4, %v918_v41 }
 0x286   : > { %7392 = vmatprep.mubr.msk.f32.mxu0 %vm1083_vm4, %v923_v48 }
 0x289   : > { %7393 = vmatmul.mubr.msk.f32.gmra.mxu0 %vm1083_vm4, %v928_v57 }
 0x296   : > { %v1449_v24 = vpop.f32.mrf.mxu1 }
 0x297   : > { %7399 = vmatprep.mubr.msk.f32.mxu0 %vm1083_vm4, %v1449_v24 }
 0x298   : > { %v1451_v26 = vpop.f32.mrf.mxu1 }
 0x29a   : > { %v1454_v27 = vpop.f32.mrf.mxu1 }
 0x29b   : > { %7400 = vmatmul.mubr.msk.f32.vlgmr.msra.gmra.mxu0 %vm1083_vm4, %v1454_v27 }
 0x29c   : > { %1670 = vmatpush1.msra.mxu0 %v8336_v37  ;;  %v1456_v28 = vpop.f32.mrf.mxu1 }
 0x29d   : > { %1671 = vmatprep.subr.mxu0 %v8100_v1 }
 0x29e   : > { %1672 = vmatpush1.msra.mxu0 %v8341_v40  ;;  %v1459_v29 = vpop.f32.mrf.mxu1 }
 0x29f   : > { %1673 = vmatprep.subr.mxu0 %v8100_v1  ;;  %7402 = vmatprep.mubr.msk.f32.mxu0 %vm1083_vm4, %v1459_v29 }
 0x2a0   : > { %1674 = vmatpush1.msra.mxu0 %v8346_v43  ;;  %v1461_v30 = vpop.f32.mrf.mxu1 }
 0x2a1   : > { %1675 = vmatprep.subr.mxu0 %v8100_v1 }
 0x2a2   : > { %1676 = vmatpush1.msra.mxu0 %v8353_v46  ;;  %v1464_v32 = vpop.f32.mrf.mxu1 }
 0x2a3   : > { %1677 = vmatprep.subr.mxu0 %v8100_v1  ;;  %7403 = vmatmul.mubr.msk.f32.gmra.mxu0 %vm1083_vm4, %v1464_v32 }
 0x2a4   : > { %1678 = vmatpush1.msra.mxu0 %v8358_v49  ;;  %v1466_v34 = vpop.f32.mrf.mxu1 }
 0x2a5   : > { %1679 = vmatprep.subr.mxu0 %v8100_v1 }
 0x2a6   : > { %1680 = vmatpush1.msra.mxu0 %v8365_v52  ;;  %v1469_v36 = vpop.f32.mrf.mxu1 }
 0x2a7   : > { %1681 = vmatprep.subr.mxu0 %v8100_v1  ;;  %7405 = vmatprep.mubr.msk.f32.mxu0 %vm1083_vm4, %v1469_v36 }
 0x2a8   : > { %1682 = vmatpush1.msra.mxu0 %v8370_v55  ;;  %v1471_v41 = vpop.f32.mrf.mxu1 }
 0x2a9   : > { %1683 = vmatprep.subr.mxu0 %v8100_v1 }
 0x2aa   : > { %1684 = vmatpush1.msra.mxu0 %v8377_v58  ;;  %v1474_v45 = vpop.f32.mrf.mxu1 }
 0x2ab   : > { %1685 = vmatprep.subr.mxu0 %v8100_v1  ;;  %7406 = vmatmul.mubr.msk.f32.gmra.mxu0 %vm1083_vm4, %v1474_v45 }
 0x2ac   : > { %1686 = vmatpush1.msra.mxu0 %v8383_v61  ;;  %v1476_v48 = vpop.f32.mrf.mxu1 }
 0x2ad   : > { %1687 = vmatprep.subr.mxu0 %v8100_v1 }
 0x2ae   : > { %1688 = vmatpush1.msra.mxu0 %v8391_v3  ;;  %v1479_v53 = vpop.f32.mrf.mxu1 }
 0x2af   : > { %1689 = vmatprep.subr.mxu0 %v8100_v1  ;;  %7408 = vmatprep.mubr.msk.f32.mxu0 %vm1083_vm4, %v1479_v53 }
 0x2b0   : > { %1690 = vmatpush1.msra.mxu0 %v8397_v8  ;;  %v1481_v57 = vpop.f32.mrf.mxu1 }
 0x2b1   : > { %1691 = vmatprep.subr.mxu0 %v8100_v1 }
 0x2b2   : > { %1692 = vmatpush1.msra.mxu0 %v8403_v11  ;;  %v1484_v62 = vpop.f32.mrf.mxu1 }
 0x2b3   : > { %1693 = vmatprep.subr.mxu0 %v8100_v1  ;;  %7409 = vmatmul.mubr.msk.f32.gmra.mxu0 %vm1083_vm4, %v1484_v62 }
 0x2b4   : > { %1694 = vmatpush1.msra.mxu0 %v8409_v13  ;;  %v1486_v56 = vpop.f32.mrf.mxu1  ;;  %6440 = vmatprep.mubr.msk.f32.mxu0 %vm799_vm3, %v6424_v60 }
 0x2b5   : > { %1695 = vmatprep.subr.mxu0 %v8100_v1 }
 0x2b6   : > { %1696 = vmatpush1.msra.mxu0 %v8415_v15 }
 0x2b7   : > { %1697 = vmatprep.subr.mxu0 %v8100_v1 }
 0x2b8   : > { %1698 = vmatpush1.msra.mxu0 %v8419_v17 }
 0x2b9   : > { %1699 = vmatprep.subr.mxu0 %v8100_v1 }
 0x2ba   : > { %1700 = vmatpush1.msra.mxu0 %v8423_v18 }
 0x2bb   : > { %1707 = vmatprep.subr.mxu0 %v8100_v1 }
 0x2bc   : > { %6439 = vmatpush2.msk.msra.mxu0 %vm540_vm0, %v8432_v33 }
 0x2bd   : > { %1709 = vmatprep.subr.mxu0 %v8100_v1 }
 0x2be   : > { %1710 = vmatpush2.msra.mxu0 %v8435_v35 }
 0x2bf   : > { %1711 = vmatprep.subr.mxu0 %v8100_v1 }
 0x2c0   : > { %1712 = vmatpush2.msra.mxu0 %v8441_v39 }
 0x2c1   : > { %1713 = vmatprep.subr.mxu0 %v8100_v1 }
 0x2c2   : > { %1714 = vmatpush2.msra.mxu0 %v8446_v42 }
 0x2c3   : > { %1715 = vmatprep.subr.mxu0 %v8100_v1 }
 0x2c4   : > { %1716 = vmatpush2.msra.mxu0 %v8451_v47 }
 0x2c5   : > { %1717 = vmatprep.subr.mxu0 %v8100_v1 }
 0x2c6   : > { %1718 = vmatpush2.msra.mxu0 %v8456_v51 }
 0x2c7   : > { %1719 = vmatprep.subr.mxu0 %v8100_v1 }
 0x2c8   : > { %1720 = vmatpush2.msra.mxu0 %v8462_v54 }
 0x2c9   : > { %1721 = vmatprep.subr.mxu0 %v8100_v1 }
 0x2ca   : > { %1722 = vmatpush2.msra.mxu0 %v8468_v59 }
 0x2cb   : > { %1723 = vmatprep.subr.mxu0 %v8100_v1 }
 0x2cc   : > { %1724 = vmatpush2.msra.mxu0 %v8474_v0 }
 0x2cd   : > { %1725 = vmatprep.subr.mxu0 %v8100_v1 }
 0x2ce   : > { %1726 = vmatpush2.msra.mxu0 %v8480_v5 }
 0x2cf   : > { %1727 = vmatprep.subr.mxu0 %v8100_v1 }
 0x2d0   : > { %1728 = vmatpush2.msra.mxu0 %v8486_v7 }
 0x2d1   : > { %1729 = vmatprep.subr.mxu0 %v8100_v1 }
 0x2d2   : > { %1730 = vmatpush2.msra.mxu0 %v8490_v50 }
 0x2d3   : > { %1731 = vmatprep.subr.mxu0 %v8100_v1 }
 0x2d4   : > { %1732 = vmatpush2.msra.mxu0 %v8494_v44 }
 0x2d5   : > { %1734 = vmatmul.mubr.f32.vlgmr.msra.gmra.mxu0 %v6423_v31 }
 0x2d6   : > { %6441 = vmatprep.mubr.msk.f32.mxu0 %vm799_vm3, %v6426_v38 }
 0x2d9   : > { %1739 = vmatmul.mubr.f32.gmra.mxu0 %v6425_v10 }
 0x2da   : > { %6442 = vmatprep.mubr.msk.f32.mxu0 %vm799_vm3, %v6428_v9 }
 0x2dd   : > { %1744 = vmatmul.mubr.f32.gmra.mxu0 %v6427_v12 }
 0x2de   : > { %6443 = vmatprep.mubr.msk.f32.mxu0 %vm799_vm3, %v6430_v6 }
 0x2e1   : > { %1749 = vmatmul.mubr.f32.gmra.mxu0 %v6429_v14 }
 0x2e2   : > { %6444 = vmatprep.mubr.msk.f32.mxu0 %vm799_vm3, %v6432_v4 }
 0x2e5   : > { %1754 = vmatmul.mubr.f32.gmra.mxu0 %v6431_v16 }
 0x2e6   : > { %6445 = vmatprep.mubr.msk.f32.mxu0 %vm799_vm3, %v6434_v2 }
 0x2e9   : > { %1759 = vmatmul.mubr.f32.gmra.mxu0 %v6433_v19 }
 0x2ea   : > { %6446 = vmatprep.mubr.msk.f32.mxu0 %vm799_vm3, %v6436_v63 }
 0x2ed   : > { %1764 = vmatmul.mubr.f32.gmra.mxu0 %v6435_v20 }
 0x2ee   : > { %6447 = vmatprep.mubr.msk.f32.mxu0 %vm799_vm3, %v6438_v21 }
 0x2f1   : > { %1769 = vmatmul.mubr.f32.gmra.mxu0 %v6437_v22 }
 0x321   : > { %v7369_v24 = vpop.f32.mrf.mxu0 }
 0x323   : > { %v8945_v26 = vpop.f32.mrf.mxu0 }
 0x329   : > { %v7372_v27 = vpop.f32.mrf.mxu0 }
 0x32b   : > { %v8947_v28 = vpop.f32.mrf.mxu0 }
 0x331   : > { %v7375_v29 = vpop.f32.mrf.mxu0 }
 0x333   : > { %v8949_v30 = vpop.f32.mrf.mxu0 }
 0x339   : > { %v7378_v32 = vpop.f32.mrf.mxu0 }
 0x33b   : > { %v8951_v34 = vpop.f32.mrf.mxu0 }
 0x33d   : > { %v7385_v36 = vpop.f32.mrf.mxu0 }
 0x33e   : > { %v1309_v41 = vadd.f32 %v7385_v36, %v7369_v24 }
 0x33f   : > { %v8953_v45 = vpop.f32.mrf.mxu0 }
 0x341   : > { %v7388_v48 = vpop.f32.mrf.mxu0 }
 0x342   : > { %v1319_v53 = vadd.f32 %v7388_v48, %v7372_v27 }
 0x343   : > { %v8955_v57 = vpop.f32.mrf.mxu0 }
 0x345   : > { %v7391_v60 = vpop.f32.mrf.mxu0 }
 0x346   : > { %v1329_v62 = vadd.f32 %v7391_v60, %v7375_v29 }
 0x347   : > { %v8957_v56 = vpop.f32.mrf.mxu0 }
 0x349   : > { %v7394_v31 = vpop.f32.mrf.mxu0 }
 0x34a   : > { %v1339_v38 = vadd.f32 %v7394_v31, %v7378_v32 }
 0x34b   : > { %v8959_v10 = vpop.f32.mrf.mxu0 }
 0x35b   : > { %v7401_v9 = vpop.f32.mrf.mxu0 }
 0x35c   : > { %v8961_v12 = vadd.f32 %v7401_v9, %v1309_v41  ;;  %v6459_v9 = vld [vmem:[%s10707_s3 + $0x208] sm:$0xff] }
 0x35d   : > { %v8963_v6 = vpop.f32.mrf.mxu0 }
 0x363   : > { %v7404_v14 = vpop.f32.mrf.mxu0 }
 0x364   : > { %v8965_v4 = vadd.f32 %v7404_v14, %v1319_v53 }
 0x365   : > { %v8967_v16 = vpop.f32.mrf.mxu0 }
 0x36b   : > { %v7407_v2 = vpop.f32.mrf.mxu0 }
 0x36c   : > { %v8969_v19 = vadd.f32 %v7407_v2, %v1329_v62 }
 0x36d   : > { %v8971_v63 = vpop.f32.mrf.mxu0 }
 0x373   : > { %v7410_v20 = vpop.f32.mrf.mxu0 }
 0x374   : > { %v8973_v21 = vadd.f32 %v7410_v20, %v1339_v38  ;;  %v6458_v20 = vld [vmem:[%s10707_s3 + $0x200] sm:$0xff] }
 0x375   : > { %v8975_v22 = vpop.f32.mrf.mxu0 }
 0x395   : > { %v1735_v23 = vpop.f32.mrf.mxu0 }
 0x396   : > { %7415 = vmatprep.mubr.msk.f32.mxu1 %vm1083_vm4, %v1735_v23  ;;  %v6461_v23 = vld [vmem:[%s10707_s3 + $0x218] sm:$0xff] }
 0x397   : > { %v1737_v25 = vpop.f32.mrf.mxu0 }
 0x398   : > { %v6460_v25 = vld [vmem:[%s10707_s3 + $0x210] sm:$0xff] }
 0x399   : > { %v1740_v24 = vpop.f32.mrf.mxu0 }
 0x39a   : > { %7416 = vmatmul.mubr.msk.f32.vlgmr.msra.gmra.mxu1 %vm1083_vm4, %v1740_v24  ;;  %v6463_v24 = vld [vmem:[%s10707_s3 + $0x228] sm:$0xff] }
 0x39b   : > { %1956 = vmatpush1.msra.mxu1 %v8336_v37  ;;  %v1742_v27 = vpop.f32.mrf.mxu0 }
 0x39c   : > { %1957 = vmatprep.subr.mxu1 %v8100_v1  ;;  %v6462_v27 = vld [vmem:[%s10707_s3 + $0x220] sm:$0xff] }
 0x39d   : > { %1958 = vmatpush1.msra.mxu1 %v8341_v40  ;;  %v1745_v29 = vpop.f32.mrf.mxu0 }
 0x39e   : > { %1959 = vmatprep.subr.mxu1 %v8100_v1  ;;  %7418 = vmatprep.mubr.msk.f32.mxu1 %vm1083_vm4, %v1745_v29  ;;  %v6465_v29 = vld [vmem:[%s10707_s3 + $0x238] sm:$0xff] }
 0x39f   : > { %1960 = vmatpush1.msra.mxu1 %v8346_v43  ;;  %v1747_v32 = vpop.f32.mrf.mxu0 }
 0x3a0   : > { %1961 = vmatprep.subr.mxu1 %v8100_v1  ;;  %v6464_v32 = vld [vmem:[%s10707_s3 + $0x230] sm:$0xff] }
 0x3a1   : > { %1962 = vmatpush1.msra.mxu1 %v8353_v46  ;;  %v1750_v36 = vpop.f32.mrf.mxu0 }
 0x3a2   : > { %1963 = vmatprep.subr.mxu1 %v8100_v1  ;;  %7419 = vmatmul.mubr.msk.f32.gmra.mxu1 %vm1083_vm4, %v1750_v36  ;;  %v6467_v36 = vld [vmem:[%s10707_s3 + $0x248] sm:$0xff] }
 0x3a3   : > { %1964 = vmatpush1.msra.mxu1 %v8358_v49  ;;  %v1752_v41 = vpop.f32.mrf.mxu0 }
 0x3a4   : > { %1965 = vmatprep.subr.mxu1 %v8100_v1  ;;  %v6466_v41 = vld [vmem:[%s10707_s3 + $0x240] sm:$0xff] }
 0x3a5   : > { %1966 = vmatpush1.msra.mxu1 %v8365_v52  ;;  %v1755_v48 = vpop.f32.mrf.mxu0 }
 0x3a6   : > { %1967 = vmatprep.subr.mxu1 %v8100_v1  ;;  %7421 = vmatprep.mubr.msk.f32.mxu1 %vm1083_vm4, %v1755_v48  ;;  %v6469_v48 = vld [vmem:[%s10707_s3 + $0x258] sm:$0xff] }
 0x3a7   : > { %1968 = vmatpush1.msra.mxu1 %v8370_v55  ;;  %v1757_v53 = vpop.f32.mrf.mxu0 }
 0x3a8   : > { %1969 = vmatprep.subr.mxu1 %v8100_v1  ;;  %v6468_v53 = vld [vmem:[%s10707_s3 + $0x250] sm:$0xff] }
 0x3a9   : > { %1970 = vmatpush1.msra.mxu1 %v8377_v58  ;;  %v1760_v60 = vpop.f32.mrf.mxu0 }
 0x3aa   : > { %1971 = vmatprep.subr.mxu1 %v8100_v1  ;;  %7422 = vmatmul.mubr.msk.f32.gmra.mxu1 %vm1083_vm4, %v1760_v60  ;;  %v6471_v60 = vld [vmem:[%s10707_s3 + $0x268] sm:$0xff] }
 0x3ab   : > { %1972 = vmatpush1.msra.mxu1 %v8383_v61  ;;  %v1762_v62 = vpop.f32.mrf.mxu0 }
 0x3ac   : > { %1973 = vmatprep.subr.mxu1 %v8100_v1  ;;  %v6470_v62 = vld [vmem:[%s10707_s3 + $0x260] sm:$0xff] }
 0x3ad   : > { %1974 = vmatpush1.msra.mxu1 %v8391_v3  ;;  %v1765_v31 = vpop.f32.mrf.mxu0 }
 0x3ae   : > { %1975 = vmatprep.subr.mxu1 %v8100_v1  ;;  %7424 = vmatprep.mubr.msk.f32.mxu1 %vm1083_vm4, %v1765_v31  ;;  %v6473_v31 = vld [vmem:[%s10707_s3 + $0x278] sm:$0xff] }
 0x3af   : > { %1976 = vmatpush1.msra.mxu1 %v8397_v8  ;;  %v1767_v38 = vpop.f32.mrf.mxu0 }
 0x3b0   : > { %1977 = vmatprep.subr.mxu1 %v8100_v1  ;;  %v6472_v38 = vld [vmem:[%s10707_s3 + $0x270] sm:$0xff] }
 0x3b1   : > { %1978 = vmatpush1.msra.mxu1 %v8403_v11  ;;  %v1770_v14 = vpop.f32.mrf.mxu0 }
 0x3b2   : > { %1979 = vmatprep.subr.mxu1 %v8100_v1  ;;  %7425 = vmatmul.mubr.msk.f32.gmra.mxu1 %vm1083_vm4, %v1770_v14  ;;  %v6483_v14 = vld [vmem:[%s10708_s4 + $0x40] sm:$0xff] }
 0x3b3   : > { %1980 = vmatpush1.msra.mxu1 %v8409_v13  ;;  %v1772_v2 = vpop.f32.mrf.mxu0  ;;  %6475 = vmatprep.mubr.msk.f32.mxu1 %vm799_vm3, %v6459_v9  ;;  %v6484_v9 = vld [vmem:[%s10708_s4 + $0x48] sm:$0xff] }
 0x3b4   : > { %1981 = vmatprep.subr.mxu1 %v8100_v1  ;;  %7427 = vmatprep.subr.mxu0 %v6484_v9 }
 0x3b5   : > { %1982 = vmatpush1.msra.mxu1 %v8415_v15  ;;  %7428 = vmatpush3.msra.mxu0 %v6484_v9 }
 0x3b6   : > { %1983 = vmatprep.subr.mxu1 %v8100_v1  ;;  %7429 = vmatprep.subr.mxu0 %v6483_v14 }
 0x3b7   : > { %1984 = vmatpush1.msra.mxu1 %v8419_v17  ;;  %7430 = vmatpush3.msra.mxu0 %v6483_v14 }
 0x3b8   : > { %1985 = vmatprep.subr.mxu1 %v8100_v1  ;;  %2241 = vmatprep.subr.mxu0 %v8100_v1 }
 0x3b9   : > { %1986 = vmatpush1.msra.mxu1 %v8423_v18 }
 0x3ba   : > { %1993 = vmatprep.subr.mxu1 %v8100_v1 }
 0x3bb   : > { %6474 = vmatpush2.msk.msra.mxu1 %vm540_vm0, %v8432_v33 }
 0x3bc   : > { %1995 = vmatprep.subr.mxu1 %v8100_v1 }
 0x3bd   : > { %1996 = vmatpush2.msra.mxu1 %v8435_v35 }
 0x3be   : > { %1997 = vmatprep.subr.mxu1 %v8100_v1 }
 0x3bf   : > { %1998 = vmatpush2.msra.mxu1 %v8441_v39 }
 0x3c0   : > { %1999 = vmatprep.subr.mxu1 %v8100_v1 }
 0x3c1   : > { %2000 = vmatpush2.msra.mxu1 %v8446_v42 }
 0x3c2   : > { %2001 = vmatprep.subr.mxu1 %v8100_v1 }
 0x3c3   : > { %2002 = vmatpush2.msra.mxu1 %v8451_v47 }
 0x3c4   : > { %2003 = vmatprep.subr.mxu1 %v8100_v1 }
 0x3c5   : > { %2004 = vmatpush2.msra.mxu1 %v8456_v51 }
 0x3c6   : > { %2005 = vmatprep.subr.mxu1 %v8100_v1 }
 0x3c7   : > { %2006 = vmatpush2.msra.mxu1 %v8462_v54 }
 0x3c8   : > { %2007 = vmatprep.subr.mxu1 %v8100_v1 }
 0x3c9   : > { %2008 = vmatpush2.msra.mxu1 %v8468_v59 }
 0x3ca   : > { %2009 = vmatprep.subr.mxu1 %v8100_v1 }
 0x3cb   : > { %2010 = vmatpush2.msra.mxu1 %v8474_v0 }
 0x3cc   : > { %2011 = vmatprep.subr.mxu1 %v8100_v1 }
 0x3cd   : > { %2012 = vmatpush2.msra.mxu1 %v8480_v5 }
 0x3ce   : > { %2013 = vmatprep.subr.mxu1 %v8100_v1 }
 0x3cf   : > { %2014 = vmatpush2.msra.mxu1 %v8486_v7 }
 0x3d0   : > { %2015 = vmatprep.subr.mxu1 %v8100_v1 }
 0x3d1   : > { %2016 = vmatpush2.msra.mxu1 %v8490_v50 }
 0x3d2   : > { %2017 = vmatprep.subr.mxu1 %v8100_v1 }
 0x3d3   : > { %2018 = vmatpush2.msra.mxu1 %v8494_v44 }
 0x3d4   : > { %2020 = vmatmul.mubr.f32.vlgmr.msra.gmra.mxu1 %v6458_v20 }
 0x3d5   : > { %6476 = vmatprep.mubr.msk.f32.mxu1 %vm799_vm3, %v6461_v23 }
 0x3d8   : > { %2025 = vmatmul.mubr.f32.gmra.mxu1 %v6460_v25 }
 0x3d9   : > { %6477 = vmatprep.mubr.msk.f32.mxu1 %vm799_vm3, %v6463_v24 }
 0x3dc   : > { %2030 = vmatmul.mubr.f32.gmra.mxu1 %v6462_v27 }
 0x3dd   : > { %6478 = vmatprep.mubr.msk.f32.mxu1 %vm799_vm3, %v6465_v29 }
 0x3e0   : > { %2035 = vmatmul.mubr.f32.gmra.mxu1 %v6464_v32 }
 0x3e1   : > { %6479 = vmatprep.mubr.msk.f32.mxu1 %vm799_vm3, %v6467_v36 }
 0x3e4   : > { %2040 = vmatmul.mubr.f32.gmra.mxu1 %v6466_v41  ;;  %v1334_v41 = vadd.f32 %v8959_v10, %v8951_v34 }
 0x3e5   : > { %6480 = vmatprep.mubr.msk.f32.mxu1 %vm799_vm3, %v6469_v48 }
 0x3e8   : > { %2045 = vmatmul.mubr.f32.gmra.mxu1 %v6468_v53 }
 0x3e9   : > { %6481 = vmatprep.mubr.msk.f32.mxu1 %vm799_vm3, %v6471_v60 }
 0x3ec   : > { %2050 = vmatmul.mubr.f32.gmra.mxu1 %v6470_v62 }
 0x3ed   : > { %6482 = vmatprep.mubr.msk.f32.mxu1 %vm799_vm3, %v6473_v31 }
 0x3f0   : > { %2055 = vmatmul.mubr.f32.gmra.mxu1 %v6472_v38 }
 0x45a   : > { %v7417_v2 = vpop.f32.mrf.mxu1 }
 0x45b   : > { %v9107_v20 = vadd.f32 %v7417_v2, %v8961_v12  ;;  %v1626_v12 = vadd.f32 %v8975_v22, %v1334_v41 }
 0x45c   : > { %v9109_v23 = vpop.f32.mrf.mxu1 }
 0x462   : > { %v7420_v25 = vpop.f32.mrf.mxu1 }
 0x463   : > { %v9112_v24 = vadd.f32 %v7420_v25, %v8965_v4 }
 0x464   : > { %v9114_v27 = vpop.f32.mrf.mxu1 }
 0x46a   : > { %v7423_v29 = vpop.f32.mrf.mxu1 }
 0x46b   : > { %v9117_v32 = vadd.f32 %v7423_v29, %v8969_v19 }
 0x46c   : > { %v9119_v36 = vpop.f32.mrf.mxu1 }
 0x472   : > { %v7426_v48 = vpop.f32.mrf.mxu1 }
 0x473   : > { %v9125_v53 = vadd.f32 %v7426_v48, %v8973_v21  ;;  %v6494_v48 = vld [vmem:[%s10707_s3 + $0x288] sm:$0xff] }
 0x474   : > { %v1897_v60 = vpop.f32.mrf.mxu1 }
 0x475   : > { %v9127_v4 = vadd.f32 %v1897_v60, %v1626_v12 }
 0x494   : > { %v2021_v62 = vpop.f32.mrf.mxu1 }
 0x495   : > { %7431 = vmatprep.mubr.msk.f32.mxu0 %vm1083_vm4, %v2021_v62  ;;  %v6493_v62 = vld [vmem:[%s10707_s3 + $0x280] sm:$0xff] }
 0x496   : > { %v2023_v31 = vpop.f32.mrf.mxu1 }
 0x497   : > { %v6496_v31 = vld [vmem:[%s10707_s3 + $0x298] sm:$0xff] }
 0x498   : > { %v2026_v19 = vpop.f32.mrf.mxu1 }
 0x499   : > { %7432 = vmatmul.mubr.msk.f32.vlgmr.msra.gmra.mxu0 %vm1083_vm4, %v2026_v19  ;;  %v6495_v19 = vld [vmem:[%s10707_s3 + $0x290] sm:$0xff] }
 0x49a   : > { %2242 = vmatpush1.msra.mxu0 %v8336_v37  ;;  %v2028_v38 = vpop.f32.mrf.mxu1 }
 0x49b   : > { %2243 = vmatprep.subr.mxu0 %v8100_v1  ;;  %v6498_v38 = vld [vmem:[%s10707_s3 + $0x2a8] sm:$0xff] }
 0x49c   : > { %2244 = vmatpush1.msra.mxu0 %v8341_v40  ;;  %v2031_v34 = vpop.f32.mrf.mxu1 }
 0x49d   : > { %2245 = vmatprep.subr.mxu0 %v8100_v1  ;;  %7434 = vmatprep.mubr.msk.f32.mxu0 %vm1083_vm4, %v2031_v34  ;;  %v6497_v34 = vld [vmem:[%s10707_s3 + $0x2a0] sm:$0xff] }
 0x49e   : > { %2246 = vmatpush1.msra.mxu0 %v8346_v43  ;;  %v2033_v10 = vpop.f32.mrf.mxu1 }
 0x49f   : > { %2247 = vmatprep.subr.mxu0 %v8100_v1  ;;  %v6500_v10 = vld [vmem:[%s10707_s3 + $0x2b8] sm:$0xff] }
 0x4a0   : > { %2248 = vmatpush1.msra.mxu0 %v8353_v46  ;;  %v2036_v21 = vpop.f32.mrf.mxu1 }
 0x4a1   : > { %2249 = vmatprep.subr.mxu0 %v8100_v1  ;;  %7435 = vmatmul.mubr.msk.f32.gmra.mxu0 %vm1083_vm4, %v2036_v21  ;;  %v6499_v21 = vld [vmem:[%s10707_s3 + $0x2b0] sm:$0xff] }
 0x4a2   : > { %2250 = vmatpush1.msra.mxu0 %v8358_v49  ;;  %v2038_v22 = vpop.f32.mrf.mxu1 }
 0x4a3   : > { %2251 = vmatprep.subr.mxu0 %v8100_v1  ;;  %v6502_v22 = vld [vmem:[%s10707_s3 + $0x2c8] sm:$0xff] }
 0x4a4   : > { %2252 = vmatpush1.msra.mxu0 %v8365_v52  ;;  %v2041_v9 = vpop.f32.mrf.mxu1 }
 0x4a5   : > { %2253 = vmatprep.subr.mxu0 %v8100_v1  ;;  %7437 = vmatprep.mubr.msk.f32.mxu0 %vm1083_vm4, %v2041_v9  ;;  %v6501_v9 = vld [vmem:[%s10707_s3 + $0x2c0] sm:$0xff] }
 0x4a6   : > { %2254 = vmatpush1.msra.mxu0 %v8370_v55  ;;  %v2043_v14 = vpop.f32.mrf.mxu1 }
 0x4a7   : > { %2255 = vmatprep.subr.mxu0 %v8100_v1  ;;  %v6504_v14 = vld [vmem:[%s10707_s3 + $0x2d8] sm:$0xff] }
 0x4a8   : > { %2256 = vmatpush1.msra.mxu0 %v8377_v58  ;;  %v2046_v2 = vpop.f32.mrf.mxu1 }
 0x4a9   : > { %2257 = vmatprep.subr.mxu0 %v8100_v1  ;;  %7438 = vmatmul.mubr.msk.f32.gmra.mxu0 %vm1083_vm4, %v2046_v2  ;;  %v6503_v2 = vld [vmem:[%s10707_s3 + $0x2d0] sm:$0xff] }
 0x4aa   : > { %2258 = vmatpush1.msra.mxu0 %v8383_v61  ;;  %v2048_v25 = vpop.f32.mrf.mxu1 }
 0x4ab   : > { %2259 = vmatprep.subr.mxu0 %v8100_v1  ;;  %v6506_v25 = vld [vmem:[%s10707_s3 + $0x2e8] sm:$0xff] }
 0x4ac   : > { %2260 = vmatpush1.msra.mxu0 %v8391_v3  ;;  %v2051_v29 = vpop.f32.mrf.mxu1 }
 0x4ad   : > { %2261 = vmatprep.subr.mxu0 %v8100_v1  ;;  %7440 = vmatprep.mubr.msk.f32.mxu0 %vm1083_vm4, %v2051_v29  ;;  %v6505_v29 = vld [vmem:[%s10707_s3 + $0x2e0] sm:$0xff] }
 0x4ae   : > { %2262 = vmatpush1.msra.mxu0 %v8397_v8  ;;  %v2053_v41 = vpop.f32.mrf.mxu1 }
 0x4af   : > { %2263 = vmatprep.subr.mxu0 %v8100_v1  ;;  %v6508_v41 = vld [vmem:[%s10707_s3 + $0x2f8] sm:$0xff] }
 0x4b0   : > { %2264 = vmatpush1.msra.mxu0 %v8403_v11  ;;  %v2056_v12 = vpop.f32.mrf.mxu1 }
 0x4b1   : > { %2265 = vmatprep.subr.mxu0 %v8100_v1  ;;  %7441 = vmatmul.mubr.msk.f32.gmra.mxu0 %vm1083_vm4, %v2056_v12  ;;  %v6519_v12 = vld [vmem:[%s10708_s4 + $0x58] sm:$0xff] }
 0x4b2   : > { %2266 = vmatpush1.msra.mxu0 %v8409_v13  ;;  %v2058_v60 = vpop.f32.mrf.mxu1  ;;  %6510 = vmatprep.mubr.msk.f32.mxu0 %vm799_vm3, %v6494_v48  ;;  %v6507_v48 = vld [vmem:[%s10707_s3 + $0x2f0] sm:$0xff] }
 0x4b3   : > { %2267 = vmatprep.subr.mxu0 %v8100_v1  ;;  %v6518_v60 = vld [vmem:[%s10708_s4 + $0x50] sm:$0xff]  ;;  %7443 = vmatprep.subr.mxu1 %v6519_v12 }
 0x4b4   : > { %2268 = vmatpush1.msra.mxu0 %v8415_v15  ;;  %7444 = vmatpush3.msra.mxu1 %v6519_v12 }
 0x4b5   : > { %2269 = vmatprep.subr.mxu0 %v8100_v1  ;;  %7445 = vmatprep.subr.mxu1 %v6518_v60 }
 0x4b6   : > { %2270 = vmatpush1.msra.mxu0 %v8419_v17  ;;  %7446 = vmatpush3.msra.mxu1 %v6518_v60 }
 0x4b7   : > { %2271 = vmatprep.subr.mxu0 %v8100_v1  ;;  %2527 = vmatprep.subr.mxu1 %v8100_v1 }
 0x4b8   : > { %2272 = vmatpush1.msra.mxu0 %v8423_v18 }
 0x4b9   : > { %2279 = vmatprep.subr.mxu0 %v8100_v1 }
 0x4ba   : > { %6509 = vmatpush2.msk.msra.mxu0 %vm540_vm0, %v8432_v33 }
 0x4bb   : > { %2281 = vmatprep.subr.mxu0 %v8100_v1 }
 0x4bc   : > { %2282 = vmatpush2.msra.mxu0 %v8435_v35 }
 0x4bd   : > { %2283 = vmatprep.subr.mxu0 %v8100_v1 }
 0x4be   : > { %2284 = vmatpush2.msra.mxu0 %v8441_v39 }
 0x4bf   : > { %2285 = vmatprep.subr.mxu0 %v8100_v1 }
 0x4c0   : > { %2286 = vmatpush2.msra.mxu0 %v8446_v42 }
 0x4c1   : > { %2287 = vmatprep.subr.mxu0 %v8100_v1 }
 0x4c2   : > { %2288 = vmatpush2.msra.mxu0 %v8451_v47 }
 0x4c3   : > { %2289 = vmatprep.subr.mxu0 %v8100_v1 }
 0x4c4   : > { %2290 = vmatpush2.msra.mxu0 %v8456_v51 }
 0x4c5   : > { %2291 = vmatprep.subr.mxu0 %v8100_v1 }
 0x4c6   : > { %2292 = vmatpush2.msra.mxu0 %v8462_v54 }
 0x4c7   : > { %2293 = vmatprep.subr.mxu0 %v8100_v1 }
 0x4c8   : > { %2294 = vmatpush2.msra.mxu0 %v8468_v59 }
 0x4c9   : > { %2295 = vmatprep.subr.mxu0 %v8100_v1 }
 0x4ca   : > { %2296 = vmatpush2.msra.mxu0 %v8474_v0 }
 0x4cb   : > { %2297 = vmatprep.subr.mxu0 %v8100_v1 }
 0x4cc   : > { %2298 = vmatpush2.msra.mxu0 %v8480_v5 }
 0x4cd   : > { %2299 = vmatprep.subr.mxu0 %v8100_v1 }
 0x4ce   : > { %2300 = vmatpush2.msra.mxu0 %v8486_v7 }
 0x4cf   : > { %2301 = vmatprep.subr.mxu0 %v8100_v1 }
 0x4d0   : > { %2302 = vmatpush2.msra.mxu0 %v8490_v50 }
 0x4d1   : > { %2303 = vmatprep.subr.mxu0 %v8100_v1 }
 0x4d2   : > { %2304 = vmatpush2.msra.mxu0 %v8494_v44 }
 0x4d3   : > { %2306 = vmatmul.mubr.f32.vlgmr.msra.gmra.mxu0 %v6493_v62  ;;  %v1304_v62 = vadd.f32 %v8953_v45, %v8945_v26 }
 0x4d4   : > { %6511 = vmatprep.mubr.msk.f32.mxu0 %vm799_vm3, %v6496_v31 }
 0x4d5   : > { %v1620_v31 = vadd.f32 %v8963_v6, %v1304_v62 }
 0x4d7   : > { %2311 = vmatmul.mubr.f32.gmra.mxu0 %v6495_v19 }
 0x4d8   : > { %6512 = vmatprep.mubr.msk.f32.mxu0 %vm799_vm3, %v6498_v38  ;;  %v1906_v38 = vadd.f32 %v9109_v23, %v1620_v31 }
 0x4db   : > { %2316 = vmatmul.mubr.f32.gmra.mxu0 %v6497_v34 }
 0x4dc   : > { %6513 = vmatprep.mubr.msk.f32.mxu0 %vm799_vm3, %v6500_v10 }
 0x4df   : > { %2321 = vmatmul.mubr.f32.gmra.mxu0 %v6499_v21 }
 0x4e0   : > { %6514 = vmatprep.mubr.msk.f32.mxu0 %vm799_vm3, %v6502_v22  ;;  %v1314_v22 = vadd.f32 %v8955_v57, %v8947_v28 }
 0x4e3   : > { %2326 = vmatmul.mubr.f32.gmra.mxu0 %v6501_v9  ;;  %v1622_v9 = vadd.f32 %v8967_v16, %v1314_v22  ;;  %v6529_v22 = vld [vmem:[%s10707_s3 + $0x308] sm:$0xff] }
 0x4e4   : > { %6515 = vmatprep.mubr.msk.f32.mxu0 %vm799_vm3, %v6504_v14 }
 0x4e7   : > { %2331 = vmatmul.mubr.f32.gmra.mxu0 %v6503_v2  ;;  %v1908_v2 = vadd.f32 %v9114_v27, %v1622_v9 }
 0x4e8   : > { %6516 = vmatprep.mubr.msk.f32.mxu0 %vm799_vm3, %v6506_v25 }
 0x4eb   : > { %2336 = vmatmul.mubr.f32.gmra.mxu0 %v6505_v29 }
 0x4ec   : > { %6517 = vmatprep.mubr.msk.f32.mxu0 %vm799_vm3, %v6508_v41 }
 0x4ef   : > { %2341 = vmatmul.mubr.f32.gmra.mxu0 %v6507_v48 }
 0x559   : > { %v7433_v19 = vpop.f32.mrf.mxu0 }
 0x55a   : > { %v9263_v34 = vadd.f32 %v7433_v19, %v9107_v20  ;;  %v1324_v20 = vadd.f32 %v8957_v56, %v8949_v30 }
 0x55b   : > { %v2153_v10 = vpop.f32.mrf.mxu0 }
 0x55c   : > { %v9265_v21 = vadd.f32 %v2153_v10, %v1906_v38  ;;  %v1624_v23 = vadd.f32 %v8971_v63, %v1324_v20  ;;  %v6530_v20 = vld [vmem:[%s10707_s3 + $0x310] sm:$0xff] }
 0x55e   : > { %v1910_v29 = vadd.f32 %v9119_v36, %v1624_v23  ;;  %v6533_v23 = vld [vmem:[%s10707_s3 + $0x328] sm:$0xff] }
 0x561   : > { %v7436_v14 = vpop.f32.mrf.mxu0 }
 0x562   : > { %v9272_v26 = vadd.f32 %v7436_v14, %v9112_v24 }
 0x563   : > { %v2163_v45 = vpop.f32.mrf.mxu0 }
 0x564   : > { %v9274_v6 = vadd.f32 %v2163_v45, %v1908_v2  ;;  %v6528_v2 = vld [vmem:[%s10707_s3 + $0x300] sm:$0xff]  ;;  %v6531_v45 = vld [vmem:[%s10707_s3 + $0x318] sm:$0xff] }
 0x569   : > { %v7439_v25 = vpop.f32.mrf.mxu0 }
 0x56a   : > { %v9281_v28 = vadd.f32 %v7439_v25, %v9117_v32  ;;  %v6532_v25 = vld [vmem:[%s10707_s3 + $0x320] sm:$0xff] }
 0x56b   : > { %v2173_v57 = vpop.f32.mrf.mxu0 }
 0x56c   : > { %v9283_v16 = vadd.f32 %v2173_v57, %v1910_v29  ;;  %v6535_v29 = vld [vmem:[%s10707_s3 + $0x338] sm:$0xff]  ;;  %v6534_v57 = vld [vmem:[%s10707_s3 + $0x330] sm:$0xff] }
 0x571   : > { %v7442_v27 = vpop.f32.mrf.mxu0 }
 0x572   : > { %v9286_v24 = vadd.f32 %v7442_v27, %v9125_v53  ;;  %v6537_v27 = vld [vmem:[%s10707_s3 + $0x348] sm:$0xff] }
 0x573   : > { %v2183_v41 = vpop.f32.mrf.mxu0 }
 0x574   : > { %v9289_v48 = vadd.f32 %v2183_v41, %v9127_v4  ;;  %v6536_v41 = vld [vmem:[%s10707_s3 + $0x340] sm:$0xff] }
 0x593   : > { %v2307_v30 = vpop.f32.mrf.mxu0 }
 0x594   : > { %7447 = vmatprep.mubr.msk.f32.mxu1 %vm1083_vm4, %v2307_v30  ;;  %v6539_v30 = vld [vmem:[%s10707_s3 + $0x358] sm:$0xff] }
 0x595   : > { %v2309_v56 = vpop.f32.mrf.mxu0 }
 0x596   : > { %v6538_v56 = vld [vmem:[%s10707_s3 + $0x350] sm:$0xff] }
 0x597   : > { %v2312_v63 = vpop.f32.mrf.mxu0 }
 0x598   : > { %7448 = vmatmul.mubr.msk.f32.vlgmr.msra.gmra.mxu1 %vm1083_vm4, %v2312_v63  ;;  %v6541_v63 = vld [vmem:[%s10707_s3 + $0x368] sm:$0xff] }
 0x599   : > { %2528 = vmatpush1.msra.mxu1 %v8336_v37  ;;  %v2314_v32 = vpop.f32.mrf.mxu0 }
 0x59a   : > { %2529 = vmatprep.subr.mxu1 %v8100_v1  ;;  %v6540_v32 = vld [vmem:[%s10707_s3 + $0x360] sm:$0xff] }
 0x59b   : > { %2530 = vmatpush1.msra.mxu1 %v8341_v40  ;;  %v2317_v36 = vpop.f32.mrf.mxu0 }
 0x59c   : > { %2531 = vmatprep.subr.mxu1 %v8100_v1  ;;  %7450 = vmatprep.mubr.msk.f32.mxu1 %vm1083_vm4, %v2317_v36  ;;  %v6543_v36 = vld [vmem:[%s10707_s3 + $0x378] sm:$0xff] }
 0x59d   : > { %2532 = vmatpush1.msra.mxu1 %v8346_v43  ;;  %v2319_v53 = vpop.f32.mrf.mxu0 }
 0x59e   : > { %2533 = vmatprep.subr.mxu1 %v8100_v1  ;;  %v6542_v53 = vld [vmem:[%s10707_s3 + $0x370] sm:$0xff] }
 0x59f   : > { %2534 = vmatpush1.msra.mxu1 %v8353_v46  ;;  %v2322_v4 = vpop.f32.mrf.mxu0 }
 0x5a0   : > { %2535 = vmatprep.subr.mxu1 %v8100_v1  ;;  %7451 = vmatmul.mubr.msk.f32.gmra.mxu1 %vm1083_vm4, %v2322_v4  ;;  %v6554_v4 = vld [vmem:[%s10708_s4 + $0x68] sm:$0xff] }
 0x5a1   : > { %2536 = vmatpush1.msra.mxu1 %v8358_v49  ;;  %v2324_v12 = vpop.f32.mrf.mxu0  ;;  %7459 = vmatprep.subr.mxu0 %v6554_v4 }
 0x5a2   : > { %2537 = vmatprep.subr.mxu1 %v8100_v1  ;;  %v6553_v12 = vld [vmem:[%s10708_s4 + $0x60] sm:$0xff]  ;;  %7460 = vmatpush3.msra.mxu0 %v6554_v4 }
 0x5a3   : > { %2538 = vmatpush1.msra.mxu1 %v8365_v52  ;;  %v2327_v60 = vpop.f32.mrf.mxu0  ;;  %7461 = vmatprep.subr.mxu0 %v6553_v12 }
 0x5a4   : > { %2539 = vmatprep.subr.mxu1 %v8100_v1  ;;  %7453 = vmatprep.mubr.msk.f32.mxu1 %vm1083_vm4, %v2327_v60 }
 0x5a5   : > { %2540 = vmatpush1.msra.mxu1 %v8370_v55  ;;  %v2329_v62 = vpop.f32.mrf.mxu0  ;;  %7462 = vmatpush3.msra.mxu0 %v6553_v12  ;;  %v6563_v12 = vld [vmem:[%s10707_s3 + $0x380] sm:$0xff] }
 0x5a6   : > { %2541 = vmatprep.subr.mxu1 %v8100_v1  ;;  %2813 = vmatprep.subr.mxu0 %v8100_v1 }
 0x5a7   : > { %2542 = vmatpush1.msra.mxu1 %v8377_v58  ;;  %v2332_v31 = vpop.f32.mrf.mxu0 }
 0x5a8   : > { %2543 = vmatprep.subr.mxu1 %v8100_v1  ;;  %7454 = vmatmul.mubr.msk.f32.gmra.mxu1 %vm1083_vm4, %v2332_v31 }
 0x5a9   : > { %2544 = vmatpush1.msra.mxu1 %v8383_v61  ;;  %v2334_v19 = vpop.f32.mrf.mxu0 }
 0x5aa   : > { %2545 = vmatprep.subr.mxu1 %v8100_v1 }
 0x5ab   : > { %2546 = vmatpush1.msra.mxu1 %v8391_v3  ;;  %v2337_v38 = vpop.f32.mrf.mxu0 }
 0x5ac   : > { %2547 = vmatprep.subr.mxu1 %v8100_v1  ;;  %7456 = vmatprep.mubr.msk.f32.mxu1 %vm1083_vm4, %v2337_v38 }
 0x5ad   : > { %2548 = vmatpush1.msra.mxu1 %v8397_v8  ;;  %v2339_v10 = vpop.f32.mrf.mxu0 }
 0x5ae   : > { %2549 = vmatprep.subr.mxu1 %v8100_v1 }
 0x5af   : > { %2550 = vmatpush1.msra.mxu1 %v8403_v11  ;;  %v2342_v9 = vpop.f32.mrf.mxu0 }
 0x5b0   : > { %2551 = vmatprep.subr.mxu1 %v8100_v1  ;;  %7457 = vmatmul.mubr.msk.f32.gmra.mxu1 %vm1083_vm4, %v2342_v9 }
 0x5b1   : > { %2552 = vmatpush1.msra.mxu1 %v8409_v13  ;;  %v2344_v14 = vpop.f32.mrf.mxu0  ;;  %6545 = vmatprep.mubr.msk.f32.mxu1 %vm799_vm3, %v6529_v22 }
 0x5b2   : > { %2553 = vmatprep.subr.mxu1 %v8100_v1 }
 0x5b3   : > { %2554 = vmatpush1.msra.mxu1 %v8415_v15 }
 0x5b4   : > { %2555 = vmatprep.subr.mxu1 %v8100_v1 }
 0x5b5   : > { %2556 = vmatpush1.msra.mxu1 %v8419_v17 }
 0x5b6   : > { %2557 = vmatprep.subr.mxu1 %v8100_v1 }
 0x5b7   : > { %2558 = vmatpush1.msra.mxu1 %v8423_v18 }
 0x5b8   : > { %2565 = vmatprep.subr.mxu1 %v8100_v1 }
 0x5b9   : > { %6544 = vmatpush2.msk.msra.mxu1 %vm540_vm0, %v8432_v33 }
 0x5ba   : > { %2567 = vmatprep.subr.mxu1 %v8100_v1 }
 0x5bb   : > { %2568 = vmatpush2.msra.mxu1 %v8435_v35 }
 0x5bc   : > { %2569 = vmatprep.subr.mxu1 %v8100_v1 }
 0x5bd   : > { %2570 = vmatpush2.msra.mxu1 %v8441_v39 }
 0x5be   : > { %2571 = vmatprep.subr.mxu1 %v8100_v1 }
 0x5bf   : > { %2572 = vmatpush2.msra.mxu1 %v8446_v42 }
 0x5c0   : > { %2573 = vmatprep.subr.mxu1 %v8100_v1 }
 0x5c1   : > { %2574 = vmatpush2.msra.mxu1 %v8451_v47 }
 0x5c2   : > { %2575 = vmatprep.subr.mxu1 %v8100_v1 }
 0x5c3   : > { %2576 = vmatpush2.msra.mxu1 %v8456_v51 }
 0x5c4   : > { %2577 = vmatprep.subr.mxu1 %v8100_v1 }
 0x5c5   : > { %2578 = vmatpush2.msra.mxu1 %v8462_v54 }
 0x5c6   : > { %2579 = vmatprep.subr.mxu1 %v8100_v1 }
 0x5c7   : > { %2580 = vmatpush2.msra.mxu1 %v8468_v59 }
 0x5c8   : > { %2581 = vmatprep.subr.mxu1 %v8100_v1 }
 0x5c9   : > { %2582 = vmatpush2.msra.mxu1 %v8474_v0 }
 0x5ca   : > { %2583 = vmatprep.subr.mxu1 %v8100_v1 }
 0x5cb   : > { %2584 = vmatpush2.msra.mxu1 %v8480_v5 }
 0x5cc   : > { %2585 = vmatprep.subr.mxu1 %v8100_v1 }
 0x5cd   : > { %2586 = vmatpush2.msra.mxu1 %v8486_v7 }
 0x5ce   : > { %2587 = vmatprep.subr.mxu1 %v8100_v1 }
 0x5cf   : > { %2588 = vmatpush2.msra.mxu1 %v8490_v50 }
 0x5d0   : > { %2589 = vmatprep.subr.mxu1 %v8100_v1 }
 0x5d1   : > { %2590 = vmatpush2.msra.mxu1 %v8494_v44 }
 0x5d2   : > { %2592 = vmatmul.mubr.f32.vlgmr.msra.gmra.mxu1 %v6528_v2 }
 0x5d3   : > { %6546 = vmatprep.mubr.msk.f32.mxu1 %vm799_vm3, %v6531_v45 }
 0x5d6   : > { %2597 = vmatmul.mubr.f32.gmra.mxu1 %v6530_v20 }
 0x5d7   : > { %6547 = vmatprep.mubr.msk.f32.mxu1 %vm799_vm3, %v6533_v23 }
 0x5da   : > { %2602 = vmatmul.mubr.f32.gmra.mxu1 %v6532_v25 }
 0x5db   : > { %6548 = vmatprep.mubr.msk.f32.mxu1 %vm799_vm3, %v6535_v29 }
 0x5de   : > { %2607 = vmatmul.mubr.f32.gmra.mxu1 %v6534_v57 }
 0x5df   : > { %6549 = vmatprep.mubr.msk.f32.mxu1 %vm799_vm3, %v6537_v27 }
 0x5e2   : > { %2612 = vmatmul.mubr.f32.gmra.mxu1 %v6536_v41 }
 0x5e3   : > { %6550 = vmatprep.mubr.msk.f32.mxu1 %vm799_vm3, %v6539_v30 }
 0x5e6   : > { %2617 = vmatmul.mubr.f32.gmra.mxu1 %v6538_v56 }
 0x5e7   : > { %6551 = vmatprep.mubr.msk.f32.mxu1 %vm799_vm3, %v6541_v63 }
 0x5ea   : > { %2622 = vmatmul.mubr.f32.gmra.mxu1 %v6540_v32 }
 0x5eb   : > { %6552 = vmatprep.mubr.msk.f32.mxu1 %vm799_vm3, %v6543_v36  ;;  %v6564_v36 = vld [vmem:[%s10707_s3 + $0x388] sm:$0xff] }
 0x5ee   : > { %2627 = vmatmul.mubr.f32.gmra.mxu1 %v6542_v53 }
 0x658   : > { %v7449_v60 = vpop.f32.mrf.mxu1 }
 0x659   : > { %v9421_v62 = vadd.f32 %v7449_v60, %v9263_v34  ;;  %v6566_v60 = vld [vmem:[%s10707_s3 + $0x398] sm:$0xff] }
 0x65a   : > { %v2439_v31 = vpop.f32.mrf.mxu1 }
 0x65b   : > { %v9424_v19 = vadd.f32 %v2439_v31, %v9265_v21  ;;  %v6565_v31 = vld [vmem:[%s10707_s3 + $0x390] sm:$0xff] }
 0x660   : > { %v7452_v38 = vpop.f32.mrf.mxu1 }
 0x661   : > { %v9427_v10 = vadd.f32 %v7452_v38, %v9272_v26  ;;  %v6568_v38 = vld [vmem:[%s10707_s3 + $0x3a8] sm:$0xff] }
 0x662   : > { %v2449_v22 = vpop.f32.mrf.mxu1 }
 0x663   : > { %v9430_v9 = vadd.f32 %v2449_v22, %v9274_v6  ;;  %v6567_v22 = vld [vmem:[%s10707_s3 + $0x3a0] sm:$0xff] }
 0x668   : > { %v7455_v14 = vpop.f32.mrf.mxu1 }
 0x669   : > { %v9433_v2 = vadd.f32 %v7455_v14, %v9281_v28  ;;  %v6570_v14 = vld [vmem:[%s10707_s3 + $0x3b8] sm:$0xff] }
 0x66a   : > { %v2459_v45 = vpop.f32.mrf.mxu1 }
 0x66b   : > { %v9436_v34 = vadd.f32 %v2459_v45, %v9283_v16  ;;  %v6569_v45 = vld [vmem:[%s10707_s3 + $0x3b0] sm:$0xff] }
 0x670   : > { %v7458_v20 = vpop.f32.mrf.mxu1 }
 0x671   : > { %v9439_v21 = vadd.f32 %v7458_v20, %v9286_v24  ;;  %v6572_v20 = vld [vmem:[%s10707_s3 + $0x3c8] sm:$0xff] }
 0x672   : > { %v2469_v23 = vpop.f32.mrf.mxu1 }
 0x673   : > { %v9442_v26 = vadd.f32 %v2469_v23, %v9289_v48  ;;  %v6571_v23 = vld [vmem:[%s10707_s3 + $0x3c0] sm:$0xff] }
 0x692   : > { %v2593_v25 = vpop.f32.mrf.mxu1 }
 0x693   : > { %7463 = vmatprep.mubr.msk.f32.mxu0 %vm1083_vm4, %v2593_v25  ;;  %v6574_v25 = vld [vmem:[%s10707_s3 + $0x3d8] sm:$0xff] }
 0x694   : > { %v2595_v6 = vpop.f32.mrf.mxu1 }
 0x695   : > { %v6573_v6 = vld [vmem:[%s10707_s3 + $0x3d0] sm:$0xff] }
 0x696   : > { %v2598_v29 = vpop.f32.mrf.mxu1 }
 0x697   : > { %7464 = vmatmul.mubr.msk.f32.vlgmr.msra.gmra.mxu0 %vm1083_vm4, %v2598_v29  ;;  %v6576_v29 = vld [vmem:[%s10707_s3 + $0x3e8] sm:$0xff] }
 0x698   : > { %2814 = vmatpush1.msra.mxu0 %v8336_v37  ;;  %v2600_v28 = vpop.f32.mrf.mxu1 }
 0x699   : > { %2815 = vmatprep.subr.mxu0 %v8100_v1  ;;  %v6575_v28 = vld [vmem:[%s10707_s3 + $0x3e0] sm:$0xff] }
 0x69a   : > { %2816 = vmatpush1.msra.mxu0 %v8341_v40  ;;  %v2603_v16 = vpop.f32.mrf.mxu1 }
 0x69b   : > { %2817 = vmatprep.subr.mxu0 %v8100_v1  ;;  %7466 = vmatprep.mubr.msk.f32.mxu0 %vm1083_vm4, %v2603_v16  ;;  %v6578_v16 = vld [vmem:[%s10707_s3 + $0x3f8] sm:$0xff] }
 0x69c   : > { %2818 = vmatpush1.msra.mxu0 %v8346_v43  ;;  %v2605_v24 = vpop.f32.mrf.mxu1 }
 0x69d   : > { %2819 = vmatprep.subr.mxu0 %v8100_v1  ;;  %v6577_v24 = vld [vmem:[%s10707_s3 + $0x3f0] sm:$0xff] }
 0x69e   : > { %2820 = vmatpush1.msra.mxu0 %v8353_v46  ;;  %v2608_v48 = vpop.f32.mrf.mxu1 }
 0x69f   : > { %2821 = vmatprep.subr.mxu0 %v8100_v1  ;;  %7467 = vmatmul.mubr.msk.f32.gmra.mxu0 %vm1083_vm4, %v2608_v48  ;;  %v6589_v48 = vld [vmem:[%s10708_s4 + $0x78] sm:$0xff] }
 0x6a0   : > { %2822 = vmatpush1.msra.mxu0 %v8358_v49  ;;  %v2610_v57 = vpop.f32.mrf.mxu1  ;;  %7475 = vmatprep.subr.mxu1 %v6589_v48 }
 0x6a1   : > { %2823 = vmatprep.subr.mxu0 %v8100_v1  ;;  %v6588_v57 = vld [vmem:[%s10708_s4 + $0x70] sm:$0xff]  ;;  %7476 = vmatpush3.msra.mxu1 %v6589_v48 }
 0x6a2   : > { %2824 = vmatpush1.msra.mxu0 %v8365_v52  ;;  %v2613_v27 = vpop.f32.mrf.mxu1  ;;  %7477 = vmatprep.subr.mxu1 %v6588_v57 }
 0x6a3   : > { %2825 = vmatprep.subr.mxu0 %v8100_v1  ;;  %7469 = vmatprep.mubr.msk.f32.mxu0 %vm1083_vm4, %v2613_v27 }
 0x6a4   : > { %2826 = vmatpush1.msra.mxu0 %v8370_v55  ;;  %v2615_v41 = vpop.f32.mrf.mxu1  ;;  %7478 = vmatpush3.msra.mxu1 %v6588_v57 }
 0x6a5   : > { %2827 = vmatprep.subr.mxu0 %v8100_v1  ;;  %3099 = vmatprep.subr.mxu1 %v8100_v1 }
 0x6a6   : > { %2828 = vmatpush1.msra.mxu0 %v8377_v58  ;;  %v2618_v30 = vpop.f32.mrf.mxu1 }
 0x6a7   : > { %2829 = vmatprep.subr.mxu0 %v8100_v1  ;;  %7470 = vmatmul.mubr.msk.f32.gmra.mxu0 %vm1083_vm4, %v2618_v30 }
 0x6a8   : > { %2830 = vmatpush1.msra.mxu0 %v8383_v61  ;;  %v2620_v56 = vpop.f32.mrf.mxu1 }
 0x6a9   : > { %2831 = vmatprep.subr.mxu0 %v8100_v1 }
 0x6aa   : > { %2832 = vmatpush1.msra.mxu0 %v8391_v3  ;;  %v2623_v63 = vpop.f32.mrf.mxu1 }
 0x6ab   : > { %2833 = vmatprep.subr.mxu0 %v8100_v1  ;;  %7472 = vmatprep.mubr.msk.f32.mxu0 %vm1083_vm4, %v2623_v63 }
 0x6ac   : > { %2834 = vmatpush1.msra.mxu0 %v8397_v8  ;;  %v2625_v32 = vpop.f32.mrf.mxu1 }
 0x6ad   : > { %2835 = vmatprep.subr.mxu0 %v8100_v1 }
 0x6ae   : > { %2836 = vmatpush1.msra.mxu0 %v8403_v11  ;;  %v2628_v53 = vpop.f32.mrf.mxu1 }
 0x6af   : > { %2837 = vmatprep.subr.mxu0 %v8100_v1  ;;  %7473 = vmatmul.mubr.msk.f32.gmra.mxu0 %vm1083_vm4, %v2628_v53 }
 0x6b0   : > { %2838 = vmatpush1.msra.mxu0 %v8409_v13  ;;  %v2630_v4 = vpop.f32.mrf.mxu1  ;;  %6580 = vmatprep.mubr.msk.f32.mxu0 %vm799_vm3, %v6564_v36 }
 0x6b1   : > { %2839 = vmatprep.subr.mxu0 %v8100_v1 }
 0x6b2   : > { %2840 = vmatpush1.msra.mxu0 %v8415_v15 }
 0x6b3   : > { %2841 = vmatprep.subr.mxu0 %v8100_v1 }
 0x6b4   : > { %2842 = vmatpush1.msra.mxu0 %v8419_v17 }
 0x6b5   : > { %2843 = vmatprep.subr.mxu0 %v8100_v1 }
 0x6b6   : > { %2844 = vmatpush1.msra.mxu0 %v8423_v18 }
 0x6b7   : > { %2851 = vmatprep.subr.mxu0 %v8100_v1 }
 0x6b8   : > { %6579 = vmatpush2.msk.msra.mxu0 %vm540_vm0, %v8432_v33 }
 0x6b9   : > { %2853 = vmatprep.subr.mxu0 %v8100_v1 }
 0x6ba   : > { %2854 = vmatpush2.msra.mxu0 %v8435_v35 }
 0x6bb   : > { %2855 = vmatprep.subr.mxu0 %v8100_v1 }
 0x6bc   : > { %2856 = vmatpush2.msra.mxu0 %v8441_v39 }
 0x6bd   : > { %2857 = vmatprep.subr.mxu0 %v8100_v1 }
 0x6be   : > { %2858 = vmatpush2.msra.mxu0 %v8446_v42 }
 0x6bf   : > { %2859 = vmatprep.subr.mxu0 %v8100_v1 }
 0x6c0   : > { %2860 = vmatpush2.msra.mxu0 %v8451_v47 }
 0x6c1   : > { %2861 = vmatprep.subr.mxu0 %v8100_v1 }
 0x6c2   : > { %2862 = vmatpush2.msra.mxu0 %v8456_v51 }
 0x6c3   : > { %2863 = vmatprep.subr.mxu0 %v8100_v1 }
 0x6c4   : > { %2864 = vmatpush2.msra.mxu0 %v8462_v54 }
 0x6c5   : > { %2865 = vmatprep.subr.mxu0 %v8100_v1 }
 0x6c6   : > { %2866 = vmatpush2.msra.mxu0 %v8468_v59 }
 0x6c7   : > { %2867 = vmatprep.subr.mxu0 %v8100_v1 }
 0x6c8   : > { %2868 = vmatpush2.msra.mxu0 %v8474_v0 }
 0x6c9   : > { %2869 = vmatprep.subr.mxu0 %v8100_v1 }
 0x6ca   : > { %2870 = vmatpush2.msra.mxu0 %v8480_v5 }
 0x6cb   : > { %2871 = vmatprep.subr.mxu0 %v8100_v1 }
 0x6cc   : > { %2872 = vmatpush2.msra.mxu0 %v8486_v7 }
 0x6cd   : > { %2873 = vmatprep.subr.mxu0 %v8100_v1 }
 0x6ce   : > { %2874 = vmatpush2.msra.mxu0 %v8490_v50 }
 0x6cf   : > { %2875 = vmatprep.subr.mxu0 %v8100_v1 }
 0x6d0   : > { %2876 = vmatpush2.msra.mxu0 %v8494_v44 }
 0x6d1   : > { %2878 = vmatmul.mubr.f32.vlgmr.msra.gmra.mxu0 %v6563_v12 }
 0x6d2   : > { %6581 = vmatprep.mubr.msk.f32.mxu0 %vm799_vm3, %v6566_v60 }
 0x6d5   : > { %2883 = vmatmul.mubr.f32.gmra.mxu0 %v6565_v31 }
 0x6d6   : > { %6582 = vmatprep.mubr.msk.f32.mxu0 %vm799_vm3, %v6568_v38 }
 0x6d9   : > { %2888 = vmatmul.mubr.f32.gmra.mxu0 %v6567_v22 }
 0x6da   : > { %6583 = vmatprep.mubr.msk.f32.mxu0 %vm799_vm3, %v6570_v14 }
 0x6dd   : > { %2893 = vmatmul.mubr.f32.gmra.mxu0 %v6569_v45 }
 0x6de   : > { %6584 = vmatprep.mubr.msk.f32.mxu0 %vm799_vm3, %v6572_v20 }
 0x6e1   : > { %2898 = vmatmul.mubr.f32.gmra.mxu0 %v6571_v23 }
 0x6e2   : > { %6585 = vmatprep.mubr.msk.f32.mxu0 %vm799_vm3, %v6574_v25 }
 0x6e5   : > { %2903 = vmatmul.mubr.f32.gmra.mxu0 %v6573_v6 }
 0x6e6   : > { %6586 = vmatprep.mubr.msk.f32.mxu0 %vm799_vm3, %v6576_v29 }
 0x6e9   : > { %2908 = vmatmul.mubr.f32.gmra.mxu0 %v6575_v28 }
 0x6ea   : > { %6587 = vmatprep.mubr.msk.f32.mxu0 %vm799_vm3, %v6578_v16 }
 0x6ed   : > { %2913 = vmatmul.mubr.f32.gmra.mxu0 %v6577_v24 }
 0x757   : > { %v7465_v27 = vpop.f32.mrf.mxu0 }
 0x758   : > { %v9574_v41 = vadd.f32 %v7465_v27, %v9421_v62 }
 0x759   : > { %v2725_v30 = vpop.f32.mrf.mxu0 }
 0x75a   : > { %v9577_v56 = vadd.f32 %v2725_v30, %v9424_v19 }
 0x75f   : > { %v7468_v63 = vpop.f32.mrf.mxu0 }
 0x760   : > { %v9580_v32 = vadd.f32 %v7468_v63, %v9427_v10 }
 0x761   : > { %v2735_v36 = vpop.f32.mrf.mxu0 }
 0x762   : > { %v9583_v53 = vadd.f32 %v2735_v36, %v9430_v9 }
 0x767   : > { %v7471_v4 = vpop.f32.mrf.mxu0 }
 0x768   : > { %v9586_v12 = vadd.f32 %v7471_v4, %v9433_v2 }
 0x769   : > { %v2745_v60 = vpop.f32.mrf.mxu0 }
 0x76a   : > { %v9589_v62 = vadd.f32 %v2745_v60, %v9436_v34 }
 0x76f   : > { %v7474_v31 = vpop.f32.mrf.mxu0 }
 0x770   : > { %v9592_v19 = vadd.f32 %v7474_v31, %v9439_v21 }
 0x771   : > { %v2755_v38 = vpop.f32.mrf.mxu0 }
 0x772   : > { %v9595_v10 = vadd.f32 %v2755_v38, %v9442_v26 }
 0x791   : > { %v2879_v22 = vpop.f32.mrf.mxu0 }
 0x792   : > { %7479 = vmatprep.mubr.msk.f32.mxu1 %vm1083_vm4, %v2879_v22 }
 0x793   : > { %v2881_v9 = vpop.f32.mrf.mxu0 }
 0x795   : > { %v2884_v14 = vpop.f32.mrf.mxu0 }
 0x796   : > { %7480 = vmatmul.mubr.msk.f32.vlgmr.msra.gmra.mxu1 %vm1083_vm4, %v2884_v14 }
 0x797   : > { %3100 = vmatpush1.msra.mxu1 %v8336_v37  ;;  %v2886_v2 = vpop.f32.mrf.mxu0 }
 0x798   : > { %3101 = vmatprep.subr.mxu1 %v8100_v1  ;;  %v3367_v2 = vld [vmem:[%s10710_s6] sm:$0xff] }
 0x799   : > { %3102 = vmatpush1.msra.mxu1 %v8341_v40  ;;  %v2889_v34 = vpop.f32.mrf.mxu0 }
 0x79a   : > { %3103 = vmatprep.subr.mxu1 %v8100_v1  ;;  %7482 = vmatprep.mubr.msk.f32.mxu1 %vm1083_vm4, %v2889_v34  ;;  %v6648_v34 = vld [vmem:[%s10710_s6 + $0x20] sm:$0xff] }
 0x79b   : > { %3104 = vmatpush1.msra.mxu1 %v8346_v43  ;;  %v2891_v21 = vpop.f32.mrf.mxu0 }
 0x79c   : > { %3105 = vmatprep.subr.mxu1 %v8100_v1 }
 0x79d   : > { %3106 = vmatpush1.msra.mxu1 %v8353_v46  ;;  %v2894_v26 = vpop.f32.mrf.mxu0 }
 0x79e   : > { %3107 = vmatprep.subr.mxu1 %v8100_v1  ;;  %7483 = vmatmul.mubr.msk.f32.gmra.mxu1 %vm1083_vm4, %v2894_v26 }
 0x79f   : > { %3108 = vmatpush1.msra.mxu1 %v8358_v49  ;;  %v2896_v37 = vpop.f32.mrf.mxu0 }
 0x7a0   : > { %3109 = vmatprep.subr.mxu1 %v8100_v1 }
 0x7a1   : > { %3110 = vmatpush1.msra.mxu1 %v8365_v52  ;;  %v2899_v40 = vpop.f32.mrf.mxu0 }
 0x7a2   : > { %3111 = vmatprep.subr.mxu1 %v8100_v1  ;;  %7485 = vmatprep.mubr.msk.f32.mxu1 %vm1083_vm4, %v2899_v40 }
 0x7a3   : > { %3112 = vmatpush1.msra.mxu1 %v8370_v55  ;;  %v2901_v43 = vpop.f32.mrf.mxu0 }
 0x7a4   : > { %3113 = vmatprep.subr.mxu1 %v8100_v1 }
 0x7a5   : > { %3114 = vmatpush1.msra.mxu1 %v8377_v58  ;;  %v2904_v46 = vpop.f32.mrf.mxu0  ;;  %v6599_v58 = vld [vmem:[%s10707_s3 + $0x408] sm:$0xff] }
 0x7a6   : > { %3115 = vmatprep.subr.mxu1 %v8100_v1  ;;  %7486 = vmatmul.mubr.msk.f32.gmra.mxu1 %vm1083_vm4, %v2904_v46 }
 0x7a7   : > { %3116 = vmatpush1.msra.mxu1 %v8383_v61  ;;  %v2906_v49 = vpop.f32.mrf.mxu0 }
 0x7a8   : > { %3117 = vmatprep.subr.mxu1 %v8100_v1 }
 0x7a9   : > { %3118 = vmatpush1.msra.mxu1 %v8391_v3  ;;  %v2909_v52 = vpop.f32.mrf.mxu0 }
 0x7aa   : > { %3119 = vmatprep.subr.mxu1 %v8100_v1  ;;  %7488 = vmatprep.mubr.msk.f32.mxu1 %vm1083_vm4, %v2909_v52 }
 0x7ab   : > { %3120 = vmatpush1.msra.mxu1 %v8397_v8  ;;  %v2911_v55 = vpop.f32.mrf.mxu0  ;;  %v6598_v8 = vld [vmem:[%s10707_s3 + $0x400] sm:$0xff] }
 0x7ac   : > { %3121 = vmatprep.subr.mxu1 %v8100_v1 }
 0x7ad   : > { %3122 = vmatpush1.msra.mxu1 %v8403_v11  ;;  %v2914_v61 = vpop.f32.mrf.mxu0  ;;  %v6601_v11 = vld [vmem:[%s10707_s3 + $0x418] sm:$0xff] }
 0x7ae   : > { %3123 = vmatprep.subr.mxu1 %v8100_v1  ;;  %7489 = vmatmul.mubr.msk.f32.gmra.mxu1 %vm1083_vm4, %v2914_v61 }
 0x7af   : > { %3124 = vmatpush1.msra.mxu1 %v8409_v13  ;;  %v2916_v3 = vpop.f32.mrf.mxu0  ;;  %6615 = vmatprep.mubr.msk.f32.mxu1 %vm799_vm3, %v6599_v58  ;;  %v6600_v13 = vld [vmem:[%s10707_s3 + $0x410] sm:$0xff]  ;;  %v6633_v58 = vld [vmem:[%s10709_s5] ss:$0 sm:$0xff] }
 0x7b0   : > { %3125 = vmatprep.subr.mxu1 %v8100_v1 }
 0x7b1   : > { %3126 = vmatpush1.msra.mxu1 %v8415_v15  ;;  %v6603_v15 = vld [vmem:[%s10707_s3 + $0x428] sm:$0xff] }
 0x7b2   : > { %3127 = vmatprep.subr.mxu1 %v8100_v1 }
 0x7b3   : > { %3128 = vmatpush1.msra.mxu1 %v8419_v17  ;;  %v6602_v17 = vld [vmem:[%s10707_s3 + $0x420] sm:$0xff] }
 0x7b4   : > { %3129 = vmatprep.subr.mxu1 %v8100_v1 }
 0x7b5   : > { %3130 = vmatpush1.msra.mxu1 %v8423_v18  ;;  %v6605_v18 = vld [vmem:[%s10707_s3 + $0x438] sm:$0xff] }
 0x7b6   : > { %3137 = vmatprep.subr.mxu1 %v8100_v1 }
 0x7b7   : > { %6614 = vmatpush2.msk.msra.mxu1 %vm540_vm0, %v8432_v33  ;;  %v6604_v33 = vld [vmem:[%s10707_s3 + $0x430] sm:$0xff] }
 0x7b8   : > { %3139 = vmatprep.subr.mxu1 %v8100_v1 }
 0x7b9   : > { %3140 = vmatpush2.msra.mxu1 %v8435_v35  ;;  %v6607_v35 = vld [vmem:[%s10707_s3 + $0x448] sm:$0xff] }
 0x7ba   : > { %3141 = vmatprep.subr.mxu1 %v8100_v1 }
 0x7bb   : > { %3142 = vmatpush2.msra.mxu1 %v8441_v39  ;;  %v6606_v39 = vld [vmem:[%s10707_s3 + $0x440] sm:$0xff] }
 0x7bc   : > { %3143 = vmatprep.subr.mxu1 %v8100_v1 }
 0x7bd   : > { %3144 = vmatpush2.msra.mxu1 %v8446_v42  ;;  %v6609_v42 = vld [vmem:[%s10707_s3 + $0x458] sm:$0xff] }
 0x7be   : > { %3145 = vmatprep.subr.mxu1 %v8100_v1 }
 0x7bf   : > { %3146 = vmatpush2.msra.mxu1 %v8451_v47  ;;  %v6608_v47 = vld [vmem:[%s10707_s3 + $0x450] sm:$0xff] }
 0x7c0   : > { %3147 = vmatprep.subr.mxu1 %v8100_v1 }
 0x7c1   : > { %3148 = vmatpush2.msra.mxu1 %v8456_v51  ;;  %v6611_v51 = vld [vmem:[%s10707_s3 + $0x468] sm:$0xff] }
 0x7c2   : > { %3149 = vmatprep.subr.mxu1 %v8100_v1 }
 0x7c3   : > { %3150 = vmatpush2.msra.mxu1 %v8462_v54  ;;  %v6610_v54 = vld [vmem:[%s10707_s3 + $0x460] sm:$0xff] }
 0x7c4   : > { %3151 = vmatprep.subr.mxu1 %v8100_v1 }
 0x7c5   : > { %3152 = vmatpush2.msra.mxu1 %v8468_v59  ;;  %v6613_v59 = vld [vmem:[%s10707_s3 + $0x478] sm:$0xff] }
 0x7c6   : > { %3153 = vmatprep.subr.mxu1 %v8100_v1 }
 0x7c7   : > { %3154 = vmatpush2.msra.mxu1 %v8474_v0  ;;  %v6612_v0 = vld [vmem:[%s10707_s3 + $0x470] sm:$0xff] }
 0x7c8   : > { %3155 = vmatprep.subr.mxu1 %v8100_v1 }
 0x7c9   : > { %3156 = vmatpush2.msra.mxu1 %v8480_v5  ;;  %v6624_v5 = vld [vmem:[%s10708_s4 + $0x88] sm:$0xff] }
 0x7ca   : > { %3157 = vmatprep.subr.mxu1 %v8100_v1  ;;  %7491 = vmatprep.subr.mxu0 %v6624_v5 }
 0x7cb   : > { %3158 = vmatpush2.msra.mxu1 %v8486_v7  ;;  %7492 = vmatpush3.msra.mxu0 %v6624_v5  ;;  %v6623_v7 = vld [vmem:[%s10708_s4 + $0x80] sm:$0xff] }
 0x7cc   : > { %3159 = vmatprep.subr.mxu1 %v8100_v1  ;;  %7493 = vmatprep.subr.mxu0 %v6623_v7 }
 0x7cd   : > { %3160 = vmatpush2.msra.mxu1 %v8490_v50  ;;  %7494 = vmatpush3.msra.mxu0 %v6623_v7 }
 0x7ce   : > { %3161 = vmatprep.subr.mxu1 %v8100_v1 }
 0x7cf   : > { %3162 = vmatpush2.msra.mxu1 %v8494_v44 }
 0x7d0   : > { %3164 = vmatmul.mubr.f32.vlgmr.msra.gmra.mxu1 %v6598_v8 }
 0x7d1   : > { %6616 = vmatprep.mubr.msk.f32.mxu1 %vm799_vm3, %v6601_v11 }
 0x7d4   : > { %3169 = vmatmul.mubr.f32.gmra.mxu1 %v6600_v13 }
 0x7d5   : > { %6617 = vmatprep.mubr.msk.f32.mxu1 %vm799_vm3, %v6603_v15 }
 0x7d8   : > { %3174 = vmatmul.mubr.f32.gmra.mxu1 %v6602_v17 }
 0x7d9   : > { %6618 = vmatprep.mubr.msk.f32.mxu1 %vm799_vm3, %v6605_v18 }
 0x7dc   : > { %3179 = vmatmul.mubr.f32.gmra.mxu1 %v6604_v33 }
 0x7dd   : > { %6619 = vmatprep.mubr.msk.f32.mxu1 %vm799_vm3, %v6607_v35 }
 0x7e0   : > { %3184 = vmatmul.mubr.f32.gmra.mxu1 %v6606_v39 }
 0x7e1   : > { %6620 = vmatprep.mubr.msk.f32.mxu1 %vm799_vm3, %v6609_v42 }
 0x7e4   : > { %3189 = vmatmul.mubr.f32.gmra.mxu1 %v6608_v47 }
 0x7e5   : > { %6621 = vmatprep.mubr.msk.f32.mxu1 %vm799_vm3, %v6611_v51 }
 0x7e8   : > { %3194 = vmatmul.mubr.f32.gmra.mxu1 %v6610_v54 }
 0x7e9   : > { %6622 = vmatprep.mubr.msk.f32.mxu1 %vm799_vm3, %v6613_v59 }
 0x7ec   : > { %3199 = vmatmul.mubr.f32.gmra.mxu1 %v6612_v0 }
 0x7ed   : > { %7583 = vmatprep.mubr.msk.f32.mxu1 %vm3369_vm5, %v6648_v34  ;;  %v6665_v34 = vld [vmem:[%s10711_s7 + $0x78] sm:$0xff] }
 0x856   : > { %v7481_v50 = vpop.f32.mrf.mxu1 }
 0x857   : > { %v9726_v44 = vadd.f32 %v7481_v50, %v9574_v41 }
 0x858   : > { %v3011_v45 = vpop.f32.mrf.mxu1 }
 0x859   : > { %v9729_v20 = vadd.f32 %v3011_v45, %v9577_v56 }
 0x85e   : > { %v7484_v23 = vpop.f32.mrf.mxu1 }
 0x85f   : > { %v3053_v25 = vadd.f32 %v7484_v23, %v9580_v32  ;;  %v3368_v23 = vld [vmem:[%s10710_s6 + $0x8] sm:$0xff] }
 0x860   : > { %v3021_v6 = vpop.f32.mrf.mxu1 }
 0x861   : > { %v3052_v29 = vadd.f32 %v3021_v6, %v9583_v53  ;;  %v6636_v6 = vld [vmem:[%s10710_s6 + $0x10] sm:$0xff] }
 0x866   : > { %v7487_v28 = vpop.f32.mrf.mxu1 }
 0x867   : > { %v3055_v16 = vadd.f32 %v7487_v28, %v9586_v12  ;;  %v6658_v28 = vld [vmem:[%s10710_s6 + $0x30] sm:$0xff] }
 0x868   : > { %v3031_v24 = vpop.f32.mrf.mxu1 }
 0x869   : > { %v3054_v48 = vadd.f32 %v3031_v24, %v9589_v62  ;;  %v6659_v24 = vld [vmem:[%s10710_s6 + $0x38] sm:$0xff] }
 0x86e   : > { %v7490_v57 = vpop.f32.mrf.mxu1 }
 0x86f   : > { %v3057_v27 = vadd.f32 %v7490_v57, %v9592_v19  ;;  %v6673_v57 = vld [vmem:[%s10711_s7 + $0x88] sm:$0xff] }
 0x870   : > { %v3041_v41 = vpop.f32.mrf.mxu1 }
 0x871   : > { %v3056_v30 = vadd.f32 %v3041_v41, %v9595_v10  ;;  %v6643_v41 = vld [vmem:[%s10711_s7 + $0x38] sm:$0xff] }
 0x890   : > { %v3165_v56 = vpop.f32.mrf.mxu1 }
 0x891   : > { %7495 = vmatprep.mubr.msk.f32.mxu0 %vm1083_vm4, %v3165_v56  ;;  %v6641_v56 = vld [vmem:[%s10711_s7 + $0x28] sm:$0xff] }
 0x892   : > { %v3167_v63 = vpop.f32.mrf.mxu1 }
 0x893   : > { %v6640_v63 = vld [vmem:[%s10711_s7 + $0x20] sm:$0xff] }
 0x894   : > { %v3170_v32 = vpop.f32.mrf.mxu1 }
 0x895   : > { %7496 = vmatmul.mubr.msk.f32.vlgmr.msra.gmra.mxu0 %vm1083_vm4, %v3170_v32  ;;  %v3454_v32 = vld [vmem:[%s10711_s7 + $0x18] sm:$0xff] }
 0x896   : > { %v3172_v36 = vpop.f32.mrf.mxu1 }
 0x898   : > { %v3175_v53 = vpop.f32.mrf.mxu1 }
 0x899   : > { %7498 = vmatprep.mubr.msk.f32.mxu0 %vm1083_vm4, %v3175_v53 }
 0x89a   : > { %v3177_v4 = vpop.f32.mrf.mxu1 }
 0x89c   : > { %v3180_v12 = vpop.f32.mrf.mxu1 }
 0x89d   : > { %7499 = vmatmul.mubr.msk.f32.gmra.mxu0 %vm1083_vm4, %v3180_v12 }
 0x89e   : > { %v3182_v60 = vpop.f32.mrf.mxu1 }
 0x89f   : > { %v3453_v60 = vld [vmem:[%s10711_s7 + $0x10] sm:$0xff] }
 0x8a0   : > { %v3185_v62 = vpop.f32.mrf.mxu1 }
 0x8a1   : > { %7501 = vmatprep.mubr.msk.f32.mxu0 %vm1083_vm4, %v3185_v62  ;;  %v3452_v62 = vld [vmem:[%s10711_s7 + $0x8] sm:$0xff] }
 0x8a2   : > { %v3187_v31 = vpop.f32.mrf.mxu1 }
 0x8a3   : > { %v3451_v31 = vld [vmem:[%s10711_s7] sm:$0xff] }
 0x8a4   : > { %v3190_v19 = vpop.f32.mrf.mxu1 }
 0x8a5   : > { %7502 = vmatmul.mubr.msk.f32.gmra.mxu0 %vm1083_vm4, %v3190_v19 }
 0x8a6   : > { %v3192_v38 = vpop.f32.mrf.mxu1 }
 0x8a7   : > { %v6655_v38 = vld [vmem:[%s10711_s7 + $0x58] sm:$0xff] }
 0x8a8   : > { %v3195_v10 = vpop.f32.mrf.mxu1 }
 0x8a9   : > { %7504 = vmatprep.mubr.msk.f32.mxu0 %vm1083_vm4, %v3195_v10  ;;  %v6654_v10 = vld [vmem:[%s10711_s7 + $0x50] sm:$0xff] }
 0x8aa   : > { %v3197_v22 = vpop.f32.mrf.mxu1 }
 0x8ac   : > { %v3200_v9 = vpop.f32.mrf.mxu1 }
 0x8ad   : > { %7505 = vmatmul.mubr.msk.f32.gmra.mxu0 %vm1083_vm4, %v3200_v9  ;;  %v6653_v9 = vld [vmem:[%s10711_s7 + $0x48] sm:$0xff] }
 0x8ae   : > { %v3202_v14 = vpop.f32.mrf.mxu1  ;;  %7523 = vmatprep.mubr.msk.f32.mxu0 %vm3369_vm5, %v3367_v2  ;;  %v6652_v2 = vld [vmem:[%s10711_s7 + $0x40] sm:$0xff] }
 0x955   : > { %v7497_v21 = vpop.f32.mrf.mxu0 }
 0x956   : > { %v3337_v42 = vadd.f32 %v7497_v21, %v9726_v44 }
 0x957   : > { %v3297_v26 = vpop.f32.mrf.mxu0 }
 0x958   : > { %v3336_v54 = vadd.f32 %v3297_v26, %v9729_v20  ;;  %v3352_v5 = vadd.f32 %v6633_v58, %v3337_v42  ;;  %v6664_v26 = vld [vmem:[%s10711_s7 + $0x70] sm:$0xff] }
 0x95a   : > { %v3351_v50 = vadd.f32 %v6633_v58, %v3336_v54  ;;  %v9790_v45 = vmax.f32 %v3352_v5, 0.0 }
 0x95c   : > { %v9796_v20 = vmax.f32 %v3351_v50, 0.0 }
 0x95d   : > { %v7500_v37 = vpop.f32.mrf.mxu0 }
 0x95e   : > { %v3339_v13 = vadd.f32 %v7500_v37, %v3053_v25  ;;  %v6649_v25 = vld [vmem:[%s10710_s6 + $0x28] sm:$0xff] }
 0x95f   : > { %v3307_v40 = vpop.f32.mrf.mxu0  ;;  %v6663_v37 = vld [vmem:[%s10711_s7 + $0x68] sm:$0xff] }
 0x960   : > { %v3338_v33 = vadd.f32 %v3307_v40, %v3052_v29  ;;  %v3354_v47 = vadd.f32 %v6633_v58, %v3339_v13  ;;  %v6637_v29 = vld [vmem:[%s10710_s6 + $0x18] sm:$0xff]  ;;  %v6662_v40 = vld [vmem:[%s10711_s7 + $0x60] sm:$0xff] }
 0x962   : > { %v3353_v59 = vadd.f32 %v6633_v58, %v3338_v33  ;;  %v9778_v7 = vmax.f32 %v3354_v47, 0.0 }
 0x964   : > { %v9784_v44 = vmax.f32 %v3353_v59, 0.0 }
 0x965   : > { %v7503_v43 = vpop.f32.mrf.mxu0 }
 0x966   : > { %v3341_v52 = vadd.f32 %v7503_v43, %v3055_v16  ;;  %v6675_v16 = vld [vmem:[%s10711_s7 + $0x98] sm:$0xff]  ;;  %v6668_v43 = vld [vmem:[%s10710_s6 + $0x40] sm:$0xff] }
 0x967   : > { %v3317_v46 = vpop.f32.mrf.mxu0 }
 0x968   : > { %v3340_v3 = vadd.f32 %v3317_v46, %v3054_v48  ;;  %v3356_v15 = vadd.f32 %v6633_v58, %v3341_v52  ;;  %v6674_v48 = vld [vmem:[%s10711_s7 + $0x90] sm:$0xff]  ;;  %v6669_v46 = vld [vmem:[%s10710_s6 + $0x48] sm:$0xff] }
 0x969   : > { %v6684_v52 = vld [vmem:[%s10711_s7 + $0xb0] sm:$0xff] }
 0x96a   : > { %v3355_v35 = vadd.f32 %v6633_v58, %v3340_v3  ;;  %v9765_v51 = vmax.f32 %v3356_v15, 0.0 }
 0x96c   : > { %v9772_v0 = vmax.f32 %v3355_v35, 0.0 }
 0x96d   : > { %v7506_v49 = vpop.f32.mrf.mxu0 }
 0x96e   : > { %v3343_v55 = vadd.f32 %v7506_v49, %v3057_v27  ;;  %v6672_v27 = vld [vmem:[%s10711_s7 + $0x80] sm:$0xff]  ;;  %v6685_v49 = vld [vmem:[%s10711_s7 + $0xb8] sm:$0xff] }
 0x96f   : > { %v3327_v61 = vpop.f32.mrf.mxu0 }
 0x970   : > { %v3358_v8 = vadd.f32 %v6633_v58, %v3343_v55  ;;  %v3342_v11 = vadd.f32 %v3327_v61, %v3056_v30  ;;  %v6642_v30 = vld [vmem:[%s10711_s7 + $0x30] sm:$0xff]  ;;  %v6683_v55 = vld [vmem:[%s10711_s7 + $0xa8] sm:$0xff] }
 0x972   : > { %v9756_v17 = vmax.f32 %v3358_v8, 0.0  ;;  %v3357_v18 = vadd.f32 %v6633_v58, %v3342_v11  ;;  %v6682_v58 = vld [vmem:[%s10711_s7 + $0xa0] sm:$0xff] }
 0x974   : > { %v9758_v39 = vmax.f32 %v3357_v18, 0.0  ;;  %7507 = vmatprep.subr.mxu0 %v9756_v17  ;;  %7567 = vmatprep.subr.mxu1 %v9756_v17 }
 0x975   : > { %7508 = vmatpush3.msra.mxu0 %v9756_v17  ;;  %7568 = vmatpush3.msra.mxu1 %v9756_v17 }
 0x976   : > { %7509 = vmatprep.subr.mxu0 %v9758_v39  ;;  %7569 = vmatprep.subr.mxu1 %v9758_v39 }
 0x977   : > { %7510 = vmatpush3.msra.mxu0 %v9758_v39  ;;  %7570 = vmatpush3.msra.mxu1 %v9758_v39 }
 0x978   : > { %7511 = vmatprep.subr.mxu0 %v9765_v51  ;;  %7571 = vmatprep.subr.mxu1 %v9765_v51 }
 0x979   : > { %7512 = vmatpush3.msra.mxu0 %v9765_v51  ;;  %7572 = vmatpush3.msra.mxu1 %v9765_v51 }
 0x97a   : > { %7513 = vmatprep.subr.mxu0 %v9772_v0  ;;  %7573 = vmatprep.subr.mxu1 %v9772_v0 }
 0x97b   : > { %7514 = vmatpush3.msra.mxu0 %v9772_v0  ;;  %7574 = vmatpush3.msra.mxu1 %v9772_v0 }
 0x97c   : > { %7515 = vmatprep.subr.mxu0 %v9778_v7  ;;  %7575 = vmatprep.subr.mxu1 %v9778_v7 }
 0x97d   : > { %7516 = vmatpush3.msra.mxu0 %v9778_v7  ;;  %7576 = vmatpush3.msra.mxu1 %v9778_v7 }
 0x97e   : > { %7517 = vmatprep.subr.mxu0 %v9784_v44  ;;  %7577 = vmatprep.subr.mxu1 %v9784_v44 }
 0x97f   : > { %7518 = vmatpush3.msra.mxu0 %v9784_v44  ;;  %7578 = vmatpush3.msra.mxu1 %v9784_v44 }
 0x980   : > { %7519 = vmatprep.subr.mxu0 %v9790_v45  ;;  %7579 = vmatprep.subr.mxu1 %v9790_v45 }
 0x981   : > { %7520 = vmatpush3.msra.mxu0 %v9790_v45  ;;  %7580 = vmatpush3.msra.mxu1 %v9790_v45 }
 0x982   : > { %7521 = vmatprep.subr.mxu0 %v9796_v20  ;;  %7581 = vmatprep.subr.mxu1 %v9796_v20 }
 0x983   : > { %7522 = vmatpush3.msra.mxu0 %v9796_v20  ;;  %7582 = vmatpush3.msra.mxu1 %v9796_v20 }
 0x984   : > { %7524 = vmatmul.mubr.msk.f32.vlgmr.msra.gmra.mxu0 %vm3369_vm5, %v3368_v23  ;;  %7526 = vmatprep.subr.mxu0 %v9756_v17 }
 0x985   : > { %7597 = vmatprep.subr.mxu1 %v9756_v17  ;;  %7527 = vmatpush3.msra.mxu0 %v9756_v17 }
 0x986   : > { %7584 = vmatmul.mubr.msk.f32.vlgmr.msra.gmra.mxu1 %vm3369_vm5, %v6649_v25  ;;  %7528 = vmatprep.subr.mxu0 %v9758_v39  ;;  %v6678_v25 = vld [vmem:[%s10710_s6 + $0x50] sm:$0xff] }
 0x987   : > { %7598 = vmatpush3.msra.mxu1 %v9756_v17  ;;  %7529 = vmatpush3.msra.mxu0 %v9758_v39 }
 0x988   : > { %7599 = vmatprep.subr.mxu1 %v9758_v39  ;;  %7530 = vmatprep.subr.mxu0 %v9765_v51 }
 0x989   : > { %7600 = vmatpush3.msra.mxu1 %v9758_v39  ;;  %7531 = vmatpush3.msra.mxu0 %v9765_v51 }
 0x98a   : > { %7601 = vmatprep.subr.mxu1 %v9765_v51  ;;  %7532 = vmatprep.subr.mxu0 %v9772_v0 }
 0x98b   : > { %7602 = vmatpush3.msra.mxu1 %v9765_v51  ;;  %7533 = vmatpush3.msra.mxu0 %v9772_v0 }
 0x98c   : > { %7603 = vmatprep.subr.mxu1 %v9772_v0  ;;  %7534 = vmatprep.subr.mxu0 %v9778_v7 }
 0x98d   : > { %7604 = vmatpush3.msra.mxu1 %v9772_v0  ;;  %7535 = vmatpush3.msra.mxu0 %v9778_v7 }
 0x98e   : > { %7605 = vmatprep.subr.mxu1 %v9778_v7  ;;  %7536 = vmatprep.subr.mxu0 %v9784_v44 }
 0x98f   : > { %7606 = vmatpush3.msra.mxu1 %v9778_v7  ;;  %7537 = vmatpush3.msra.mxu0 %v9784_v44 }
 0x990   : > { %7607 = vmatprep.subr.mxu1 %v9784_v44  ;;  %7538 = vmatprep.subr.mxu0 %v9790_v45 }
 0x991   : > { %7608 = vmatpush3.msra.mxu1 %v9784_v44  ;;  %7539 = vmatpush3.msra.mxu0 %v9790_v45 }
 0x992   : > { %7609 = vmatprep.subr.mxu1 %v9790_v45  ;;  %7540 = vmatprep.subr.mxu0 %v9796_v20 }
 0x993   : > { %7610 = vmatpush3.msra.mxu1 %v9790_v45  ;;  %7541 = vmatpush3.msra.mxu0 %v9796_v20 }
 0x994   : > { %7611 = vmatprep.subr.mxu1 %v9796_v20  ;;  %7542 = vmatprep.mubr.msk.f32.mxu0 %vm3369_vm5, %v6636_v6  ;;  %v6679_v6 = vld [vmem:[%s10710_s6 + $0x58] sm:$0xff] }
 0x995   : > { %7612 = vmatpush3.msra.mxu1 %v9796_v20  ;;  %7543 = vmatmul.mubr.msk.f32.vlgmr.msra.gmra.mxu0 %vm3369_vm5, %v6637_v29  ;;  %v6695_v29 = vld [vmem:[%s10711_s7 + $0xd8] sm:$0xff] }
 0x996   : > { %7613 = vmatprep.mubr.msk.f32.mxu1 %vm3369_vm5, %v6658_v28  ;;  %7646 = vmatprep.subr.mxu1 %v6675_v16  ;;  %v6694_v28 = vld [vmem:[%s10711_s7 + $0xd0] sm:$0xff] }
 0x997   : > { %7614 = vmatmul.mubr.msk.f32.vlgmr.msra.gmra.mxu1 %vm3369_vm5, %v6659_v24  ;;  %7545 = vmatprep.subr.mxu0 %v6643_v41  ;;  %v6692_v24 = vld [vmem:[%s10711_s7 + $0xc0] sm:$0xff] }
 0x998   : > { %7647 = vmatpush3.msra.mxu1 %v6675_v16  ;;  %7546 = vmatpush3.msra.mxu0 %v6643_v41  ;;  %v6693_v16 = vld [vmem:[%s10711_s7 + $0xc8] sm:$0xff] }
 0x999   : > { %7648 = vmatprep.subr.mxu1 %v6674_v48  ;;  %7547 = vmatprep.subr.mxu0 %v6642_v30 }
 0x99a   : > { %7649 = vmatpush3.msra.mxu1 %v6674_v48  ;;  %7548 = vmatpush3.msra.mxu0 %v6642_v30 }
 0x99b   : > { %7650 = vmatprep.subr.mxu1 %v6673_v57  ;;  %7549 = vmatprep.subr.mxu0 %v6641_v56 }
 0x99c   : > { %7651 = vmatpush3.msra.mxu1 %v6673_v57  ;;  %7550 = vmatpush3.msra.mxu0 %v6641_v56 }
 0x99d   : > { %7652 = vmatprep.subr.mxu1 %v6672_v27  ;;  %7551 = vmatprep.subr.mxu0 %v6640_v63 }
 0x99e   : > { %7653 = vmatpush3.msra.mxu1 %v6672_v27  ;;  %7552 = vmatpush3.msra.mxu0 %v6640_v63  ;;  %v6688_v63 = vld [vmem:[%s10710_s6 + $0x60] sm:$0xff] }
 0x99f   : > { %7657 = vmatprep.subr.mxu1 %v9756_v17  ;;  %7556 = vmatprep.subr.mxu0 %v3454_v32 }
 0xa44   : > { %v7525_v36 = vpop.f32.mrf.mxu0 }
 0xa46   : > { %v3442_v53 = vpop.f32.mrf.mxu0  ;;  %v7585_v19 = vpop.f32.mrf.mxu1 }
 0xa48   : > { %v3782_v22 = vpop.f32.mrf.mxu1 }
 0xa55   : > { %v7544_v4 = vpop.f32.mrf.mxu0 }
 0xa57   : > { %v3530_v12 = vpop.f32.mrf.mxu0  ;;  %v7615_v14 = vpop.f32.mrf.mxu1 }
 0xa58   : > { %7553 = vmatprep.mubr.msk.f32.mxu0 %vm3544_vm6, %v3530_v12  ;;  %v6702_v12 = vld [vmem:[%s10711_s7 + $0xe0] sm:$0xff] }
 0xa59   : > { %7554 = vmatmul.mubr.msk.f32.vlgmr.msra.gmra.mxu0 %vm3544_vm6, %v7544_v4  ;;  %v3954_v21 = vpop.f32.mrf.mxu1  ;;  %v6703_v4 = vld [vmem:[%s10711_s7 + $0xe8] sm:$0xff] }
 0xa5a   : > { %7557 = vmatpush3.msra.mxu0 %v3454_v32  ;;  %7564 = vmatprep.mubr.msk.f32.mxu0 %vm3544_vm6, %v3442_v53  ;;  %v6689_v32 = vld [vmem:[%s10710_s6 + $0x68] sm:$0xff]  ;;  %v6704_v53 = vld [vmem:[%s10711_s7 + $0xf0] sm:$0xff] }
 0xa5b   : > { %7558 = vmatprep.subr.mxu0 %v3453_v60 }
 0xa5c   : > { %7559 = vmatpush3.msra.mxu0 %v3453_v60 }
 0xa5d   : > { %7560 = vmatprep.subr.mxu0 %v3452_v62 }
 0xa5e   : > { %7561 = vmatpush3.msra.mxu0 %v3452_v62 }
 0xa5f   : > { %7562 = vmatprep.subr.mxu0 %v3451_v31 }
 0xa60   : > { %7563 = vmatpush3.msra.mxu0 %v3451_v31 }
 0xa61   : > { %7565 = vmatmul.mubr.msk.f32.vlgmr.msra.gmra.mxu0 %vm3544_vm6, %v7525_v36  ;;  %7586 = vmatprep.subr.mxu0 %v6655_v38  ;;  %v6705_v36 = vld [vmem:[%s10711_s7 + $0xf8] sm:$0xff] }
 0xa62   : > { %7587 = vmatpush3.msra.mxu0 %v6655_v38  ;;  %7594 = vmatprep.mubr.msk.f32.mxu0 %vm3544_vm6, %v3782_v22  ;;  %v6698_v22 = vld [vmem:[%s10710_s6 + $0x70] sm:$0xff] }
 0xa63   : > { %7588 = vmatprep.subr.mxu0 %v6654_v10 }
 0xa64   : > { %7589 = vmatpush3.msra.mxu0 %v6654_v10 }
 0xa65   : > { %7590 = vmatprep.subr.mxu0 %v6653_v9 }
 0xa66   : > { %7591 = vmatpush3.msra.mxu0 %v6653_v9  ;;  %v6699_v9 = vld [vmem:[%s10710_s6 + $0x78] sm:$0xff] }
 0xa67   : > { %7592 = vmatprep.subr.mxu0 %v6652_v2 }
 0xa68   : > { %7593 = vmatpush3.msra.mxu0 %v6652_v2 }
 0xa69   : > { %7595 = vmatmul.mubr.msk.f32.vlgmr.msra.gmra.mxu0 %vm3544_vm6, %v7585_v19  ;;  %7616 = vmatprep.subr.mxu0 %v6665_v34 }
 0xa6a   : > { %7617 = vmatpush3.msra.mxu0 %v6665_v34  ;;  %7624 = vmatprep.mubr.msk.f32.mxu0 %vm3544_vm6, %v3954_v21 }
 0xa6b   : > { %7618 = vmatprep.subr.mxu0 %v6664_v26 }
 0xa6c   : > { %7619 = vmatpush3.msra.mxu0 %v6664_v26 }
 0xa6d   : > { %7620 = vmatprep.subr.mxu0 %v6663_v37 }
 0xa6e   : > { %7621 = vmatpush3.msra.mxu0 %v6663_v37 }
 0xa6f   : > { %7622 = vmatprep.subr.mxu0 %v6662_v40 }
 0xa70   : > { %7623 = vmatpush3.msra.mxu0 %v6662_v40  ;;  %v6708_v40 = vld [vmem:[%s10710_s6 + $0x80] sm:$0xff] }
 0xa71   : > { %7625 = vmatmul.mubr.msk.f32.vlgmr.msra.gmra.mxu0 %vm3544_vm6, %v7615_v14  ;;  %7627 = vmatprep.subr.mxu0 %v9756_v17 }
 0xa72   : > { %7628 = vmatpush3.msra.mxu0 %v9756_v17  ;;  %7643 = vmatprep.mubr.msk.f32.mxu0 %vm3369_vm5, %v6668_v43 }
 0xa73   : > { %7629 = vmatprep.subr.mxu0 %v9758_v39 }
 0xa74   : > { %7630 = vmatpush3.msra.mxu0 %v9758_v39 }
 0xa75   : > { %7631 = vmatprep.subr.mxu0 %v9765_v51 }
 0xa76   : > { %7632 = vmatpush3.msra.mxu0 %v9765_v51 }
 0xa77   : > { %7633 = vmatprep.subr.mxu0 %v9772_v0 }
 0xa78   : > { %7634 = vmatpush3.msra.mxu0 %v9772_v0 }
 0xa79   : > { %7635 = vmatprep.subr.mxu0 %v9778_v7 }
 0xa7a   : > { %7636 = vmatpush3.msra.mxu0 %v9778_v7 }
 0xa7b   : > { %7637 = vmatprep.subr.mxu0 %v9784_v44 }
 0xa7c   : > { %7638 = vmatpush3.msra.mxu0 %v9784_v44 }
 0xa7d   : > { %7639 = vmatprep.subr.mxu0 %v9790_v45 }
 0xa7e   : > { %7640 = vmatpush3.msra.mxu0 %v9790_v45 }
 0xa7f   : > { %7641 = vmatprep.subr.mxu0 %v9796_v20 }
 0xa80   : > { %7642 = vmatpush3.msra.mxu0 %v9796_v20 }
 0xa81   : > { %7644 = vmatmul.mubr.msk.f32.vlgmr.msra.gmra.mxu0 %vm3369_vm5, %v6669_v46  ;;  %7676 = vmatprep.subr.mxu0 %v6685_v49 }
 0xa82   : > { %7677 = vmatpush3.msra.mxu0 %v6685_v49 }
 0xa83   : > { %7678 = vmatprep.subr.mxu0 %v6684_v52 }
 0xa84   : > { %7679 = vmatpush3.msra.mxu0 %v6684_v52 }
 0xa85   : > { %7680 = vmatprep.subr.mxu0 %v6683_v55 }
 0xa86   : > { %7681 = vmatpush3.msra.mxu0 %v6683_v55 }
 0xa87   : > { %7682 = vmatprep.subr.mxu0 %v6682_v58 }
 0xa88   : > { %7683 = vmatpush3.msra.mxu0 %v6682_v58 }
 0xa89   : > { %7687 = vmatprep.subr.mxu0 %v9756_v17 }
 0xb19   : > { %v7555_v61 = vpop.f32.mrf.mxu0 }
 0xb1b   : > { %v3617_v3 = vpop.f32.mrf.mxu0 }
 0xb21   : > { %v7566_v8 = vpop.f32.mrf.mxu0 }
 0xb22   : > { %v3704_v11 = vadd.f32 %v7566_v8, %v7555_v61  ;;  %v4930_v61 = vld [vmem:[%s10713_s9 + $0x38] sm:$0xff]  ;;  %v4928_v8 = vld [vmem:[%s10713_s9 + $0x28] sm:$0xff] }
 0xb23   : > { %v3698_v13 = vpop.f32.mrf.mxu0 }
 0xb24   : > { %v3699_v15 = vadd.f32 %v3698_v13, %v3617_v3  ;;  %v4929_v3 = vld [vmem:[%s10713_s9 + $0x30] sm:$0xff]  ;;  %v4926_v13 = vld [vmem:[%s10713_s9 + $0x18] sm:$0xff] }
 0xb29   : > { %v7596_v18 = vpop.f32.mrf.mxu0 }
 0xb2a   : > { %v3878_v33 = vadd.f32 %v7596_v18, %v3704_v11  ;;  %v4927_v11 = vld [vmem:[%s10713_s9 + $0x20] sm:$0xff]  ;;  %v4925_v18 = vld [vmem:[%s10713_s9 + $0x10] sm:$0xff] }
 0xb2b   : > { %v3868_v35 = vpop.f32.mrf.mxu0 }
 0xb2c   : > { %v3877_v42 = vadd.f32 %v3868_v35, %v3699_v15  ;;  %v6724_v15 = vld [vmem:[%s10713_s9 + $0x60] sm:$0xff]  ;;  %v4924_v35 = vld [vmem:[%s10713_s9 + $0x8] sm:$0xff] }
 0xb31   : > { %v7626_v47 = vpop.f32.mrf.mxu0 }
 0xb32   : > { %v4050_v54 = vadd.f32 %v7626_v47, %v3878_v33  ;;  %v6723_v33 = vld [vmem:[%s10713_s9 + $0x58] sm:$0xff]  ;;  %v4923_v47 = vld [vmem:[%s10713_s9] sm:$0xff] }
 0xb33   : > { %v4040_v59 = vpop.f32.mrf.mxu0 }
 0xb34   : > { %v4049_v5 = vadd.f32 %v4040_v59, %v3877_v42  ;;  %v6722_v42 = vld [vmem:[%s10713_s9 + $0x50] sm:$0xff]  ;;  %v6720_v59 = vld [vmem:[%s10713_s9 + $0x40] sm:$0xff] }
 0xb41   : > { %v7645_v50 = vpop.f32.mrf.mxu0 }
 0xb43   : > { %v4126_v23 = vpop.f32.mrf.mxu0 }
 0xb44   : > { %7654 = vmatprep.mubr.msk.f32.mxu1 %vm3544_vm6, %v4126_v23 }
 0xb45   : > { %7655 = vmatmul.mubr.msk.f32.vlgmr.msra.gmra.mxu1 %vm3544_vm6, %v7645_v50  ;;  %v6718_v50 = vld [vmem:[%s10712_s8] ss:$0 sm:$0xff] }
 0xb46   : > { %7658 = vmatpush3.msra.mxu1 %v9756_v17  ;;  %7673 = vmatprep.mubr.msk.f32.mxu1 %vm3369_vm5, %v6678_v25 }
 0xb47   : > { %7659 = vmatprep.subr.mxu1 %v9758_v39 }
 0xb48   : > { %7660 = vmatpush3.msra.mxu1 %v9758_v39 }
 0xb49   : > { %7661 = vmatprep.subr.mxu1 %v9765_v51 }
 0xb4a   : > { %7662 = vmatpush3.msra.mxu1 %v9765_v51 }
 0xb4b   : > { %7663 = vmatprep.subr.mxu1 %v9772_v0 }
 0xb4c   : > { %7664 = vmatpush3.msra.mxu1 %v9772_v0 }
 0xb4d   : > { %7665 = vmatprep.subr.mxu1 %v9778_v7 }
 0xb4e   : > { %7666 = vmatpush3.msra.mxu1 %v9778_v7 }
 0xb4f   : > { %7667 = vmatprep.subr.mxu1 %v9784_v44 }
 0xb50   : > { %7668 = vmatpush3.msra.mxu1 %v9784_v44 }
 0xb51   : > { %7669 = vmatprep.subr.mxu1 %v9790_v45 }
 0xb52   : > { %7670 = vmatpush3.msra.mxu1 %v9790_v45 }
 0xb53   : > { %7671 = vmatprep.subr.mxu1 %v9796_v20 }
 0xb54   : > { %7672 = vmatpush3.msra.mxu1 %v9796_v20 }
 0xb55   : > { %7674 = vmatmul.mubr.msk.f32.vlgmr.msra.gmra.mxu1 %vm3369_vm5, %v6679_v6  ;;  %7706 = vmatprep.subr.mxu1 %v6695_v29 }
 0xb56   : > { %7707 = vmatpush3.msra.mxu1 %v6695_v29 }
 0xb57   : > { %7708 = vmatprep.subr.mxu1 %v6694_v28 }
 0xb58   : > { %7709 = vmatpush3.msra.mxu1 %v6694_v28 }
 0xb59   : > { %7710 = vmatprep.subr.mxu1 %v6693_v16 }
 0xb5a   : > { %7711 = vmatpush3.msra.mxu1 %v6693_v16 }
 0xb5b   : > { %7712 = vmatprep.subr.mxu1 %v6692_v24 }
 0xb5c   : > { %7713 = vmatpush3.msra.mxu1 %v6692_v24  ;;  %v6736_v24 = vld [vmem:[%s10713_s9 + $0xb8] sm:$0xff] }
 0xb5d   : > { %7717 = vmatprep.subr.mxu1 %v9756_v17 }
 0xc05   : > { %v7656_v48 = vpop.f32.mrf.mxu1 }
 0xc06   : > { %v4222_v57 = vadd.f32 %v7656_v48, %v4050_v54  ;;  %v6721_v54 = vld [vmem:[%s10713_s9 + $0x48] sm:$0xff] }
 0xc07   : > { %v4212_v27 = vpop.f32.mrf.mxu1 }
 0xc08   : > { %v4221_v41 = vadd.f32 %v4212_v27, %v4049_v5  ;;  %v6745_v27 = vld [vmem:[%s10713_s9 + $0xf8] sm:$0xff] }
 0xc15   : > { %v7675_v30 = vpop.f32.mrf.mxu1 }
 0xc17   : > { %v4298_v56 = vpop.f32.mrf.mxu1 }
 0xc18   : > { %7684 = vmatprep.mubr.msk.f32.mxu0 %vm3544_vm6, %v4298_v56  ;;  %v6733_v56 = vld [vmem:[%s10713_s9 + $0xa0] sm:$0xff] }
 0xc19   : > { %7685 = vmatmul.mubr.msk.f32.vlgmr.msra.gmra.mxu0 %vm3544_vm6, %v7675_v30  ;;  %v6744_v30 = vld [vmem:[%s10713_s9 + $0xf0] sm:$0xff] }
 0xc1a   : > { %7688 = vmatpush3.msra.mxu0 %v9756_v17  ;;  %7703 = vmatprep.mubr.msk.f32.mxu0 %vm3369_vm5, %v6688_v63  ;;  %v6743_v63 = vld [vmem:[%s10713_s9 + $0xe8] sm:$0xff] }
 0xc1b   : > { %7689 = vmatprep.subr.mxu0 %v9758_v39 }
 0xc1c   : > { %7690 = vmatpush3.msra.mxu0 %v9758_v39 }
 0xc1d   : > { %7691 = vmatprep.subr.mxu0 %v9765_v51 }
 0xc1e   : > { %7692 = vmatpush3.msra.mxu0 %v9765_v51 }
 0xc1f   : > { %7693 = vmatprep.subr.mxu0 %v9772_v0 }
 0xc20   : > { %7694 = vmatpush3.msra.mxu0 %v9772_v0 }
 0xc21   : > { %7695 = vmatprep.subr.mxu0 %v9778_v7 }
 0xc22   : > { %7696 = vmatpush3.msra.mxu0 %v9778_v7 }
 0xc23   : > { %7697 = vmatprep.subr.mxu0 %v9784_v44 }
 0xc24   : > { %7698 = vmatpush3.msra.mxu0 %v9784_v44 }
 0xc25   : > { %7699 = vmatprep.subr.mxu0 %v9790_v45 }
 0xc26   : > { %7700 = vmatpush3.msra.mxu0 %v9790_v45 }
 0xc27   : > { %7701 = vmatprep.subr.mxu0 %v9796_v20 }
 0xc28   : > { %7702 = vmatpush3.msra.mxu0 %v9796_v20 }
 0xc29   : > { %7704 = vmatmul.mubr.msk.f32.vlgmr.msra.gmra.mxu0 %vm3369_vm5, %v6689_v32  ;;  %7736 = vmatprep.subr.mxu0 %v6705_v36  ;;  %v6732_v32 = vld [vmem:[%s10713_s9 + $0x98] sm:$0xff] }
 0xc2a   : > { %7737 = vmatpush3.msra.mxu0 %v6705_v36  ;;  %v6742_v36 = vld [vmem:[%s10713_s9 + $0xe0] sm:$0xff] }
 0xc2b   : > { %7738 = vmatprep.subr.mxu0 %v6704_v53 }
 0xc2c   : > { %7739 = vmatpush3.msra.mxu0 %v6704_v53  ;;  %v6731_v53 = vld [vmem:[%s10713_s9 + $0x90] sm:$0xff] }
 0xc2d   : > { %7740 = vmatprep.subr.mxu0 %v6703_v4 }
 0xc2e   : > { %7741 = vmatpush3.msra.mxu0 %v6703_v4  ;;  %v6741_v4 = vld [vmem:[%s10713_s9 + $0xd8] sm:$0xff] }
 0xc2f   : > { %7742 = vmatprep.subr.mxu0 %v6702_v12 }
 0xc30   : > { %7743 = vmatpush3.msra.mxu0 %v6702_v12  ;;  %v6730_v12 = vld [vmem:[%s10713_s9 + $0x88] sm:$0xff] }
 0xc31   : > { %7747 = vmatprep.subr.mxu0 %v9756_v17 }
 0xcd9   : > { %v7686_v60 = vpop.f32.mrf.mxu0 }
 0xcda   : > { %v4394_v62 = vadd.f32 %v7686_v60, %v4222_v57  ;;  %v6735_v57 = vld [vmem:[%s10713_s9 + $0xb0] sm:$0xff] }
 0xcdb   : > { %v4384_v31 = vpop.f32.mrf.mxu0  ;;  %v6740_v60 = vld [vmem:[%s10713_s9 + $0xd0] sm:$0xff] }
 0xcdc   : > { %v4393_v19 = vadd.f32 %v4384_v31, %v4221_v41  ;;  %v6734_v41 = vld [vmem:[%s10713_s9 + $0xa8] sm:$0xff] }
 0xcdd   : > { %v6739_v31 = vld [vmem:[%s10713_s9 + $0xc8] sm:$0xff] }
 0xce9   : > { %v7705_v38 = vpop.f32.mrf.mxu0 }
 0xceb   : > { %v4470_v10 = vpop.f32.mrf.mxu0 }
 0xcec   : > { %7714 = vmatprep.mubr.msk.f32.mxu1 %vm3544_vm6, %v4470_v10  ;;  %v6754_v10 = vld [vmem:[%s10713_s9 + $0x138] sm:$0xff] }
 0xced   : > { %7715 = vmatmul.mubr.msk.f32.vlgmr.msra.gmra.mxu1 %vm3544_vm6, %v7705_v38  ;;  %v6738_v38 = vld [vmem:[%s10713_s9 + $0xc0] sm:$0xff] }
 0xcee   : > { %7718 = vmatpush3.msra.mxu1 %v9756_v17  ;;  %7733 = vmatprep.mubr.msk.f32.mxu1 %vm3369_vm5, %v6698_v22 }
 0xcef   : > { %7719 = vmatprep.subr.mxu1 %v9758_v39 }
 0xcf0   : > { %7720 = vmatpush3.msra.mxu1 %v9758_v39 }
 0xcf1   : > { %7721 = vmatprep.subr.mxu1 %v9765_v51 }
 0xcf2   : > { %7722 = vmatpush3.msra.mxu1 %v9765_v51 }
 0xcf3   : > { %7723 = vmatprep.subr.mxu1 %v9772_v0 }
 0xcf4   : > { %7724 = vmatpush3.msra.mxu1 %v9772_v0 }
 0xcf5   : > { %7725 = vmatprep.subr.mxu1 %v9778_v7 }
 0xcf6   : > { %7726 = vmatpush3.msra.mxu1 %v9778_v7 }
 0xcf7   : > { %7727 = vmatprep.subr.mxu1 %v9784_v44 }
 0xcf8   : > { %7728 = vmatpush3.msra.mxu1 %v9784_v44 }
 0xcf9   : > { %7729 = vmatprep.subr.mxu1 %v9790_v45 }
 0xcfa   : > { %7730 = vmatpush3.msra.mxu1 %v9790_v45 }
 0xcfb   : > { %7731 = vmatprep.subr.mxu1 %v9796_v20 }
 0xcfc   : > { %7732 = vmatpush3.msra.mxu1 %v9796_v20 }
 0xcfd   : > { %7734 = vmatmul.mubr.msk.f32.vlgmr.msra.gmra.mxu1 %vm3369_vm5, %v6699_v9  ;;  %v6753_v9 = vld [vmem:[%s10713_s9 + $0x130] sm:$0xff] }
 0xdad   : > { %v7716_v14 = vpop.f32.mrf.mxu1 }
 0xdae   : > { %v4566_v2 = vadd.f32 %v7716_v14, %v4394_v62  ;;  %v6729_v62 = vld [vmem:[%s10713_s9 + $0x80] sm:$0xff]  ;;  %v6763_v14 = vld [vmem:[%s10713_s9 + $0x178] sm:$0xff] }
 0xdaf   : > { %v4556_v34 = vpop.f32.mrf.mxu1 }
 0xdb0   : > { %v4565_v21 = vadd.f32 %v4556_v34, %v4393_v19  ;;  %v6762_v34 = vld [vmem:[%s10713_s9 + $0x170] sm:$0xff] }
 0xdbd   : > { %v7735_v26 = vpop.f32.mrf.mxu1 }
 0xdbf   : > { %v4642_v37 = vpop.f32.mrf.mxu1 }
 0xdc0   : > { %7744 = vmatprep.mubr.msk.f32.mxu0 %vm3544_vm6, %v4642_v37  ;;  %v6750_v37 = vld [vmem:[%s10713_s9 + $0x118] sm:$0xff] }
 0xdc1   : > { %7745 = vmatmul.mubr.msk.f32.vlgmr.msra.gmra.mxu0 %vm3544_vm6, %v7735_v26  ;;  %v6761_v26 = vld [vmem:[%s10713_s9 + $0x168] sm:$0xff] }
 0xdc2   : > { %7748 = vmatpush3.msra.mxu0 %v9756_v17  ;;  %7763 = vmatprep.mubr.msk.f32.mxu0 %vm3369_vm5, %v6708_v40  ;;  %v6709_v17 = vld [vmem:[%s10710_s6 + $0x88] sm:$0xff]  ;;  %v6760_v40 = vld [vmem:[%s10713_s9 + $0x160] sm:$0xff] }
 0xdc3   : > { %7749 = vmatprep.subr.mxu0 %v9758_v39 }
 0xdc4   : > { %7750 = vmatpush3.msra.mxu0 %v9758_v39  ;;  %v6715_v39 = vld [vmem:[%s10711_s7 + $0x118] sm:$0xff] }
 0xdc5   : > { %7751 = vmatprep.subr.mxu0 %v9765_v51  ;;  %7766 = vmatprep.subr.mxu1 %v6715_v39 }
 0xdc6   : > { %7752 = vmatpush3.msra.mxu0 %v9765_v51  ;;  %v6714_v51 = vld [vmem:[%s10711_s7 + $0x110] sm:$0xff]  ;;  %7767 = vmatpush3.msra.mxu1 %v6715_v39  ;;  %v6759_v39 = vld [vmem:[%s10713_s9 + $0x158] sm:$0xff] }
 0xdc7   : > { %7753 = vmatprep.subr.mxu0 %v9772_v0  ;;  %7768 = vmatprep.subr.mxu1 %v6714_v51 }
 0xdc8   : > { %7754 = vmatpush3.msra.mxu0 %v9772_v0  ;;  %7769 = vmatpush3.msra.mxu1 %v6714_v51  ;;  %v6713_v0 = vld [vmem:[%s10711_s7 + $0x108] sm:$0xff] }
 0xdc9   : > { %7755 = vmatprep.subr.mxu0 %v9778_v7  ;;  %7770 = vmatprep.subr.mxu1 %v6713_v0  ;;  %v6748_v51 = vld [vmem:[%s10713_s9 + $0x108] sm:$0xff] }
 0xdca   : > { %7756 = vmatpush3.msra.mxu0 %v9778_v7  ;;  %7771 = vmatpush3.msra.mxu1 %v6713_v0  ;;  %v6712_v7 = vld [vmem:[%s10711_s7 + $0x100] sm:$0xff]  ;;  %v6758_v0 = vld [vmem:[%s10713_s9 + $0x150] sm:$0xff] }
 0xdcb   : > { %7757 = vmatprep.subr.mxu0 %v9784_v44  ;;  %7772 = vmatprep.subr.mxu1 %v6712_v7 }
 0xdcc   : > { %7758 = vmatpush3.msra.mxu0 %v9784_v44  ;;  %7773 = vmatpush3.msra.mxu1 %v6712_v7  ;;  %v6727_v44 = vld [vmem:[%s10713_s9 + $0x78] sm:$0xff]  ;;  %v6747_v7 = vld [vmem:[%s10713_s9 + $0x100] sm:$0xff] }
 0xdcd   : > { %7759 = vmatprep.subr.mxu0 %v9790_v45  ;;  %7777 = vmatprep.subr.mxu1 %v8100_v1 }
 0xdce   : > { %7760 = vmatpush3.msra.mxu0 %v9790_v45  ;;  %v6726_v45 = vld [vmem:[%s10713_s9 + $0x70] sm:$0xff] }
 0xdcf   : > { %7761 = vmatprep.subr.mxu0 %v9796_v20 }
 0xdd0   : > { %7762 = vmatpush3.msra.mxu0 %v9796_v20  ;;  %v6725_v20 = vld [vmem:[%s10713_s9 + $0x68] sm:$0xff] }
 0xdd1   : > { %7764 = vmatmul.mubr.msk.f32.vlgmr.msra.gmra.mxu0 %vm3369_vm5, %v6709_v17  ;;  %7796 = vmatprep.subr.mxu0 %v8100_v1  ;;  %v6749_v17 = vld [vmem:[%s10713_s9 + $0x110] sm:$0xff] }
 0xdd2   : > { %7812 = vmatprep.mubr.msk.f32.mxu0 %vm8101_vm1, %v8100_v1  ;;  %7797 = vmatpush3.msra.mxu0 %v6727_v44  ;;  %v6757_v44 = vld [vmem:[%s10713_s9 + $0x148] sm:$0xff] }
 0xdd3   : > { %7798 = vmatprep.subr.mxu0 %v8100_v1 }
 0xdd4   : > { %7799 = vmatpush3.msra.mxu0 %v6726_v45 }
 0xdd5   : > { %7800 = vmatprep.subr.mxu0 %v8100_v1 }
 0xdd6   : > { %7801 = vmatpush3.msra.mxu0 %v6725_v20  ;;  %v6756_v20 = vld [vmem:[%s10713_s9 + $0x140] sm:$0xff] }
 0xdd7   : > { %7802 = vmatprep.subr.mxu0 %v8100_v1 }
 0xdd8   : > { %7803 = vmatpush3.msra.mxu0 %v6724_v15  ;;  %v6777_v15 = vld [vmem:[%s10713_s9 + $0x1d8] sm:$0xff] }
 0xdd9   : > { %7804 = vmatprep.subr.mxu0 %v8100_v1 }
 0xdda   : > { %7805 = vmatpush3.msra.mxu0 %v6723_v33  ;;  %v6776_v33 = vld [vmem:[%s10713_s9 + $0x1d0] sm:$0xff] }
 0xddb   : > { %7806 = vmatprep.subr.mxu0 %v8100_v1 }
 0xddc   : > { %7807 = vmatpush3.msra.mxu0 %v6722_v42  ;;  %v6775_v42 = vld [vmem:[%s10713_s9 + $0x1c8] sm:$0xff] }
 0xddd   : > { %7808 = vmatprep.subr.mxu0 %v8100_v1 }
 0xdde   : > { %7809 = vmatpush3.msra.mxu0 %v6721_v54  ;;  %v6774_v54 = vld [vmem:[%s10713_s9 + $0x1c0] sm:$0xff] }
 0xddf   : > { %7810 = vmatprep.subr.mxu0 %v8100_v1 }
 0xde0   : > { %7811 = vmatpush3.msra.mxu0 %v6720_v59  ;;  %v6790_v59 = vld [vmem:[%s10713_s9 + $0x238] sm:$0xff] }
 0xde1   : > { %7834 = vmatprep.subr.mxu0 %v8100_v1 }
 0xe81   : > { %v7746_v43 = vpop.f32.mrf.mxu0 }
 0xe82   : > { %v4738_v46 = vadd.f32 %v7746_v43, %v4566_v2  ;;  %v6752_v2 = vld [vmem:[%s10713_s9 + $0x128] sm:$0xff]  ;;  %v6772_v43 = vld [vmem:[%s10713_s9 + $0x1b8] sm:$0xff] }
 0xe83   : > { %v4728_v49 = vpop.f32.mrf.mxu0 }
 0xe84   : > { %v4737_v52 = vadd.f32 %v4728_v49, %v4565_v21  ;;  %v6751_v21 = vld [vmem:[%s10713_s9 + $0x120] sm:$0xff]  ;;  %v6771_v49 = vld [vmem:[%s10713_s9 + $0x1b0] sm:$0xff] }
 0xe91   : > { %v7765_v55 = vpop.f32.mrf.mxu0 }
 0xe93   : > { %v4814_v58 = vpop.f32.mrf.mxu0 }
 0xe94   : > { %7774 = vmatprep.mubr.msk.f32.mxu1 %vm3544_vm6, %v4814_v58  ;;  %v6780_v58 = vld [vmem:[%s10713_s9 + $0x1f0] sm:$0xff] }
 0xe95   : > { %7775 = vmatmul.mubr.msk.f32.vlgmr.msra.gmra.mxu1 %vm3544_vm6, %v7765_v55  ;;  %v6770_v55 = vld [vmem:[%s10713_s9 + $0x1a8] sm:$0xff] }
 0xe96   : > { %7778 = vmatpush3.msra.mxu1 %v4930_v61  ;;  %7793 = vmatprep.mubr.msk.f32.mxu1 %vm8101_vm1, %v8100_v1  ;;  %v6769_v61 = vld [vmem:[%s10713_s9 + $0x1a0] sm:$0xff] }
 0xe97   : > { %7779 = vmatprep.subr.mxu1 %v8100_v1 }
 0xe98   : > { %7780 = vmatpush3.msra.mxu1 %v4929_v3  ;;  %v6779_v3 = vld [vmem:[%s10713_s9 + $0x1e8] sm:$0xff] }
 0xe99   : > { %7781 = vmatprep.subr.mxu1 %v8100_v1 }
 0xe9a   : > { %7782 = vmatpush3.msra.mxu1 %v4928_v8  ;;  %v6768_v8 = vld [vmem:[%s10713_s9 + $0x198] sm:$0xff] }
 0xe9b   : > { %7783 = vmatprep.subr.mxu1 %v8100_v1 }
 0xe9c   : > { %7784 = vmatpush3.msra.mxu1 %v4927_v11  ;;  %v6778_v11 = vld [vmem:[%s10713_s9 + $0x1e0] sm:$0xff] }
 0xe9d   : > { %7785 = vmatprep.subr.mxu1 %v8100_v1 }
 0xe9e   : > { %7786 = vmatpush3.msra.mxu1 %v4926_v13  ;;  %v6767_v13 = vld [vmem:[%s10713_s9 + $0x190] sm:$0xff] }
 0xe9f   : > { %7787 = vmatprep.subr.mxu1 %v8100_v1 }
 0xea0   : > { %7788 = vmatpush3.msra.mxu1 %v4925_v18  ;;  %v6766_v18 = vld [vmem:[%s10713_s9 + $0x188] sm:$0xff] }
 0xea1   : > { %7789 = vmatprep.subr.mxu1 %v8100_v1 }
 0xea2   : > { %7790 = vmatpush3.msra.mxu1 %v4924_v35  ;;  %v6765_v35 = vld [vmem:[%s10713_s9 + $0x180] sm:$0xff] }
 0xea3   : > { %7791 = vmatprep.subr.mxu1 %v8100_v1 }
 0xea4   : > { %7792 = vmatpush3.msra.mxu1 %v4923_v47 }
 0xea5   : > { %7815 = vmatprep.subr.mxu1 %v8100_v1 }
 0xf55   : > { %v7776_v5 = vpop.f32.mrf.mxu1 }
 0xf56   : > { %v4910_v23 = vadd.f32 %v7776_v5, %v4738_v46 }
 0xf57   : > { %v4900_v25 = vpop.f32.mrf.mxu1 }
 0xf58   : > { %v10181_v6 = vadd.f32 %v6718_v50, %v4910_v23  ;;  %v4909_v29 = vadd.f32 %v4900_v25, %v4737_v52  ;;  %v6781_v52 = vld [vmem:[%s10713_s9 + $0x1f8] sm:$0xff]  ;;  %v6788_v25 = vld [vmem:[%s10713_s9 + $0x228] sm:$0xff] }
 0xf59   : > { %v6799_v23 = vld [vmem:[%s10713_s9 + $0x278] sm:$0xff] }
 0xf5a   : > { %v4918_v28 = vadd.f32 %v6718_v50, %v4909_v29  ;;  %v6789_v50 = vld [vmem:[%s10713_s9 + $0x230] sm:$0xff] }
 0xf5b   : > { %v6798_v29 = vld [vmem:[%s10713_s9 + $0x270] sm:$0xff] }
 0xf5c   : > { %v10183_v16 = vmax.f32 %v4918_v28, 0.0  ;;  %v6787_v28 = vld [vmem:[%s10713_s9 + $0x220] sm:$0xff] }
 0xf5e   : > { %7794 = vmatmul.mubr.msk.f32.vlgmr.msra.gmra.mxu1 %vm3369_vm5, %v10183_v16  ;;  %v5014_v48 = vrot.slane %v10183_v16, 1  ;;  %v5097_v19 = vrot.slane %v10183_v16, 2  ;;  %v5180_v22 = vrot.slane %v10183_v16, 3  ;;  %v5263_v45 = vrot.slane %v10183_v16, 4 }
 0xf5f   : > { %7816 = vmatpush3.msra.mxu1 %v6736_v24  ;;  %7831 = vmatprep.mubr.msk.f32.mxu1 %vm8101_vm1, %v8100_v1  ;;  %v5346_v46 = vrot.slane %v10183_v16, 5  ;;  %v5429_v47 = vrot.slane %v10183_v16, 6  ;;  %v5512_v5 = vrot.slane %v10183_v16, 7  ;;  %v6797_v16 = vld [vmem:[%s10713_s9 + $0x268] sm:$0xff]  ;;  %v6786_v24 = vld [vmem:[%s10713_s9 + $0x218] sm:$0xff] }
 0xf60   : > { %7817 = vmatprep.subr.mxu1 %v8100_v1  ;;  %7813 = vmatmul.mubr.msk.f32.vlgmr.msra.gmra.mxu0 %vm3369_vm5, %v5014_v48  ;;  %v6796_v48 = vld [vmem:[%s10713_s9 + $0x260] sm:$0xff] }
 0xf61   : > { %7818 = vmatpush3.msra.mxu1 %v6735_v57  ;;  %7835 = vmatpush3.msra.mxu0 %v6745_v27  ;;  %v6785_v57 = vld [vmem:[%s10713_s9 + $0x210] sm:$0xff]  ;;  %v6795_v27 = vld [vmem:[%s10713_s9 + $0x258] sm:$0xff] }
 0xf62   : > { %7819 = vmatprep.subr.mxu1 %v8100_v1  ;;  %7836 = vmatprep.subr.mxu0 %v8100_v1 }
 0xf63   : > { %7820 = vmatpush3.msra.mxu1 %v6734_v41  ;;  %7837 = vmatpush3.msra.mxu0 %v6744_v30  ;;  %v6784_v41 = vld [vmem:[%s10713_s9 + $0x208] sm:$0xff]  ;;  %v6794_v30 = vld [vmem:[%s10713_s9 + $0x250] sm:$0xff] }
 0xf64   : > { %7821 = vmatprep.subr.mxu1 %v8100_v1  ;;  %7838 = vmatprep.subr.mxu0 %v8100_v1 }
 0xf65   : > { %7822 = vmatpush3.msra.mxu1 %v6733_v56  ;;  %7839 = vmatpush3.msra.mxu0 %v6743_v63  ;;  %v6783_v56 = vld [vmem:[%s10713_s9 + $0x200] sm:$0xff]  ;;  %v6793_v63 = vld [vmem:[%s10713_s9 + $0x248] sm:$0xff] }
 0xf66   : > { %7823 = vmatprep.subr.mxu1 %v8100_v1  ;;  %7840 = vmatprep.subr.mxu0 %v8100_v1 }
 0xf67   : > { %7824 = vmatpush3.msra.mxu1 %v6732_v32  ;;  %7841 = vmatpush3.msra.mxu0 %v6742_v36  ;;  %v10462_v32 = vmax.f32 %v10181_v6, 0.0  ;;  %v6792_v36 = vld [vmem:[%s10713_s9 + $0x240] sm:$0xff] }
 0xf68   : > { %7825 = vmatprep.subr.mxu1 %v8100_v1  ;;  %7842 = vmatprep.subr.mxu0 %v8100_v1 }
 0xf69   : > { %7826 = vmatpush3.msra.mxu1 %v6731_v53  ;;  %7843 = vmatpush3.msra.mxu0 %v6741_v4  ;;  %v6808_v53 = vld [vmem:[%s10713_s9 + $0x2b8] sm:$0xff]  ;;  %v5678_v6 = vrot.slane %v10462_v32, 1  ;;  %v6807_v4 = vld [vmem:[%s10713_s9 + $0x2b0] sm:$0xff] }
 0xf6a   : > { %7827 = vmatprep.subr.mxu1 %v8100_v1  ;;  %7844 = vmatprep.subr.mxu0 %v8100_v1 }
 0xf6b   : > { %7828 = vmatpush3.msra.mxu1 %v6730_v12  ;;  %7845 = vmatpush3.msra.mxu0 %v6740_v60  ;;  %v6817_v12 = vld [vmem:[%s10713_s9 + $0x2f8] sm:$0xff]  ;;  %v6806_v60 = vld [vmem:[%s10713_s9 + $0x2a8] sm:$0xff] }
 0xf6c   : > { %7829 = vmatprep.subr.mxu1 %v8100_v1  ;;  %7846 = vmatprep.subr.mxu0 %v8100_v1 }
 0xf6d   : > { %7830 = vmatpush3.msra.mxu1 %v6729_v62  ;;  %7847 = vmatpush3.msra.mxu0 %v6739_v31  ;;  %v6816_v62 = vld [vmem:[%s10713_s9 + $0x2f0] sm:$0xff]  ;;  %v6805_v31 = vld [vmem:[%s10713_s9 + $0x2a0] sm:$0xff] }
 0xf6e   : > { %7832 = vmatmul.mubr.msk.f32.vlgmr.msra.gmra.mxu1 %vm3369_vm5, %v5097_v19  ;;  %7848 = vmatprep.subr.mxu0 %v8100_v1  ;;  %v6815_v19 = vld [vmem:[%s10713_s9 + $0x2e8] sm:$0xff] }
 0xf6f   : > { %7853 = vmatprep.subr.mxu1 %v8100_v1  ;;  %7849 = vmatpush3.msra.mxu0 %v6738_v38  ;;  %v6804_v38 = vld [vmem:[%s10713_s9 + $0x298] sm:$0xff] }
 0xf70   : > { %7850 = vmatprep.mubr.msk.f32.mxu0 %vm8101_vm1, %v8100_v1  ;;  %7854 = vmatpush3.msra.mxu1 %v6754_v10  ;;  %v6814_v10 = vld [vmem:[%s10713_s9 + $0x2e0] sm:$0xff] }
 0xf71   : > { %7851 = vmatmul.mubr.msk.f32.vlgmr.msra.gmra.mxu0 %vm3369_vm5, %v5180_v22  ;;  %7855 = vmatprep.subr.mxu1 %v8100_v1  ;;  %v6803_v22 = vld [vmem:[%s10713_s9 + $0x290] sm:$0xff] }
 0xf72   : > { %7872 = vmatprep.subr.mxu0 %v8100_v1  ;;  %7856 = vmatpush3.msra.mxu1 %v6753_v9  ;;  %v6813_v9 = vld [vmem:[%s10713_s9 + $0x2d8] sm:$0xff] }
 0xf73   : > { %7873 = vmatpush3.msra.mxu0 %v6763_v14  ;;  %7857 = vmatprep.subr.mxu1 %v8100_v1  ;;  %v6802_v14 = vld [vmem:[%s10713_s9 + $0x288] sm:$0xff] }
 0xf74   : > { %7874 = vmatprep.subr.mxu0 %v8100_v1  ;;  %7858 = vmatpush3.msra.mxu1 %v6752_v2  ;;  %v6812_v2 = vld [vmem:[%s10713_s9 + $0x2d0] sm:$0xff] }
 0xf75   : > { %7875 = vmatpush3.msra.mxu0 %v6762_v34  ;;  %7859 = vmatprep.subr.mxu1 %v8100_v1  ;;  %v6801_v34 = vld [vmem:[%s10713_s9 + $0x280] sm:$0xff] }
 0xf76   : > { %7876 = vmatprep.subr.mxu0 %v8100_v1  ;;  %7860 = vmatpush3.msra.mxu1 %v6751_v21  ;;  %v6811_v21 = vld [vmem:[%s10713_s9 + $0x2c8] sm:$0xff] }
 0xf77   : > { %7877 = vmatpush3.msra.mxu0 %v6761_v26  ;;  %7861 = vmatprep.subr.mxu1 %v8100_v1  ;;  %v5761_v26 = vrot.slane %v10462_v32, 2 }
 0xf78   : > { %7878 = vmatprep.subr.mxu0 %v8100_v1  ;;  %7862 = vmatpush3.msra.mxu1 %v6750_v37  ;;  %v6810_v37 = vld [vmem:[%s10713_s9 + $0x2c0] sm:$0xff] }
 0xf79   : > { %7879 = vmatpush3.msra.mxu0 %v6760_v40  ;;  %7863 = vmatprep.subr.mxu1 %v8100_v1  ;;  %v6826_v40 = vld [vmem:[%s10713_s9 + $0x338] sm:$0xff] }
 0xf7a   : > { %7880 = vmatprep.subr.mxu0 %v8100_v1  ;;  %7864 = vmatpush3.msra.mxu1 %v6749_v17  ;;  %v5844_v17 = vrot.slane %v10462_v32, 3 }
 0xf7b   : > { %7881 = vmatpush3.msra.mxu0 %v6759_v39  ;;  %7865 = vmatprep.subr.mxu1 %v8100_v1  ;;  %v6825_v39 = vld [vmem:[%s10713_s9 + $0x330] sm:$0xff] }
 0xf7c   : > { %7882 = vmatprep.subr.mxu0 %v8100_v1  ;;  %7866 = vmatpush3.msra.mxu1 %v6748_v51  ;;  %v6835_v51 = vld [vmem:[%s10713_s9 + $0x378] sm:$0xff] }
 0xf7d   : > { %7883 = vmatpush3.msra.mxu0 %v6758_v0  ;;  %7867 = vmatprep.subr.mxu1 %v8100_v1  ;;  %v6824_v0 = vld [vmem:[%s10713_s9 + $0x328] sm:$0xff] }
 0xf7e   : > { %7884 = vmatprep.subr.mxu0 %v8100_v1  ;;  %7868 = vmatpush3.msra.mxu1 %v6747_v7  ;;  %v6834_v7 = vld [vmem:[%s10713_s9 + $0x370] sm:$0xff] }
 0xf7f   : > { %7869 = vmatprep.mubr.msk.f32.mxu1 %vm8101_vm1, %v8100_v1  ;;  %7885 = vmatpush3.msra.mxu0 %v6757_v44  ;;  %v6823_v44 = vld [vmem:[%s10713_s9 + $0x320] sm:$0xff] }
 0xf80   : > { %7870 = vmatmul.mubr.msk.f32.vlgmr.msra.gmra.mxu1 %vm3369_vm5, %v5263_v45  ;;  %7886 = vmatprep.subr.mxu0 %v8100_v1  ;;  %v6833_v45 = vld [vmem:[%s10713_s9 + $0x368] sm:$0xff] }
 0xf81   : > { %7891 = vmatprep.subr.mxu1 %v8100_v1  ;;  %7887 = vmatpush3.msra.mxu0 %v6756_v20  ;;  %v6822_v20 = vld [vmem:[%s10713_s9 + $0x318] sm:$0xff] }
 0xf82   : > { %7888 = vmatprep.mubr.msk.f32.mxu0 %vm8101_vm1, %v8100_v1  ;;  %7892 = vmatpush3.msra.mxu1 %v6772_v43  ;;  %v6832_v43 = vld [vmem:[%s10713_s9 + $0x360] sm:$0xff] }
 0xf83   : > { %7889 = vmatmul.mubr.msk.f32.vlgmr.msra.gmra.mxu0 %vm3369_vm5, %v5346_v46  ;;  %7893 = vmatprep.subr.mxu1 %v8100_v1  ;;  %v6821_v46 = vld [vmem:[%s10713_s9 + $0x310] sm:$0xff] }
 0xf84   : > { %7910 = vmatprep.subr.mxu0 %v8100_v1  ;;  %7894 = vmatpush3.msra.mxu1 %v6771_v49  ;;  %v6831_v49 = vld [vmem:[%s10713_s9 + $0x358] sm:$0xff] }
 0xf85   : > { %7911 = vmatpush3.msra.mxu0 %v6781_v52  ;;  %7895 = vmatprep.subr.mxu1 %v8100_v1  ;;  %v6820_v52 = vld [vmem:[%s10713_s9 + $0x308] sm:$0xff] }
 0xf86   : > { %7912 = vmatprep.subr.mxu0 %v8100_v1  ;;  %7896 = vmatpush3.msra.mxu1 %v6770_v55  ;;  %v6830_v55 = vld [vmem:[%s10713_s9 + $0x350] sm:$0xff] }
 0xf87   : > { %7913 = vmatpush3.msra.mxu0 %v6780_v58  ;;  %7897 = vmatprep.subr.mxu1 %v8100_v1  ;;  %v6819_v58 = vld [vmem:[%s10713_s9 + $0x300] sm:$0xff] }
 0xf88   : > { %7914 = vmatprep.subr.mxu0 %v8100_v1  ;;  %7898 = vmatpush3.msra.mxu1 %v6769_v61  ;;  %v6829_v61 = vld [vmem:[%s10713_s9 + $0x348] sm:$0xff] }
 0xf89   : > { %7915 = vmatpush3.msra.mxu0 %v6779_v3  ;;  %7899 = vmatprep.subr.mxu1 %v8100_v1  ;;  %v5927_v3 = vrot.slane %v10462_v32, 4 }
 0xf8a   : > { %7916 = vmatprep.subr.mxu0 %v8100_v1  ;;  %7900 = vmatpush3.msra.mxu1 %v6768_v8  ;;  %v6828_v8 = vld [vmem:[%s10713_s9 + $0x340] sm:$0xff] }
 0xf8b   : > { %7917 = vmatpush3.msra.mxu0 %v6778_v11  ;;  %7901 = vmatprep.subr.mxu1 %v8100_v1  ;;  %v6844_v11 = vld [vmem:[%s10713_s9 + $0x3b8] sm:$0xff] }
 0xf8c   : > { %7918 = vmatprep.subr.mxu0 %v8100_v1  ;;  %7902 = vmatpush3.msra.mxu1 %v6767_v13  ;;  %v6010_v13 = vrot.slane %v10462_v32, 5 }
 0xf8d   : > { %7919 = vmatpush3.msra.mxu0 %v6777_v15  ;;  %7903 = vmatprep.subr.mxu1 %v8100_v1  ;;  %v6843_v15 = vld [vmem:[%s10713_s9 + $0x3b0] sm:$0xff] }
 0xf8e   : > { %7920 = vmatprep.subr.mxu0 %v8100_v1  ;;  %7904 = vmatpush3.msra.mxu1 %v6766_v18  ;;  %v6853_v18 = vld [vmem:[%s10713_s9 + $0x3f8] sm:$0xff] }
 0xf8f   : > { %7921 = vmatpush3.msra.mxu0 %v6776_v33  ;;  %7905 = vmatprep.subr.mxu1 %v8100_v1  ;;  %v6842_v33 = vld [vmem:[%s10713_s9 + $0x3a8] sm:$0xff] }
 0xf90   : > { %7922 = vmatprep.subr.mxu0 %v8100_v1  ;;  %7906 = vmatpush3.msra.mxu1 %v6765_v35  ;;  %v6852_v35 = vld [vmem:[%s10713_s9 + $0x3f0] sm:$0xff] }
 0xf91   : > { %7907 = vmatprep.mubr.msk.f32.mxu1 %vm8101_vm1, %v8100_v1  ;;  %7923 = vmatpush3.msra.mxu0 %v6775_v42  ;;  %v6841_v42 = vld [vmem:[%s10713_s9 + $0x3a0] sm:$0xff] }
 0xf92   : > { %7908 = vmatmul.mubr.msk.f32.vlgmr.msra.gmra.mxu1 %vm3369_vm5, %v5429_v47  ;;  %7924 = vmatprep.subr.mxu0 %v8100_v1  ;;  %v6851_v47 = vld [vmem:[%s10713_s9 + $0x3e8] sm:$0xff] }
 0xf93   : > { %7929 = vmatprep.subr.mxu1 %v8100_v1  ;;  %7925 = vmatpush3.msra.mxu0 %v6774_v54  ;;  %v6840_v54 = vld [vmem:[%s10713_s9 + $0x398] sm:$0xff] }
 0xf94   : > { %7926 = vmatprep.mubr.msk.f32.mxu0 %vm8101_vm1, %v8100_v1  ;;  %7930 = vmatpush3.msra.mxu1 %v6790_v59  ;;  %v6850_v59 = vld [vmem:[%s10713_s9 + $0x3e0] sm:$0xff] }
 0xf95   : > { %7927 = vmatmul.mubr.msk.f32.vlgmr.msra.gmra.mxu0 %vm3369_vm5, %v5512_v5  ;;  %7931 = vmatprep.subr.mxu1 %v8100_v1  ;;  %v6839_v5 = vld [vmem:[%s10713_s9 + $0x390] sm:$0xff] }
 0xf96   : > { %7948 = vmatprep.subr.mxu0 %v8100_v1  ;;  %7932 = vmatpush3.msra.mxu1 %v6789_v50  ;;  %v6849_v50 = vld [vmem:[%s10713_s9 + $0x3d8] sm:$0xff] }
 0xf97   : > { %7949 = vmatpush3.msra.mxu0 %v6799_v23  ;;  %7933 = vmatprep.subr.mxu1 %v8100_v1  ;;  %v6838_v23 = vld [vmem:[%s10713_s9 + $0x388] sm:$0xff] }
 0xf98   : > { %7950 = vmatprep.subr.mxu0 %v8100_v1  ;;  %7934 = vmatpush3.msra.mxu1 %v6788_v25  ;;  %v6848_v25 = vld [vmem:[%s10713_s9 + $0x3d0] sm:$0xff] }
 0xf99   : > { %7951 = vmatpush3.msra.mxu0 %v6798_v29  ;;  %7935 = vmatprep.subr.mxu1 %v8100_v1  ;;  %v6837_v29 = vld [vmem:[%s10713_s9 + $0x380] sm:$0xff] }
 0xf9a   : > { %7952 = vmatprep.subr.mxu0 %v8100_v1  ;;  %7936 = vmatpush3.msra.mxu1 %v6787_v28  ;;  %v6847_v28 = vld [vmem:[%s10713_s9 + $0x3c8] sm:$0xff] }
 0xf9b   : > { %7953 = vmatpush3.msra.mxu0 %v6797_v16  ;;  %7937 = vmatprep.subr.mxu1 %v8100_v1  ;;  %v6093_v16 = vrot.slane %v10462_v32, 6 }
 0xf9c   : > { %7954 = vmatprep.subr.mxu0 %v8100_v1  ;;  %7938 = vmatpush3.msra.mxu1 %v6786_v24  ;;  %v6846_v24 = vld [vmem:[%s10713_s9 + $0x3c0] sm:$0xff] }
 0xf9d   : > { %7955 = vmatpush3.msra.mxu0 %v6796_v48  ;;  %7939 = vmatprep.subr.mxu1 %v8100_v1  ;;  %v6176_v48 = vrot.slane %v10462_v32, 7 }
 0xf9e   : > { %7956 = vmatprep.subr.mxu0 %v8100_v1  ;;  %7940 = vmatpush3.msra.mxu1 %v6785_v57  ;;  %v4922_v57 = vld [vmem:[%s10714_s10] sm:$0x1] }
 0xf9f   : > { %7957 = vmatpush3.msra.mxu0 %v6795_v27  ;;  %7941 = vmatprep.subr.mxu1 %v8100_v1 }
 0xfa0   : > { %7958 = vmatprep.subr.mxu0 %v8100_v1  ;;  %7942 = vmatpush3.msra.mxu1 %v6784_v41 }
 0xfa1   : > { %7959 = vmatpush3.msra.mxu0 %v6794_v30  ;;  %7943 = vmatprep.subr.mxu1 %v8100_v1 }
 0xfa2   : > { %7960 = vmatprep.subr.mxu0 %v8100_v1  ;;  %7944 = vmatpush3.msra.mxu1 %v6783_v56 }
 0xfa3   : > { %7945 = vmatprep.mubr.msk.f32.mxu1 %vm8101_vm1, %v8100_v1  ;;  %7961 = vmatpush3.msra.mxu0 %v6793_v63 }
 0xfa4   : > { %7946 = vmatmul.mubr.msk.f32.vlgmr.msra.gmra.mxu1 %vm3369_vm5, %v10462_v32  ;;  %7962 = vmatprep.subr.mxu0 %v8100_v1 }
 0xfa5   : > { %7967 = vmatprep.subr.mxu1 %v8100_v1  ;;  %7963 = vmatpush3.msra.mxu0 %v6792_v36 }
 0xfa6   : > { %7964 = vmatprep.mubr.msk.f32.mxu0 %vm8101_vm1, %v8100_v1  ;;  %7968 = vmatpush3.msra.mxu1 %v6808_v53 }
 0xfa7   : > { %7965 = vmatmul.mubr.msk.f32.vlgmr.msra.gmra.mxu0 %vm3369_vm5, %v5678_v6  ;;  %7969 = vmatprep.subr.mxu1 %v8100_v1 }
 0xfa8   : > { %7986 = vmatprep.subr.mxu0 %v8100_v1  ;;  %7970 = vmatpush3.msra.mxu1 %v6807_v4 }
 0xfa9   : > { %7987 = vmatpush3.msra.mxu0 %v6817_v12  ;;  %7971 = vmatprep.subr.mxu1 %v8100_v1 }
 0xfaa   : > { %7988 = vmatprep.subr.mxu0 %v8100_v1  ;;  %7972 = vmatpush3.msra.mxu1 %v6806_v60 }
 0xfab   : > { %7989 = vmatpush3.msra.mxu0 %v6816_v62  ;;  %7973 = vmatprep.subr.mxu1 %v8100_v1 }
 0xfac   : > { %7990 = vmatprep.subr.mxu0 %v8100_v1  ;;  %7974 = vmatpush3.msra.mxu1 %v6805_v31 }
 0xfad   : > { %7991 = vmatpush3.msra.mxu0 %v6815_v19  ;;  %7975 = vmatprep.subr.mxu1 %v8100_v1 }
 0xfae   : > { %7992 = vmatprep.subr.mxu0 %v8100_v1  ;;  %7976 = vmatpush3.msra.mxu1 %v6804_v38 }
 0xfaf   : > { %7993 = vmatpush3.msra.mxu0 %v6814_v10  ;;  %7977 = vmatprep.subr.mxu1 %v8100_v1 }
 0xfb0   : > { %7994 = vmatprep.subr.mxu0 %v8100_v1  ;;  %7978 = vmatpush3.msra.mxu1 %v6803_v22 }
 0xfb1   : > { %7995 = vmatpush3.msra.mxu0 %v6813_v9  ;;  %7979 = vmatprep.subr.mxu1 %v8100_v1 }
 0xfb2   : > { %7996 = vmatprep.subr.mxu0 %v8100_v1  ;;  %7980 = vmatpush3.msra.mxu1 %v6802_v14 }
 0xfb3   : > { %7997 = vmatpush3.msra.mxu0 %v6812_v2  ;;  %7981 = vmatprep.subr.mxu1 %v8100_v1 }
 0xfb4   : > { %7998 = vmatprep.subr.mxu0 %v8100_v1  ;;  %7982 = vmatpush3.msra.mxu1 %v6801_v34 }
 0xfb5   : > { %7983 = vmatprep.mubr.msk.f32.mxu1 %vm8101_vm1, %v8100_v1  ;;  %7999 = vmatpush3.msra.mxu0 %v6811_v21 }
 0xfb6   : > { %7984 = vmatmul.mubr.msk.f32.vlgmr.msra.gmra.mxu1 %vm3369_vm5, %v5761_v26  ;;  %8000 = vmatprep.subr.mxu0 %v8100_v1 }
 0xfb7   : > { %8005 = vmatprep.subr.mxu1 %v8100_v1  ;;  %8001 = vmatpush3.msra.mxu0 %v6810_v37 }
 0xfb8   : > { %8002 = vmatprep.mubr.msk.f32.mxu0 %vm8101_vm1, %v8100_v1  ;;  %8006 = vmatpush3.msra.mxu1 %v6826_v40 }
 0xfb9   : > { %8003 = vmatmul.mubr.msk.f32.vlgmr.msra.gmra.mxu0 %vm3369_vm5, %v5844_v17  ;;  %8007 = vmatprep.subr.mxu1 %v8100_v1 }
 0xfba   : > { %8024 = vmatprep.subr.mxu0 %v8100_v1  ;;  %8008 = vmatpush3.msra.mxu1 %v6825_v39 }
 0xfbb   : > { %8025 = vmatpush3.msra.mxu0 %v6835_v51  ;;  %8009 = vmatprep.subr.mxu1 %v8100_v1 }
 0xfbc   : > { %8026 = vmatprep.subr.mxu0 %v8100_v1  ;;  %8010 = vmatpush3.msra.mxu1 %v6824_v0 }
 0xfbd   : > { %8027 = vmatpush3.msra.mxu0 %v6834_v7  ;;  %8011 = vmatprep.subr.mxu1 %v8100_v1 }
 0xfbe   : > { %8028 = vmatprep.subr.mxu0 %v8100_v1  ;;  %8012 = vmatpush3.msra.mxu1 %v6823_v44 }
 0xfbf   : > { %8029 = vmatpush3.msra.mxu0 %v6833_v45  ;;  %8013 = vmatprep.subr.mxu1 %v8100_v1 }
 0xfc0   : > { %8030 = vmatprep.subr.mxu0 %v8100_v1  ;;  %8014 = vmatpush3.msra.mxu1 %v6822_v20 }
 0xfc1   : > { %8031 = vmatpush3.msra.mxu0 %v6832_v43  ;;  %8015 = vmatprep.subr.mxu1 %v8100_v1 }
 0xfc2   : > { %8032 = vmatprep.subr.mxu0 %v8100_v1  ;;  %8016 = vmatpush3.msra.mxu1 %v6821_v46 }
 0xfc3   : > { %8033 = vmatpush3.msra.mxu0 %v6831_v49  ;;  %8017 = vmatprep.subr.mxu1 %v8100_v1 }
 0xfc4   : > { %8034 = vmatprep.subr.mxu0 %v8100_v1  ;;  %8018 = vmatpush3.msra.mxu1 %v6820_v52 }
 0xfc5   : > { %8035 = vmatpush3.msra.mxu0 %v6830_v55  ;;  %8019 = vmatprep.subr.mxu1 %v8100_v1 }
 0xfc6   : > { %8036 = vmatprep.subr.mxu0 %v8100_v1  ;;  %8020 = vmatpush3.msra.mxu1 %v6819_v58 }
 0xfc7   : > { %8021 = vmatprep.mubr.msk.f32.mxu1 %vm8101_vm1, %v8100_v1  ;;  %8037 = vmatpush3.msra.mxu0 %v6829_v61 }
 0xfc8   : > { %8022 = vmatmul.mubr.msk.f32.vlgmr.msra.gmra.mxu1 %vm3369_vm5, %v5927_v3  ;;  %8038 = vmatprep.subr.mxu0 %v8100_v1 }
 0xfc9   : > { %8043 = vmatprep.subr.mxu1 %v8100_v1  ;;  %8039 = vmatpush3.msra.mxu0 %v6828_v8 }
 0xfca   : > { %8040 = vmatprep.mubr.msk.f32.mxu0 %vm8101_vm1, %v8100_v1  ;;  %8044 = vmatpush3.msra.mxu1 %v6844_v11 }
 0xfcb   : > { %8041 = vmatmul.mubr.msk.f32.vlgmr.msra.gmra.mxu0 %vm3369_vm5, %v6010_v13  ;;  %8045 = vmatprep.subr.mxu1 %v8100_v1 }
 0xfcc   : > { %8062 = vmatprep.subr.mxu0 %v8100_v1  ;;  %8046 = vmatpush3.msra.mxu1 %v6843_v15 }
 0xfcd   : > { %8063 = vmatpush3.msra.mxu0 %v6853_v18  ;;  %8047 = vmatprep.subr.mxu1 %v8100_v1 }
 0xfce   : > { %8064 = vmatprep.subr.mxu0 %v8100_v1  ;;  %8048 = vmatpush3.msra.mxu1 %v6842_v33 }
 0xfcf   : > { %8065 = vmatpush3.msra.mxu0 %v6852_v35  ;;  %8049 = vmatprep.subr.mxu1 %v8100_v1 }
 0xfd0   : > { %8066 = vmatprep.subr.mxu0 %v8100_v1  ;;  %8050 = vmatpush3.msra.mxu1 %v6841_v42 }
 0xfd1   : > { %8067 = vmatpush3.msra.mxu0 %v6851_v47  ;;  %8051 = vmatprep.subr.mxu1 %v8100_v1 }
 0xfd2   : > { %8068 = vmatprep.subr.mxu0 %v8100_v1  ;;  %8052 = vmatpush3.msra.mxu1 %v6840_v54 }
 0xfd3   : > { %8069 = vmatpush3.msra.mxu0 %v6850_v59  ;;  %8053 = vmatprep.subr.mxu1 %v8100_v1 }
 0xfd4   : > { %8070 = vmatprep.subr.mxu0 %v8100_v1  ;;  %8054 = vmatpush3.msra.mxu1 %v6839_v5 }
 0xfd5   : > { %8071 = vmatpush3.msra.mxu0 %v6849_v50  ;;  %8055 = vmatprep.subr.mxu1 %v8100_v1 }
 0xfd6   : > { %8072 = vmatprep.subr.mxu0 %v8100_v1  ;;  %8056 = vmatpush3.msra.mxu1 %v6838_v23 }
 0xfd7   : > { %8073 = vmatpush3.msra.mxu0 %v6848_v25  ;;  %8057 = vmatprep.subr.mxu1 %v8100_v1 }
 0xfd8   : > { %8074 = vmatprep.subr.mxu0 %v8100_v1  ;;  %8058 = vmatpush3.msra.mxu1 %v6837_v29 }
 0xfd9   : > { %8059 = vmatprep.mubr.msk.f32.mxu1 %vm8101_vm1, %v8100_v1  ;;  %8075 = vmatpush3.msra.mxu0 %v6847_v28 }
 0xfda   : > { %8060 = vmatmul.mubr.msk.f32.vlgmr.msra.gmra.mxu1 %vm3369_vm5, %v6093_v16  ;;  %8076 = vmatprep.subr.mxu0 %v8100_v1 }
 0xfdb   : > { %8077 = vmatpush3.msra.mxu0 %v6846_v24  ;;  %8078 = vmatprep.mubr.msk.f32.mxu0 %vm8101_vm1, %v8100_v1 }
 0xfdc   : > { %8079 = vmatmul.mubr.msk.f32.vlgmr.msra.gmra.mxu0 %vm3369_vm5, %v6176_v48 }
0x101e   : > { %v5000_v27 = vpop.f32.mrf.mxu1 }
0x101f   : > { %v5004_v41 = vadd.f32 %v5000_v27, %v4922_v57 }
0x1020   : > { %v7795_v30 = vpop.f32.mrf.mxu1  ;;  %v5083_v56 = vpop.f32.mrf.mxu0 }
0x1021   : > { %v5087_v63 = vadd.f32 %v5083_v56, %v5004_v41 }
0x1022   : > { %v7814_v36 = vpop.f32.mrf.mxu0 }
0x102e   : > { %v5166_v53 = vpop.f32.mrf.mxu1 }
0x102f   : > { %v5170_v6 = vadd.f32 %v5166_v53, %v5087_v63 }
0x1030   : > { %v7833_v4 = vpop.f32.mrf.mxu1 }
0x1031   : > { %v5249_v32 = vpop.f32.mrf.mxu0 }
0x1032   : > { %v5253_v12 = vadd.f32 %v5249_v32, %v5170_v6 }
0x1033   : > { %v7852_v60 = vpop.f32.mrf.mxu0 }
0x1040   : > { %v5332_v62 = vpop.f32.mrf.mxu1 }
0x1041   : > { %v5336_v1 = vadd.f32 %v5332_v62, %v5253_v12 }
0x1042   : > { %v7871_v31 = vpop.f32.mrf.mxu1 }
0x1043   : > { %v5415_v19 = vpop.f32.mrf.mxu0 }
0x1044   : > { %v5419_v38 = vadd.f32 %v5415_v19, %v5336_v1 }
0x1045   : > { %v7890_v10 = vpop.f32.mrf.mxu0 }
0x1052   : > { %v5498_v22 = vpop.f32.mrf.mxu1 }
0x1053   : > { %v5502_v0 = vadd.f32 %v5498_v22, %v5419_v38 }
0x1054   : > { %v7909_v9 = vpop.f32.mrf.mxu1 }
0x1055   : > { %v5581_v14 = vpop.f32.mrf.mxu0 }
0x1056   : > { %v5585_v7 = vadd.f32 %v5581_v14, %v5502_v0 }
0x1057   : > { %v7928_v2 = vpop.f32.mrf.mxu0 }
0x1064   : > { %v5664_v34 = vpop.f32.mrf.mxu1 }
0x1065   : > { %v5668_v45 = vadd.f32 %v5664_v34, %v5585_v7 }
0x1066   : > { %v7947_v21 = vpop.f32.mrf.mxu1 }
0x1067   : > { %v5747_v26 = vpop.f32.mrf.mxu0 }
0x1068   : > { %v5751_v46 = vadd.f32 %v5747_v26, %v5668_v45 }
0x1069   : > { %v7966_v37 = vpop.f32.mrf.mxu0 }
0x1076   : > { %v5830_v40 = vpop.f32.mrf.mxu1 }
0x1077   : > { %v5834_v52 = vadd.f32 %v5830_v40, %v5751_v46 }
0x1078   : > { %v7985_v17 = vpop.f32.mrf.mxu1 }
0x1079   : > { %v5913_v39 = vpop.f32.mrf.mxu0 }
0x107a   : > { %v5917_v55 = vadd.f32 %v5913_v39, %v5834_v52 }
0x107b   : > { %v8004_v51 = vpop.f32.mrf.mxu0 }
0x1088   : > { %v5996_v44 = vpop.f32.mrf.mxu1 }
0x1089   : > { %v6000_v58 = vadd.f32 %v5996_v44, %v5917_v55 }
0x108a   : > { %v8023_v20 = vpop.f32.mrf.mxu1 }
0x108b   : > { %v6079_v43 = vpop.f32.mrf.mxu0 }
0x108c   : > { %v6083_v61 = vadd.f32 %v6079_v43, %v6000_v58 }
0x108d   : > { %v8042_v49 = vpop.f32.mrf.mxu0 }
0x109a   : > { %v6162_v3 = vpop.f32.mrf.mxu1 }
0x109b   : > { %v6166_v8 = vadd.f32 %v6162_v3, %v6083_v61 }
0x109c   : > { %v8061_v11 = vpop.f32.mrf.mxu1  ;;  %v6245_v13 = vpop.f32.mrf.mxu0 }
0x109d   : > { %v6249_v15 = vadd.f32 %v6245_v13, %v6166_v8 }
0x109e   : > { %v8080_v18 = vpop.f32.mrf.mxu0 }
0x109f   : > { %6251 = vst.msk [vmem:[%s382_s13] sm:$0x1] %vm6250_vm7, %v6249_v15 }
0x10a0 PF: > { %s21_s17 = sadd.s32 1, %s8098_s17  }
0x10a1   : > { %p18_p4 = scmp.ge.s32.totalorder %s21_s17, 4  }
0x10a3   :  { %20 = sbr.rel (!%p18_p4) target bundleno = 1 (0x1), region = 141 }

</bundles_post_ra>
